<compile_context>
chip_gen: v5e
topology: v5e:2x2
jax: 0.10.0
libtpu: 0.0.40
codegen_flags: <defaults>
</compile_context>

<pallas_src>
import jax
import jax.numpy as jnp
from jax.experimental import pallas as pl
from jax.experimental.pallas import tpu as pltpu

# ---- dimensions implied by the module usage (CLIP-style projector) ---------
D_IN = 512      # input_size
D_HID = 2048    # hidden_size (4 * input_size)
D_OUT = 256     # output_size
BATCH = 8       # small example batch (multiple of 8 sublanes)


# ---------------------------------------------------------------------------
# Fused Pallas kernel: y = relu(x @ W1 + b1) @ W2 + b2
# ---------------------------------------------------------------------------
def mlp_projector_kernel(x_ref, w1_ref, b1_ref, w2_ref, b2_ref, o_ref):
    x = x_ref[...]                                               # (B, D_IN) f32

    # fc1: bf16 x bf16 matmul on the MXU, f32 accumulation; bias/ReLU in f32.
    h = jnp.dot(x.astype(jnp.bfloat16), w1_ref[...],
                preferred_element_type=jnp.float32)
    h = jnp.maximum(h + b1_ref[...], 0.0)                        # ReLU (f32)

    # fc2
    y = jnp.dot(h.astype(jnp.bfloat16), w2_ref[...],
                preferred_element_type=jnp.float32) + b2_ref[...]

    o_ref[...] = y                                               # (B, D_OUT) f32


def mlp_projector(x, w1_bf16, b1, w2_bf16, b2):
    """x: (B, D_IN) f32; w1: (D_IN, D_HID) bf16; w2: (D_HID, D_OUT) bf16.

    Weights are stored (fan_in, fan_out), i.e. already transposed vs torch,
    so the forward is x @ W == x @ W_torch.T.
    """
    b = x.shape[0]
    pad = (-b) % 8                      # keep sublanes unmasked for any batch
    if pad:
        x = jnp.pad(x, ((0, pad), (0, 0)))

    vmem = pl.BlockSpec(memory_space=pltpu.MemorySpace.VMEM)
    out = pl.pallas_call(
        mlp_projector_kernel,
        out_shape=jax.ShapeDtypeStruct((x.shape[0], w2_bf16.shape[1]),
                                       jnp.float32),
        in_specs=[vmem] * 5,
        out_specs=vmem,
        # generous scoped-VMEM headroom; harmless on every TPU generation
        compiler_params=pltpu.CompilerParams(vmem_limit_bytes=64 * 1024 * 1024),
    )(x, w1_bf16, b1, w2_bf16, b2)

    return out[:b] if pad else out


# ---------------------------------------------------------------------------
# Deterministic init matching the PyTorch module
# (kaiming_uniform_(a=0.01, nonlinearity='relu'), biases zero).
# ---------------------------------------------------------------------------
def _kaiming_uniform(key, fan_in, fan_out, a=0.01):
    gain = (2.0 / (1.0 + a * a)) ** 0.5
    bound = gain * (3.0 / fan_in) ** 0.5
    return jax.random.uniform(key, (fan_in, fan_out), jnp.float32, -bound, bound)


if __name__ == "__main__":
    key = jax.random.PRNGKey(0)
    kx, k1, k2 = jax.random.split(key, 3)

    x = jax.random.normal(kx, (BATCH, D_IN), jnp.float32)
    w1_f32 = _kaiming_uniform(k1, D_IN, D_HID)
    w2_f32 = _kaiming_uniform(k2, D_HID, D_OUT)
    b1 = jnp.zeros((1, D_HID), jnp.float32)
    b2 = jnp.zeros((1, D_OUT), jnp.float32)

    # bf16 storage for the weight DMA (in-kernel accumulation stays f32)
    w1 = w1_f32.astype(jnp.bfloat16)
    w2 = w2_f32.astype(jnp.bfloat16)

    out = jax.block_until_ready(mlp_projector(x, w1, b1, w2, b2))
    assert out.shape == (BATCH, D_OUT), out.shape

    # Tight check: reference with the SAME bf16-quantized operands (f32 math)
    # — verifies the kernel structure independent of quantization choice.
    xq = x.astype(jnp.bfloat16).astype(jnp.float32)
    h_ref = jnp.maximum(xq @ w1.astype(jnp.float32) + b1, 0.0)
    ref_q = (h_ref.astype(jnp.bfloat16).astype(jnp.float32)
             @ w2.astype(jnp.float32) + b2)
    assert jnp.allclose(out, ref_q, atol=1e-2, rtol=1e-2), \
        float(jnp.max(jnp.abs(out - ref_q)))

    # Looser check against the pure-f32 module semantics (only bf16
    # quantization error remains).
    ref_f32 = jnp.maximum(x @ w1_f32 + b1, 0.0) @ w2_f32 + b2
    assert jnp.allclose(out, ref_f32, atol=1e-1, rtol=5e-2), \
        float(jnp.max(jnp.abs(out - ref_f32)))

    print("KERNEL_OK")
</pallas_src>

<mosaic_0001>
module attributes {stable_mosaic.version = 11 : i64} {
  func.func @mlp_projector_kernel(%arg0: memref<8x512xf32, #tpu.memory_space<vmem>>, %arg1: memref<512x2048xbf16, #tpu.memory_space<vmem>>, %arg2: memref<1x2048xf32, #tpu.memory_space<vmem>>, %arg3: memref<2048x256xbf16, #tpu.memory_space<vmem>>, %arg4: memref<1x256xf32, #tpu.memory_space<vmem>>, %arg5: memref<8x256xf32, #tpu.memory_space<vmem>>) attributes {dimension_semantics = [], scalar_prefetch = 0 : i64, scratch_operands = 0 : i64, tpu.core_type = #tpu.core_type<tc>} {
    %c0 = arith.constant 0 : index
    %c0_0 = arith.constant 0 : index
    %0 = vector.load %arg0[%c0, %c0_0] : memref<8x512xf32, #tpu.memory_space<vmem>>, vector<8x512xf32>
    %1 = arith.truncf %0 : vector<8x512xf32> to vector<8x512xbf16>
    %c0_1 = arith.constant 0 : index
    %c0_2 = arith.constant 0 : index
    %2 = vector.load %arg1[%c0_1, %c0_2] : memref<512x2048xbf16, #tpu.memory_space<vmem>>, vector<512x2048xbf16>
    %cst = arith.constant dense<0.000000e+00> : vector<8x2048xf32>
    %3 = tpu.matmul %1, %2, %cst {dimension_numbers = #tpu.dot_dimension_numbers<[1], [0], [0], [1], [0, 0, 1, 1], [], []>} : vector<8x512xbf16>, vector<512x2048xbf16>, vector<8x2048xf32> -> vector<8x2048xf32>
    %c0_3 = arith.constant 0 : index
    %c0_4 = arith.constant 0 : index
    %4 = vector.load %arg2[%c0_3, %c0_4] : memref<1x2048xf32, #tpu.memory_space<vmem>>, vector<1x2048xf32>
    %5 = vector.broadcast %4 : vector<1x2048xf32> to vector<8x2048xf32>
    %6 = arith.addf %3, %5 : vector<8x2048xf32>
    %cst_5 = arith.constant 0.000000e+00 : f32
    %7 = vector.broadcast %cst_5 : f32 to vector<8x2048xf32>
    %8 = arith.maximumf %6, %7 : vector<8x2048xf32>
    %9 = arith.truncf %8 : vector<8x2048xf32> to vector<8x2048xbf16>
    %c0_6 = arith.constant 0 : index
    %c0_7 = arith.constant 0 : index
    %10 = vector.load %arg3[%c0_6, %c0_7] : memref<2048x256xbf16, #tpu.memory_space<vmem>>, vector<2048x256xbf16>
    %cst_8 = arith.constant dense<0.000000e+00> : vector<8x256xf32>
    %11 = tpu.matmul %9, %10, %cst_8 {dimension_numbers = #tpu.dot_dimension_numbers<[1], [0], [0], [1], [0, 0, 1, 1], [], []>} : vector<8x2048xbf16>, vector<2048x256xbf16>, vector<8x256xf32> -> vector<8x256xf32>
    %c0_9 = arith.constant 0 : index
    %c0_10 = arith.constant 0 : index
    %12 = vector.load %arg4[%c0_9, %c0_10] : memref<1x256xf32, #tpu.memory_space<vmem>>, vector<1x256xf32>
    %13 = vector.broadcast %12 : vector<1x256xf32> to vector<8x256xf32>
    %14 = arith.addf %11, %13 : vector<8x256xf32>
    %c0_11 = arith.constant 0 : index
    %c0_12 = arith.constant 0 : index
    %15 = vector.load %arg5[%c0_11, %c0_12] : memref<8x256xf32, #tpu.memory_space<vmem>>, vector<8x256xf32>
    tpu.vector_store %arg5[%c0_11, %c0_12], %14 {strides = array<i32>} : memref<8x256xf32, #tpu.memory_space<vmem>>, vector<8x256xf32>,
    return
  }
}

</mosaic_0001>

<bundles_post_ra>
// kernel: tpu_custom_call.1
= control target key start
LH: loop header
LB: loop body
LE: loop exit
PB: predicated region body
PF: predicated region fallthrough
CT: control target
= control target key end

     0   :  { %10 = vsyncpa [#allocation3], 0  ;;  %s10353_s0 = inlined_call_operand.hbm [shape: f32[8,512], index: 0, kind: input, shape index: {}]   ;;  %s10354_s1 = inlined_call_operand.hbm [shape: bf16[512,2048], index: 1, kind: input, shape index: {}]   ;;  %s10355_s2 = inlined_call_operand.hbm [shape: f32[1,2048], index: 2, kind: input, shape index: {}]   ;;  %s10356_s3 = inlined_call_operand.hbm [shape: bf16[2048,256], index: 3, kind: input, shape index: {}]   ;;  %s10357_s4 = inlined_call_operand.hbm [shape: f32[1,256], index: 4, kind: input, shape index: {}]   ;;  %s10358_s5 = inlined_call_operand.hbm [shape: f32[8,256], index: 5, kind: output, shape index: {}]  }
   0x1   :  { %11 = vsyncpa [#allocation6], 0 }
   0x2   :  { %12 = vsyncpa [#allocation9], 0  ;;  %s29_s20 = sshll.u32 %s10354_s1, 4  ;;  %s30_s20 = int_to_ptr.hbm [resolvable:$true] %s29_s20 }
   0x3   :  { %13 = vsyncpa [#allocation4], 0  ;;  %s10056_s21 = smov [#allocation5]   ;;  %s53_s25 = sshll.u32 %s10356_s3, 4  ;;  %s54_s25 = int_to_ptr.hbm [resolvable:$true] %s53_s25 }
   0x4   :  { %s31_s22 = sshll.u32 %s10056_s21, 4  ;;  %s10057_s26 = smov 1024   ;;  %s32_s22 = int_to_ptr.vmem [resolvable:$true] %s31_s22 }
   0x5   :  { %s10058_s27 = smov 64   ;;  %s10059_s28 = smov [#allocation8]  }
   0x6   :  { %37 = dma.hbm_to_vmem [thread:$0]  %s30_s20, 65536, %s32_s22, [#allocation6], %s10057_s26, %s10057_s26, %s10058_s27  }
   0x7   :  { %s55_s29 = sshll.u32 %s10059_s28, 4  ;;  %s10060_s30 = smov 128   ;;  %s56_s29 = int_to_ptr.vmem [resolvable:$true] %s55_s29 }
   0x8   :  { %s10061_s6 = smov 8   ;;  %s19_s8 = sshll.u32 %s10353_s0, 4  ;;  %s20_s8 = int_to_ptr.hbm [resolvable:$true] %s19_s8 }
   0x9   :  { %61 = dma.hbm_to_vmem [thread:$0]  %s54_s25, 32768, %s56_s29, [#allocation9], %s10060_s30, %s10060_s30, %s10061_s6  }
   0xa   :  { %s10062_s9 = smov [#allocation2]   ;;  %s43_s12 = sshll.u32 %s10355_s2, 4  ;;  %s44_s12 = int_to_ptr.hbm [resolvable:$true] %s43_s12 }
   0xb   :  { %s21_s10 = sshll.u32 %s10062_s9, 4  ;;  %s10063_s13 = smov [#allocation7]   ;;  %s22_s10 = int_to_ptr.vmem [resolvable:$true] %s21_s10 }
   0xc   :  { %24 = dma.hbm_to_vmem [thread:$0]  %s20_s8, 512, %s22_s10, [#allocation3]  }
   0xd   :  { %s45_s14 = sshll.u32 %s10063_s13, 4  ;;  %s67_s17 = sshll.u32 %s10357_s4, 4  ;;  %s46_s14 = int_to_ptr.vmem [resolvable:$true] %s45_s14  ;;  %s68_s17 = int_to_ptr.hbm [resolvable:$true] %s67_s17 }
   0xe   :  { %48 = dma.hbm_to_vmem [thread:$0]  %s44_s12, 256, %s46_s14, [#allocation6]  }
   0xf   :  { %s10064_s0 = smov [#allocation10]  }
  0x10   :  { %s69_s18 = sshll.u32 %s10064_s0, 4  ;;  %s70_s18 = int_to_ptr.vmem [resolvable:$true] %s69_s18 }
  0x11   :  { %72 = dma.hbm_to_vmem [thread:$0]  %s68_s17, 32, %s70_s18, [#allocation9]  }
  0x12   :  { %10048 = dma.done.wait [#allocation3], 512  }
  0x13   :  { %10049 = vsyncadd [#allocation3], 4294966784 }
  0x14   :  { %10050 = dma.done.wait [#allocation6], 65792  }
  0x15   :  { %10051 = vsyncadd [#allocation6], 4294901504 }
  0x16   :  { %10052 = dma.done.wait [#allocation9], 32800  }
  0x17   :  { %10053 = vsyncadd [#allocation9], 4294934496  ;;  %v6502_v0 = vld [vmem:[#allocation5 + $0x380] sm:$0xf]  ;;  %s10065_s2 = smov [#allocation11]   ;;  %s6040_s21 = sshll.u32 %s10358_s5, 4  ;;  %s6041_s21 = int_to_ptr.hbm [resolvable:$true] %s6040_s21 }
  0x18   :  { %v9244_v1 = vld [vmem:[#allocation5 + $0x3bc] sm:$0xf0]  ;;  %s6038_s4 = sshll.u32 %s10065_s2, 4  ;;  %s6039_s4 = int_to_ptr.vmem [resolvable:$true] %s6038_s4 }
  0x19   :  { %v7014_v2 = vld [vmem:[#allocation5 + $0x780] sm:$0xf]  ;;  %v6503_v3 = vor.u32 %v9244_v1, %v6502_v0 }
  0x1a   :  { %v9372_v4 = vld [vmem:[#allocation5 + $0x7bc] sm:$0xf0] }
  0x1b   :  { %v7526_v5 = vld [vmem:[#allocation5 + $0xb80] sm:$0xf]  ;;  %v7015_v7 = vor.u32 %v9372_v4, %v7014_v2  ;;  %3209 = vmatpush.bf16.msra.mxu0 %v6503_v3 }
  0x1c   :  { %v9500_v6 = vld [vmem:[#allocation5 + $0xbbc] sm:$0xf0] }
  0x1d   :  { %v7527_v8 = vor.u32 %v9500_v6, %v7526_v5  ;;  %v8038_v9 = vld [vmem:[#allocation5 + $0xf80] sm:$0xf]  ;;  %3222 = vmatpush.bf16.msra.mxu1 %v7015_v7 }
  0x1e   :  { %v9628_v10 = vld [vmem:[#allocation5 + $0xfbc] sm:$0xf0] }
  0x1f   :  { %v6438_v11 = vld [vmem:[#allocation5 + $0x300] sm:$0xf]  ;;  %v8039_v12 = vor.u32 %v9628_v10, %v8038_v9  ;;  %3235 = vmatpush.bf16.msra.mxu2 %v7527_v8 }
  0x20   :  { %v9228_v13 = vld [vmem:[#allocation5 + $0x33c] sm:$0xf0] }
  0x21   :  { %v6950_v14 = vld [vmem:[#allocation5 + $0x700] sm:$0xf]  ;;  %v6439_v16 = vor.u32 %v9228_v13, %v6438_v11  ;;  %3248 = vmatpush.bf16.msra.mxu3 %v8039_v12 }
  0x22   :  { %v9356_v15 = vld [vmem:[#allocation5 + $0x73c] sm:$0xf0] }
  0x23   :  { %v6951_v17 = vor.u32 %v9356_v15, %v6950_v14  ;;  %v7462_v18 = vld [vmem:[#allocation5 + $0xb00] sm:$0xf]  ;;  %3210 = vmatpush.bf16.msra.mxu0 %v6439_v16 }
  0x24   :  { %v9484_v19 = vld [vmem:[#allocation5 + $0xb3c] sm:$0xf0] }
  0x25   :  { %v7974_v20 = vld [vmem:[#allocation5 + $0xf00] sm:$0xf]  ;;  %v7463_v21 = vor.u32 %v9484_v19, %v7462_v18  ;;  %3223 = vmatpush.bf16.msra.mxu1 %v6951_v17 }
  0x26   :  { %v9612_v22 = vld [vmem:[#allocation5 + $0xf3c] sm:$0xf0] }
  0x27   :  { %v6374_v23 = vld [vmem:[#allocation5 + $0x280] sm:$0xf]  ;;  %v7975_v25 = vor.u32 %v9612_v22, %v7974_v20  ;;  %3236 = vmatpush.bf16.msra.mxu2 %v7463_v21 }
  0x28   :  { %v9212_v24 = vld [vmem:[#allocation5 + $0x2bc] sm:$0xf0] }
  0x29   :  { %v6886_v26 = vld [vmem:[#allocation5 + $0x680] sm:$0xf]  ;;  %v6375_v29 = vor.u32 %v9212_v24, %v6374_v23  ;;  %3249 = vmatpush.bf16.msra.mxu3 %v7975_v25 }
  0x2a   :  { %v9340_v27 = vld [vmem:[#allocation5 + $0x6bc] sm:$0xf0] }
  0x2b   :  { %v7398_v28 = vld [vmem:[#allocation5 + $0xa80] sm:$0xf]  ;;  %v6887_v33 = vor.u32 %v9340_v27, %v6886_v26  ;;  %3211 = vmatpush.bf16.msra.mxu0 %v6375_v29  ;;  %v6504_v29 = vld [vmem:[#allocation5 + $0x3c0] sm:$0xf0] }
  0x2c   :  { %v9468_v30 = vld [vmem:[#allocation5 + $0xabc] sm:$0xf0] }
  0x2d   :  { %v7910_v31 = vld [vmem:[#allocation5 + $0xe80] sm:$0xf]  ;;  %v7399_v34 = vor.u32 %v9468_v30, %v7398_v28  ;;  %3224 = vmatpush.bf16.msra.mxu1 %v6887_v33  ;;  %v9236_v28 = vld [vmem:[#allocation5 + $0x384] sm:$0xf] }
  0x2e   :  { %v9596_v32 = vld [vmem:[#allocation5 + $0xebc] sm:$0xf0]  ;;  %v9364_v30 = vld [vmem:[#allocation5 + $0x784] sm:$0xf] }
  0x2f   :  { %v6310_v35 = vld [vmem:[#allocation5 + $0x200] sm:$0xf]  ;;  %v7911_v38 = vor.u32 %v9596_v32, %v7910_v31  ;;  %3237 = vmatpush.bf16.msra.mxu2 %v7399_v34  ;;  %v7016_v32 = vld [vmem:[#allocation5 + $0x7c0] sm:$0xf0] }
  0x30   :  { %v9196_v36 = vld [vmem:[#allocation5 + $0x23c] sm:$0xf0]  ;;  %v9492_v33 = vld [vmem:[#allocation5 + $0xb84] sm:$0xf] }
  0x31   :  { %v6822_v37 = vld [vmem:[#allocation5 + $0x600] sm:$0xf]  ;;  %v6311_v44 = vor.u32 %v9196_v36, %v6310_v35  ;;  %3250 = vmatpush.bf16.msra.mxu3 %v7911_v38  ;;  %v7528_v34 = vld [vmem:[#allocation5 + $0xbc0] sm:$0xf0] }
  0x32   :  { %v9324_v39 = vld [vmem:[#allocation5 + $0x63c] sm:$0xf0]  ;;  %v8040_v38 = vld [vmem:[#allocation5 + $0xfc0] sm:$0xf0] }
  0x33   :  { %v7334_v40 = vld [vmem:[#allocation5 + $0xa00] sm:$0xf]  ;;  %v6823_v45 = vor.u32 %v9324_v39, %v6822_v37  ;;  %3212 = vmatpush.bf16.msra.mxu0 %v6311_v44  ;;  %v9620_v37 = vld [vmem:[#allocation5 + $0xf84] sm:$0xf] }
  0x34   :  { %v9452_v41 = vld [vmem:[#allocation5 + $0xa3c] sm:$0xf0]  ;;  %v6440_v44 = vld [vmem:[#allocation5 + $0x340] sm:$0xf0] }
  0x35   :  { %v7846_v42 = vld [vmem:[#allocation5 + $0xe00] sm:$0xf]  ;;  %v7335_v46 = vor.u32 %v9452_v41, %v7334_v40  ;;  %3225 = vmatpush.bf16.msra.mxu1 %v6823_v45  ;;  %v6507_v40 = vor.u32 %v9236_v28, %v6504_v29  ;;  %v7019_v41 = vor.u32 %v9364_v30, %v7016_v32  ;;  %v9348_v45 = vld [vmem:[#allocation5 + $0x704] sm:$0xf] }
  0x36   :  { %v9580_v43 = vld [vmem:[#allocation5 + $0xe3c] sm:$0xf0]  ;;  %v9428_v28 = vld [vmem:[#allocation5 + $0x984] sm:$0xf] }
  0x37   :  { %v6246_v47 = vld [vmem:[#allocation5 + $0x180] sm:$0xf]  ;;  %v7847_v50 = vor.u32 %v9580_v43, %v7846_v42  ;;  %3238 = vmatpush.bf16.msra.mxu2 %v7335_v46  ;;  %v7531_v42 = vor.u32 %v9492_v33, %v7528_v34  ;;  %v9220_v43 = vld [vmem:[#allocation5 + $0x304] sm:$0xf]  ;;  %v8043_v46 = vor.u32 %v9620_v37, %v8040_v38 }
  0x38   :  { %v9180_v48 = vld [vmem:[#allocation5 + $0x1bc] sm:$0xf0]  ;;  %v7272_v29 = vld [vmem:[#allocation5 + $0x9c0] sm:$0xf0] }
  0x39   :  { %v6758_v49 = vld [vmem:[#allocation5 + $0x580] sm:$0xf]  ;;  %v6247_v56 = vor.u32 %v9180_v48, %v6246_v47  ;;  %3251 = vmatpush.bf16.msra.mxu3 %v7847_v50  ;;  %v6952_v47 = vld [vmem:[#allocation5 + $0x740] sm:$0xf0]  ;;  %v7275_v34 = vor.u32 %v9428_v28, %v7272_v29  ;;  %v7470_v28 = vld [vmem:[#allocation5 + $0xb08] sm:$0xf] }
  0x3a   :  { %v9308_v51 = vld [vmem:[#allocation5 + $0x5bc] sm:$0xf0]  ;;  %v9476_v48 = vld [vmem:[#allocation5 + $0xb04] sm:$0xf]  ;;  %v9485_v29 = vld [vmem:[#allocation5 + $0xb44] sm:$0xf0] }
  0x3b   :  { %v7270_v52 = vld [vmem:[#allocation5 + $0x980] sm:$0xf]  ;;  %v6759_v57 = vor.u32 %v9308_v51, %v6758_v49  ;;  %3213 = vmatpush.bf16.msra.mxu0 %v6247_v56  ;;  %v7464_v49 = vld [vmem:[#allocation5 + $0xb40] sm:$0xf0] }
  0x3c   :  { %v9436_v53 = vld [vmem:[#allocation5 + $0x9bc] sm:$0xf0]  ;;  %v9604_v50 = vld [vmem:[#allocation5 + $0xf04] sm:$0xf] }
  0x3d   :  { %v7782_v54 = vld [vmem:[#allocation5 + $0xd80] sm:$0xf]  ;;  %v7271_v58 = vor.u32 %v9436_v53, %v7270_v52  ;;  %3226 = vmatpush.bf16.msra.mxu1 %v6759_v57  ;;  %v7976_v51 = vld [vmem:[#allocation5 + $0xf40] sm:$0xf0]  ;;  %v6443_v52 = vor.u32 %v9220_v43, %v6440_v44 }
  0x3e   :  { %v9564_v55 = vld [vmem:[#allocation5 + $0xdbc] sm:$0xf0]  ;;  %v9204_v53 = vld [vmem:[#allocation5 + $0x284] sm:$0xf] }
  0x3f   :  { %v6182_v59 = vld [vmem:[#allocation5 + $0x100] sm:$0xf]  ;;  %v7783_v62 = vor.u32 %v9564_v55, %v7782_v54  ;;  %3239 = vmatpush.bf16.msra.mxu2 %v7271_v58  ;;  %v6955_v54 = vor.u32 %v9348_v45, %v6952_v47  ;;  %v7467_v55 = vor.u32 %v9476_v48, %v7464_v49  ;;  %v6376_v56 = vld [vmem:[#allocation5 + $0x2c0] sm:$0xf0] }
  0x40   :  { %v9164_v60 = vld [vmem:[#allocation5 + $0x13c] sm:$0xf0]  ;;  %v9332_v57 = vld [vmem:[#allocation5 + $0x684] sm:$0xf] }
  0x41   :  { %v6694_v61 = vld [vmem:[#allocation5 + $0x500] sm:$0xf]  ;;  %v6183_v4 = vor.u32 %v9164_v60, %v6182_v59  ;;  %3252 = vmatpush.bf16.msra.mxu3 %v7783_v62  ;;  %v6888_v58 = vld [vmem:[#allocation5 + $0x6c0] sm:$0xf0]  ;;  %v7979_v59 = vor.u32 %v9604_v50, %v7976_v51 }
  0x42   :  { %v9292_v63 = vld [vmem:[#allocation5 + $0x53c] sm:$0xf0]  ;;  %v9460_v60 = vld [vmem:[#allocation5 + $0xa84] sm:$0xf] }
  0x43   :  { %v7206_v0 = vld [vmem:[#allocation5 + $0x900] sm:$0xf]  ;;  %v6695_v5 = vor.u32 %v9292_v63, %v6694_v61  ;;  %3214 = vmatpush.bf16.msra.mxu0 %v6183_v4  ;;  %v7400_v61 = vld [vmem:[#allocation5 + $0xac0] sm:$0xf0] }
  0x44   :  { %v9420_v1 = vld [vmem:[#allocation5 + $0x93c] sm:$0xf0]  ;;  %v9588_v62 = vld [vmem:[#allocation5 + $0xe84] sm:$0xf]  ;;  %v7403_v4 = vor.u32 %v9460_v60, %v7400_v61 }
  0x45   :  { %v7718_v2 = vld [vmem:[#allocation5 + $0xd00] sm:$0xf]  ;;  %v7207_v6 = vor.u32 %v9420_v1, %v7206_v0  ;;  %3227 = vmatpush.bf16.msra.mxu1 %v6695_v5  ;;  %v7912_v63 = vld [vmem:[#allocation5 + $0xec0] sm:$0xf0]  ;;  %v6379_v0 = vor.u32 %v9204_v53, %v6376_v56  ;;  %v6891_v1 = vor.u32 %v9332_v57, %v6888_v58 }
  0x46   :  { %v9548_v3 = vld [vmem:[#allocation5 + $0xd3c] sm:$0xf0]  ;;  %v9188_v5 = vld [vmem:[#allocation5 + $0x204] sm:$0xf] }
  0x47   :  { %v6118_v7 = vld [vmem:[#allocation5 + $0x80] sm:$0xf]  ;;  %v7719_v10 = vor.u32 %v9548_v3, %v7718_v2  ;;  %3240 = vmatpush.bf16.msra.mxu2 %v7207_v6  ;;  %v95_v2 = vld [vmem:[#allocation2 + $0x10] sm:$0xff]  ;;  %v96_v3 = vld [vmem:[#allocation2 + $0x18] sm:$0xff] }
  0x48   :  { %v9148_v8 = vld [vmem:[#allocation5 + $0xbc] sm:$0xf0]  ;;  %v6312_v6 = vld [vmem:[#allocation5 + $0x240] sm:$0xf0] }
  0x49   :  { %v6630_v9 = vld [vmem:[#allocation5 + $0x480] sm:$0xf]  ;;  %v6119_v16 = vor.u32 %v9148_v8, %v6118_v7  ;;  %3253 = vmatpush.bf16.msra.mxu3 %v7719_v10  ;;  %v9316_v7 = vld [vmem:[#allocation5 + $0x604] sm:$0xf]  ;;  %v10111_v8 = vpack.c.bf16 %v95_v2, %v95_v2  ;;  %v7915_v10 = vor.u32 %v9588_v62, %v7912_v63 }
  0x4a   :  { %v9276_v11 = vld [vmem:[#allocation5 + $0x4bc] sm:$0xf0]  ;;  %v9556_v30 = vld [vmem:[#allocation5 + $0xd84] sm:$0xf] }
  0x4b   :  { %v7142_v12 = vld [vmem:[#allocation5 + $0x880] sm:$0xf]  ;;  %v6631_v19 = vor.u32 %v9276_v11, %v6630_v9  ;;  %3215 = vmatpush.bf16.msra.mxu0 %v6119_v16  ;;  %v10113_v9 = vpack.c.bf16 %v96_v3, %v96_v3  ;;  %v6824_v11 = vld [vmem:[#allocation5 + $0x640] sm:$0xf0] }
  0x4c   :  { %v9404_v13 = vld [vmem:[#allocation5 + $0x8bc] sm:$0xf0]  ;;  %v9284_v37 = vld [vmem:[#allocation5 + $0x504] sm:$0xf] }
  0x4d   :  { %v7654_v14 = vld [vmem:[#allocation5 + $0xc80] sm:$0xf]  ;;  %v7143_v20 = vor.u32 %v9404_v13, %v7142_v12  ;;  %3228 = vmatpush.bf16.msra.mxu1 %v6631_v19  ;;  %v9444_v12 = vld [vmem:[#allocation5 + $0xa04] sm:$0xf]  ;;  %v94_v19 = vld [vmem:[#allocation2 + $0x8] sm:$0xff] }
  0x4e   :  { %v9532_v15 = vld [vmem:[#allocation5 + $0xcbc] sm:$0xf0]  ;;  %v7336_v13 = vld [vmem:[#allocation5 + $0xa40] sm:$0xf0] }
  0x4f   :  { %v6054_v17 = vld [vmem:[#allocation5] sm:$0xf]  ;;  %v7655_v24 = vor.u32 %v9532_v15, %v7654_v14  ;;  %3241 = vmatpush.bf16.msra.mxu2 %v7143_v20  ;;  %v9572_v14 = vld [vmem:[#allocation5 + $0xe04] sm:$0xf]  ;;  %v6827_v20 = vor.u32 %v9316_v7, %v6824_v11  ;;  %v7534_v11 = vld [vmem:[#allocation5 + $0xb88] sm:$0xf] }
  0x50   :  { %v9132_v18 = vld [vmem:[#allocation5 + $0x3c] sm:$0xf0]  ;;  %v7848_v15 = vld [vmem:[#allocation5 + $0xe40] sm:$0xf0] }
  0x51   :  { %v6566_v21 = vld [vmem:[#allocation5 + $0x400] sm:$0xf]  ;;  %v6055_v31 = vor.u32 %v9132_v18, %v6054_v17  ;;  %3254 = vmatpush.bf16.msra.mxu3 %v7655_v24  ;;  %v6315_v17 = vor.u32 %v9188_v5, %v6312_v6  ;;  %v9300_v24 = vld [vmem:[#allocation5 + $0x584] sm:$0xf]  ;;  %v9245_v5 = vld [vmem:[#allocation5 + $0x3c4] sm:$0xf0] }
  0x52   :  { %v9260_v22 = vld [vmem:[#allocation5 + $0x43c] sm:$0xf0]  ;;  %v7720_v43 = vld [vmem:[#allocation5 + $0xd40] sm:$0xf0]  ;;  %v7022_v6 = vld [vmem:[#allocation5 + $0x788] sm:$0xf] }
  0x53   :  { %v7078_v23 = vld [vmem:[#allocation5 + $0x800] sm:$0xf]  ;;  %v6567_v35 = vor.u32 %v9260_v22, %v6566_v21  ;;  %3216 = vmatpush.bf16.msra.mxu0 %v6055_v31  ;;  %v7339_v21 = vor.u32 %v9444_v12, %v7336_v13  ;;  %v9172_v22 = vld [vmem:[#allocation5 + $0x184] sm:$0xf]  ;;  %v9501_v12 = vld [vmem:[#allocation5 + $0xbc4] sm:$0xf0] }
  0x54   :  { %v9388_v25 = vld [vmem:[#allocation5 + $0x83c] sm:$0xf0]  ;;  %v7784_v31 = vld [vmem:[#allocation5 + $0xdc0] sm:$0xf0] }
  0x55   :  { %v7590_v26 = vld [vmem:[#allocation5 + $0xc00] sm:$0xf]  ;;  %v7079_v36 = vor.u32 %v9388_v25, %v7078_v23  ;;  %3229 = vmatpush.bf16.msra.mxu1 %v6567_v35  ;;  %v6248_v23 = vld [vmem:[#allocation5 + $0x1c0] sm:$0xf0]  ;;  %v10119_v25 = vpack.c.bf16 %v94_v19, %v94_v19  ;;  %v7787_v38 = vor.u32 %v9556_v30, %v7784_v31  ;;  %v7982_v30 = vld [vmem:[#allocation5 + $0xf08] sm:$0xf] }
  0x56   :  { %v9516_v27 = vld [vmem:[#allocation5 + $0xc3c] sm:$0xf0]  ;;  %v6251_v32 = vor.u32 %v9172_v22, %v6248_v23  ;;  %v9156_v35 = vld [vmem:[#allocation5 + $0x104] sm:$0xf]  ;;  %v6446_v22 = vld [vmem:[#allocation5 + $0x308] sm:$0xf] }
  0x57   :  { %v7591_v39 = vor.u32 %v9516_v27, %v7590_v26  ;;  %3242 = vmatpush.bf16.msra.mxu2 %v7079_v36  ;;  %3261 = vmatpush.bf16.msrb.mxu0 %v6507_v40  ;;  %v93_v16 = vld [vmem:[#allocation2] sm:$0xff]  ;;  %v7851_v26 = vor.u32 %v9572_v14, %v7848_v15  ;;  %v8046_v15 = vld [vmem:[#allocation5 + $0xf88] sm:$0xf] }
  0x58   :  { %v10117_v18 = vpack.c.bf16 %v93_v16, %v93_v16  ;;  %v6760_v27 = vld [vmem:[#allocation5 + $0x5c0] sm:$0xf0]  ;;  %3230 = vmatmul.bf16.vlgmr.msra.gmra.mxu1 %v10119_v25  ;;  %v9629_v16 = vld [vmem:[#allocation5 + $0xfc4] sm:$0xf0] }
  0x59   :  { %3255 = vmatpush.bf16.msra.mxu3 %v7591_v39  ;;  %3274 = vmatpush.bf16.msrb.mxu1 %v7019_v41  ;;  %v6763_v33 = vor.u32 %v9300_v24, %v6760_v27  ;;  %v6184_v36 = vld [vmem:[#allocation5 + $0x140] sm:$0xf0]  ;;  %v9229_v23 = vld [vmem:[#allocation5 + $0x344] sm:$0xf0] }
  0x5a   :  { %3243 = vmatmul.bf16.vlgmr.msra.gmra.mxu2 %v10111_v8  ;;  %3217 = vmatmul.bf16.vlgmr.msra.gmra.mxu0 %v10117_v18  ;;  %v6696_v39 = vld [vmem:[#allocation5 + $0x540] sm:$0xf0]  ;;  %v6187_v44 = vor.u32 %v9156_v35, %v6184_v36  ;;  %v6958_v24 = vld [vmem:[#allocation5 + $0x708] sm:$0xf] }
  0x5b   :  { %3287 = vmatpush.bf16.msrb.mxu2 %v7531_v42  ;;  %3262 = vmatpush.bf16.msrb.mxu0 %v6443_v52  ;;  %v9412_v40 = vld [vmem:[#allocation5 + $0x904] sm:$0xf]  ;;  %v6699_v45 = vor.u32 %v9284_v37, %v6696_v39  ;;  %v9357_v27 = vld [vmem:[#allocation5 + $0x744] sm:$0xf0] }
  0x5c   :  { %3256 = vmatmul.bf16.vlgmr.msra.gmra.mxu3 %v10113_v9  ;;  %v7208_v41 = vld [vmem:[#allocation5 + $0x940] sm:$0xf0]  ;;  %v9613_v31 = vld [vmem:[#allocation5 + $0xf44] sm:$0xf0] }
  0x5d   :  { %3300 = vmatpush.bf16.msrb.mxu3 %v8043_v46  ;;  %3275 = vmatpush.bf16.msrb.mxu1 %v6955_v54  ;;  %v9540_v42 = vld [vmem:[#allocation5 + $0xd04] sm:$0xf]  ;;  %v7211_v46 = vor.u32 %v9412_v40, %v7208_v41  ;;  %v6382_v35 = vld [vmem:[#allocation5 + $0x288] sm:$0xf] }
  0x5e   :  { %v9140_v47 = vld [vmem:[#allocation5 + $0x84] sm:$0xf]  ;;  %v7723_v50 = vor.u32 %v9540_v42, %v7720_v43  ;;  %v9213_v36 = vld [vmem:[#allocation5 + $0x2c4] sm:$0xf0] }
  0x5f   :  { %3288 = vmatpush.bf16.msrb.mxu2 %v7467_v55  ;;  %3263 = vmatpush.bf16.msrb.mxu0 %v6379_v0  ;;  %v6120_v48 = vld [vmem:[#allocation5 + $0xc0] sm:$0xf0]  ;;  %v6894_v37 = vld [vmem:[#allocation5 + $0x688] sm:$0xf] }
  0x60   :  { %v9268_v49 = vld [vmem:[#allocation5 + $0x484] sm:$0xf]  ;;  %v6123_v56 = vor.u32 %v9140_v47, %v6120_v48  ;;  %v9341_v39 = vld [vmem:[#allocation5 + $0x6c4] sm:$0xf0] }
  0x61   :  { %3301 = vmatpush.bf16.msrb.mxu3 %v7979_v59  ;;  %3276 = vmatpush.bf16.msrb.mxu1 %v6891_v1  ;;  %v6632_v51 = vld [vmem:[#allocation5 + $0x4c0] sm:$0xf0]  ;;  %v7406_v40 = vld [vmem:[#allocation5 + $0xa88] sm:$0xf] }
  0x62   :  { %v9396_v52 = vld [vmem:[#allocation5 + $0x884] sm:$0xf]  ;;  %v6635_v59 = vor.u32 %v9268_v49, %v6632_v51  ;;  %v9469_v41 = vld [vmem:[#allocation5 + $0xac4] sm:$0xf0] }
  0x63   :  { %3289 = vmatpush.bf16.msrb.mxu2 %v7403_v4  ;;  %3264 = vmatpush.bf16.msrb.mxu0 %v6315_v17  ;;  %v7144_v53 = vld [vmem:[#allocation5 + $0x8c0] sm:$0xf0]  ;;  %v6510_v4 = vld [vmem:[#allocation5 + $0x388] sm:$0xf] }
  0x64   :  { %v9524_v54 = vld [vmem:[#allocation5 + $0xc84] sm:$0xf]  ;;  %v7147_v60 = vor.u32 %v9396_v52, %v7144_v53  ;;  %v6511_v19 = vor.u32 %v9245_v5, %v6510_v4  ;;  %v7918_v42 = vld [vmem:[#allocation5 + $0xe88] sm:$0xf] }
  0x65   :  { %3302 = vmatpush.bf16.msrb.mxu3 %v7915_v10  ;;  %3277 = vmatpush.bf16.msrb.mxu1 %v6827_v20  ;;  %v7656_v55 = vld [vmem:[#allocation5 + $0xcc0] sm:$0xf0]  ;;  %v9373_v10 = vld [vmem:[#allocation5 + $0x7c4] sm:$0xf0] }
  0x66   :  { %v9124_v57 = vld [vmem:[#allocation5 + $0x4] sm:$0xf]  ;;  %v7659_v0 = vor.u32 %v9524_v54, %v7656_v55  ;;  %v7023_v20 = vor.u32 %v9373_v10, %v7022_v6  ;;  %v9597_v43 = vld [vmem:[#allocation5 + $0xec4] sm:$0xf0] }
  0x67   :  { %3290 = vmatpush.bf16.msrb.mxu2 %v7339_v21  ;;  %3265 = vmatpush.bf16.msrb.mxu0 %v6251_v32  ;;  %v6056_v58 = vld [vmem:[#allocation5 + $0x40] sm:$0xf0]  ;;  %v7535_v21 = vor.u32 %v9501_v12, %v7534_v11  ;;  %v6447_v32 = vor.u32 %v9229_v23, %v6446_v22  ;;  %v6318_v47 = vld [vmem:[#allocation5 + $0x208] sm:$0xf] }
  0x68   :  { %v9252_v61 = vld [vmem:[#allocation5 + $0x404] sm:$0xf]  ;;  %v6059_v7 = vor.u32 %v9124_v57, %v6056_v58  ;;  %v9197_v48 = vld [vmem:[#allocation5 + $0x244] sm:$0xf0] }
  0x69   :  { %3303 = vmatpush.bf16.msrb.mxu3 %v7851_v26  ;;  %3278 = vmatpush.bf16.msrb.mxu1 %v6763_v33  ;;  %v6568_v62 = vld [vmem:[#allocation5 + $0x440] sm:$0xf0]  ;;  %v8047_v26 = vor.u32 %v9629_v16, %v8046_v15  ;;  %v6959_v33 = vor.u32 %v9357_v27, %v6958_v24  ;;  %v6830_v49 = vld [vmem:[#allocation5 + $0x608] sm:$0xf] }
  0x6a   :  { %v9380_v63 = vld [vmem:[#allocation5 + $0x804] sm:$0xf]  ;;  %v6571_v13 = vor.u32 %v9252_v61, %v6568_v62  ;;  %v9325_v51 = vld [vmem:[#allocation5 + $0x644] sm:$0xf0] }
  0x6b   :  { %3291 = vmatpush.bf16.msrb.mxu2 %v7275_v34  ;;  %3266 = vmatpush.bf16.msrb.mxu0 %v6187_v44  ;;  %v7080_v1 = vld [vmem:[#allocation5 + $0x840] sm:$0xf0]  ;;  %v7471_v34 = vor.u32 %v9485_v29, %v7470_v28  ;;  %v6383_v44 = vor.u32 %v9213_v36, %v6382_v35  ;;  %v7342_v52 = vld [vmem:[#allocation5 + $0xa08] sm:$0xf]  ;;  %v6831_v57 = vor.u32 %v9325_v51, %v6830_v49  ;;  %v9493_v49 = vld [vmem:[#allocation5 + $0xb8c] sm:$0xf] }
  0x6c   :  { %v9508_v2 = vld [vmem:[#allocation5 + $0xc04] sm:$0xf]  ;;  %v7083_v14 = vor.u32 %v9380_v63, %v7080_v1  ;;  %v9453_v53 = vld [vmem:[#allocation5 + $0xa44] sm:$0xf0] }
  0x6d   :  { %3304 = vmatpush.bf16.msrb.mxu3 %v7787_v38  ;;  %3279 = vmatpush.bf16.msrb.mxu1 %v6699_v45  ;;  %v7592_v3 = vld [vmem:[#allocation5 + $0xc40] sm:$0xf0]  ;;  %v7983_v38 = vor.u32 %v9613_v31, %v7982_v30  ;;  %v6895_v45 = vor.u32 %v9341_v39, %v6894_v37  ;;  %v7854_v54 = vld [vmem:[#allocation5 + $0xe08] sm:$0xf]  ;;  %v7343_v58 = vor.u32 %v9453_v53, %v7342_v52  ;;  %v9621_v53 = vld [vmem:[#allocation5 + $0xf8c] sm:$0xf] }
  0x6e   :  { %v7595_v17 = vor.u32 %v9508_v2, %v7592_v3  ;;  %v9581_v55 = vld [vmem:[#allocation5 + $0xe44] sm:$0xf0] }
  0x6f   :  { %3292 = vmatpush.bf16.msrb.mxu2 %v7211_v46  ;;  %3267 = vmatpush.bf16.msrb.mxu0 %v6123_v56  ;;  %v7407_v46 = vor.u32 %v9469_v41, %v7406_v40  ;;  %v6319_v56 = vor.u32 %v9197_v48, %v6318_v47  ;;  %v6766_v61 = vld [vmem:[#allocation5 + $0x588] sm:$0xf]  ;;  %v7855_v62 = vor.u32 %v9581_v55, %v7854_v54  ;;  %v7024_v48 = vld [vmem:[#allocation5 + $0x7c8] sm:$0xf0] }
  0x70   :  { %v9309_v63 = vld [vmem:[#allocation5 + $0x5c4] sm:$0xf0]  ;;  %v8048_v54 = vld [vmem:[#allocation5 + $0xfc8] sm:$0xf0] }
  0x71   :  { %3305 = vmatpush.bf16.msrb.mxu3 %v7723_v50  ;;  %3280 = vmatpush.bf16.msrb.mxu1 %v6635_v59  ;;  %v7919_v50 = vor.u32 %v9597_v43, %v7918_v42  ;;  %v6254_v59 = vld [vmem:[#allocation5 + $0x188] sm:$0xf]  ;;  %v6767_v5 = vor.u32 %v9309_v63, %v6766_v61  ;;  %v9349_v61 = vld [vmem:[#allocation5 + $0x70c] sm:$0xf] }
  0x72   :  { %v9437_v1 = vld [vmem:[#allocation5 + $0x9c4] sm:$0xf0]  ;;  %v6960_v63 = vld [vmem:[#allocation5 + $0x748] sm:$0xf0] }
  0x73   :  { %3293 = vmatpush.bf16.msrb.mxu2 %v7147_v60  ;;  %3268 = vmatpush.bf16.msrb.mxu0 %v6059_v7  ;;  %v9181_v60 = vld [vmem:[#allocation5 + $0x1c4] sm:$0xf0] }
  0x74   :  { %v7790_v2 = vld [vmem:[#allocation5 + $0xd88] sm:$0xf]  ;;  %v6255_v4 = vor.u32 %v9181_v60, %v6254_v59  ;;  %v9221_v59 = vld [vmem:[#allocation5 + $0x30c] sm:$0xf] }
  0x75   :  { %3306 = vmatpush.bf16.msrb.mxu3 %v7659_v0  ;;  %3281 = vmatpush.bf16.msrb.mxu1 %v6571_v13  ;;  %v7278_v0 = vld [vmem:[#allocation5 + $0x988] sm:$0xf]  ;;  %v6448_v60 = vld [vmem:[#allocation5 + $0x348] sm:$0xf0] }
  0x76   :  { %3269 = vmatmul.bf16.vlgmr.msrb.gmra.mxu0 %v10117_v18  ;;  %v9565_v3 = vld [vmem:[#allocation5 + $0xdc4] sm:$0xf0]  ;;  %v7279_v6 = vor.u32 %v9437_v1, %v7278_v0  ;;  %v9477_v0 = vld [vmem:[#allocation5 + $0xb0c] sm:$0xf] }
  0x77   :  { %3294 = vmatpush.bf16.msrb.mxu2 %v7083_v14  ;;  %3313 = vmatpush.bf16.msra.mxu0 %v6511_v19  ;;  %v6190_v7 = vld [vmem:[#allocation5 + $0x108] sm:$0xf]  ;;  %v7791_v12 = vor.u32 %v9565_v3, %v7790_v2  ;;  %v7472_v1 = vld [vmem:[#allocation5 + $0xb48] sm:$0xf0] }
  0x78   :  { %3282 = vmatmul.bf16.vlgmr.msrb.gmra.mxu1 %v10119_v25  ;;  %v9165_v10 = vld [vmem:[#allocation5 + $0x144] sm:$0xf0]  ;;  %v9605_v2 = vld [vmem:[#allocation5 + $0xf0c] sm:$0xf] }
  0x79   :  { %3307 = vmatpush.bf16.msrb.mxu3 %v7595_v17  ;;  %3326 = vmatpush.bf16.msra.mxu1 %v7023_v20  ;;  %v6702_v11 = vld [vmem:[#allocation5 + $0x508] sm:$0xf]  ;;  %v6191_v19 = vor.u32 %v9165_v10, %v6190_v7  ;;  %v7984_v3 = vld [vmem:[#allocation5 + $0xf48] sm:$0xf0] }
  0x7a   :  { %3295 = vmatmul.bf16.vlgmr.msrb.gmra.mxu2 %v10111_v8  ;;  %v9293_v13 = vld [vmem:[#allocation5 + $0x544] sm:$0xf0]  ;;  %v9205_v7 = vld [vmem:[#allocation5 + $0x28c] sm:$0xf] }
  0x7b   :  { %3339 = vmatpush.bf16.msra.mxu2 %v7535_v21  ;;  %3314 = vmatpush.bf16.msra.mxu0 %v6447_v32  ;;  %v7214_v14 = vld [vmem:[#allocation5 + $0x908] sm:$0xf]  ;;  %v6703_v20 = vor.u32 %v9293_v13, %v6702_v11  ;;  %v6384_v10 = vld [vmem:[#allocation5 + $0x2c8] sm:$0xf0] }
  0x7c   :  { %3308 = vmatmul.bf16.vlgmr.msrb.gmra.mxu3 %v10113_v9  ;;  %v9421_v15 = vld [vmem:[#allocation5 + $0x944] sm:$0xf0]  ;;  %v9333_v11 = vld [vmem:[#allocation5 + $0x68c] sm:$0xf] }
  0x7d   :  { %3352 = vmatpush.bf16.msra.mxu3 %v8047_v26  ;;  %3327 = vmatpush.bf16.msra.mxu1 %v6959_v33  ;;  %v7726_v16 = vld [vmem:[#allocation5 + $0xd08] sm:$0xf]  ;;  %v7215_v21 = vor.u32 %v9421_v15, %v7214_v14  ;;  %v6896_v13 = vld [vmem:[#allocation5 + $0x6c8] sm:$0xf0] }
  0x7e   :  { %v9549_v17 = vld [vmem:[#allocation5 + $0xd44] sm:$0xf0]  ;;  %v9461_v14 = vld [vmem:[#allocation5 + $0xa8c] sm:$0xf] }
  0x7f   :  { %3340 = vmatpush.bf16.msra.mxu2 %v7471_v34  ;;  %3315 = vmatpush.bf16.msra.mxu0 %v6383_v44  ;;  %v6126_v22 = vld [vmem:[#allocation5 + $0x88] sm:$0xf]  ;;  %v7727_v26 = vor.u32 %v9549_v17, %v7726_v16  ;;  %v9237_v44 = vld [vmem:[#allocation5 + $0x38c] sm:$0xf] }
  0x80   :  { %v9149_v23 = vld [vmem:[#allocation5 + $0xc4] sm:$0xf0]  ;;  %v7408_v15 = vld [vmem:[#allocation5 + $0xac8] sm:$0xf0] }
  0x81   :  { %3353 = vmatpush.bf16.msra.mxu3 %v7983_v38  ;;  %3328 = vmatpush.bf16.msra.mxu1 %v6895_v45  ;;  %v6638_v24 = vld [vmem:[#allocation5 + $0x488] sm:$0xf]  ;;  %v6127_v32 = vor.u32 %v9149_v23, %v6126_v22  ;;  %v6512_v45 = vld [vmem:[#allocation5 + $0x3c8] sm:$0xf0] }
  0x82   :  { %v9277_v27 = vld [vmem:[#allocation5 + $0x4c4] sm:$0xf0]  ;;  %v9589_v16 = vld [vmem:[#allocation5 + $0xe8c] sm:$0xf] }
  0x83   :  { %3341 = vmatpush.bf16.msra.mxu2 %v7407_v46  ;;  %3316 = vmatpush.bf16.msra.mxu0 %v6319_v56  ;;  %v7150_v28 = vld [vmem:[#allocation5 + $0x888] sm:$0xf]  ;;  %v6639_v35 = vor.u32 %v9277_v27, %v6638_v24  ;;  %v9365_v46 = vld [vmem:[#allocation5 + $0x78c] sm:$0xf]  ;;  %v6515_v56 = vor.u32 %v9237_v44, %v6512_v45 }
  0x84   :  { %v9405_v29 = vld [vmem:[#allocation5 + $0x8c4] sm:$0xf0]  ;;  %v7920_v17 = vld [vmem:[#allocation5 + $0xec8] sm:$0xf0] }
  0x85   :  { %3354 = vmatpush.bf16.msra.mxu3 %v7919_v50  ;;  %3329 = vmatpush.bf16.msra.mxu1 %v6831_v57  ;;  %v7662_v30 = vld [vmem:[#allocation5 + $0xc88] sm:$0xf]  ;;  %v7151_v36 = vor.u32 %v9405_v29, %v7150_v28  ;;  %v7536_v50 = vld [vmem:[#allocation5 + $0xbc8] sm:$0xf0]  ;;  %v7027_v57 = vor.u32 %v9365_v46, %v7024_v48 }
  0x86   :  { %v9533_v31 = vld [vmem:[#allocation5 + $0xcc4] sm:$0xf0]  ;;  %v9189_v22 = vld [vmem:[#allocation5 + $0x20c] sm:$0xf] }
  0x87   :  { %3342 = vmatpush.bf16.msra.mxu2 %v7343_v58  ;;  %3317 = vmatpush.bf16.msra.mxu0 %v6255_v4  ;;  %v6062_v33 = vld [vmem:[#allocation5 + $0x8] sm:$0xf]  ;;  %v7663_v40 = vor.u32 %v9533_v31, %v7662_v30  ;;  %v7539_v58 = vor.u32 %v9493_v49, %v7536_v50  ;;  %v6451_v4 = vor.u32 %v9221_v59, %v6448_v60  ;;  %v6320_v23 = vld [vmem:[#allocation5 + $0x248] sm:$0xf0] }
  0x88   :  { %v9133_v34 = vld [vmem:[#allocation5 + $0x44] sm:$0xf0]  ;;  %v9317_v24 = vld [vmem:[#allocation5 + $0x60c] sm:$0xf] }
  0x89   :  { %3355 = vmatpush.bf16.msra.mxu3 %v7855_v62  ;;  %3330 = vmatpush.bf16.msra.mxu1 %v6767_v5  ;;  %v6574_v37 = vld [vmem:[#allocation5 + $0x408] sm:$0xf]  ;;  %v6063_v47 = vor.u32 %v9133_v34, %v6062_v33  ;;  %v8051_v62 = vor.u32 %v9621_v53, %v8048_v54  ;;  %v6963_v5 = vor.u32 %v9349_v61, %v6960_v63  ;;  %v6832_v27 = vld [vmem:[#allocation5 + $0x648] sm:$0xf0] }
  0x8a   :  { %v9261_v38 = vld [vmem:[#allocation5 + $0x444] sm:$0xf0]  ;;  %v9445_v28 = vld [vmem:[#allocation5 + $0xa0c] sm:$0xf]  ;;  %v6835_v33 = vor.u32 %v9317_v24, %v6832_v27  ;;  %v7542_v24 = vld [vmem:[#allocation5 + $0xb90] sm:$0xf] }
  0x8b   :  { %3343 = vmatpush.bf16.msra.mxu2 %v7279_v6  ;;  %3318 = vmatpush.bf16.msra.mxu0 %v6191_v19  ;;  %v7086_v39 = vld [vmem:[#allocation5 + $0x808] sm:$0xf]  ;;  %v6575_v51 = vor.u32 %v9261_v38, %v6574_v37  ;;  %v7475_v6 = vor.u32 %v9477_v0, %v7472_v1  ;;  %v6387_v19 = vor.u32 %v9205_v7, %v6384_v10  ;;  %v7344_v29 = vld [vmem:[#allocation5 + $0xa48] sm:$0xf0] }
  0x8c   :  { %v9389_v41 = vld [vmem:[#allocation5 + $0x844] sm:$0xf0]  ;;  %v9573_v30 = vld [vmem:[#allocation5 + $0xe0c] sm:$0xf]  ;;  %v7347_v34 = vor.u32 %v9445_v28, %v7344_v29  ;;  %v8054_v29 = vld [vmem:[#allocation5 + $0xf90] sm:$0xf] }
  0x8d   :  { %3356 = vmatpush.bf16.msra.mxu3 %v7791_v12  ;;  %3331 = vmatpush.bf16.msra.mxu1 %v6703_v20  ;;  %v7598_v42 = vld [vmem:[#allocation5 + $0xc08] sm:$0xf]  ;;  %v7087_v52 = vor.u32 %v9389_v41, %v7086_v39  ;;  %v7987_v12 = vor.u32 %v9605_v2, %v7984_v3  ;;  %v6899_v20 = vor.u32 %v9333_v11, %v6896_v13  ;;  %v7856_v31 = vld [vmem:[#allocation5 + $0xe48] sm:$0xf0] }
  0x8e   :  { %v9517_v43 = vld [vmem:[#allocation5 + $0xc44] sm:$0xf0]  ;;  %v9301_v37 = vld [vmem:[#allocation5 + $0x58c] sm:$0xf]  ;;  %v7859_v38 = vor.u32 %v9573_v30, %v7856_v31  ;;  %v9630_v30 = vld [vmem:[#allocation5 + $0xfcc] sm:$0xf0] }
  0x8f   :  { %3344 = vmatpush.bf16.msra.mxu2 %v7215_v21  ;;  %3319 = vmatpush.bf16.msra.mxu0 %v6127_v32  ;;  %v7599_v55 = vor.u32 %v9517_v43, %v7598_v42  ;;  %v7411_v21 = vor.u32 %v9461_v14, %v7408_v15  ;;  %v6323_v32 = vor.u32 %v9189_v22, %v6320_v23  ;;  %v6768_v39 = vld [vmem:[#allocation5 + $0x5c8] sm:$0xf0]  ;;  %v9374_v23 = vld [vmem:[#allocation5 + $0x7cc] sm:$0xf0] }
  0x90   :  { %v7280_v41 = vld [vmem:[#allocation5 + $0x9c8] sm:$0xf0]  ;;  %v6771_v45 = vor.u32 %v9301_v37, %v6768_v39  ;;  %v6966_v37 = vld [vmem:[#allocation5 + $0x710] sm:$0xf] }
  0x91   :  { %3357 = vmatpush.bf16.msra.mxu3 %v7727_v26  ;;  %3332 = vmatpush.bf16.msra.mxu1 %v6639_v35  ;;  %v7923_v26 = vor.u32 %v9589_v16, %v7920_v17  ;;  %v9173_v35 = vld [vmem:[#allocation5 + $0x18c] sm:$0xf]  ;;  %v9358_v39 = vld [vmem:[#allocation5 + $0x74c] sm:$0xf0] }
  0x92   :  { %v9557_v42 = vld [vmem:[#allocation5 + $0xd8c] sm:$0xf] }
  0x93   :  { %3345 = vmatpush.bf16.msra.mxu2 %v7151_v36  ;;  %3320 = vmatpush.bf16.msra.mxu0 %v6063_v47  ;;  %v6256_v36 = vld [vmem:[#allocation5 + $0x1c8] sm:$0xf0] }
  0x94   :  { %v7792_v43 = vld [vmem:[#allocation5 + $0xdc8] sm:$0xf0]  ;;  %v6259_v44 = vor.u32 %v9173_v35, %v6256_v36  ;;  %v6454_v35 = vld [vmem:[#allocation5 + $0x310] sm:$0xf] }
  0x95   :  { %3358 = vmatpush.bf16.msra.mxu3 %v7663_v40  ;;  %3333 = vmatpush.bf16.msra.mxu1 %v6575_v51  ;;  %v9429_v40 = vld [vmem:[#allocation5 + $0x98c] sm:$0xf]  ;;  %v7795_v50 = vor.u32 %v9557_v42, %v7792_v43  ;;  %v9230_v36 = vld [vmem:[#allocation5 + $0x34c] sm:$0xf0] }
  0x96   :  { %3321 = vmatmul.bf16.vlgmr.msra.gmra.mxu0 %v10117_v18  ;;  %v7283_v46 = vor.u32 %v9429_v40, %v7280_v41  ;;  %v9157_v47 = vld [vmem:[#allocation5 + $0x10c] sm:$0xf]  ;;  %v7478_v40 = vld [vmem:[#allocation5 + $0xb10] sm:$0xf] }
  0x97   :  { %3346 = vmatpush.bf16.msra.mxu2 %v7087_v52  ;;  %3365 = vmatpush.bf16.msrb.mxu0 %v6515_v56  ;;  %v6192_v48 = vld [vmem:[#allocation5 + $0x148] sm:$0xf0]  ;;  %v9486_v41 = vld [vmem:[#allocation5 + $0xb4c] sm:$0xf0] }
  0x98   :  { %3334 = vmatmul.bf16.vlgmr.msra.gmra.mxu1 %v10119_v25  ;;  %v9285_v49 = vld [vmem:[#allocation5 + $0x50c] sm:$0xf]  ;;  %v6195_v56 = vor.u32 %v9157_v47, %v6192_v48  ;;  %v7990_v42 = vld [vmem:[#allocation5 + $0xf10] sm:$0xf] }
  0x99   :  { %3359 = vmatpush.bf16.msra.mxu3 %v7599_v55  ;;  %3378 = vmatpush.bf16.msrb.mxu1 %v7027_v57  ;;  %v6704_v51 = vld [vmem:[#allocation5 + $0x548] sm:$0xf0]  ;;  %v9614_v43 = vld [vmem:[#allocation5 + $0xf4c] sm:$0xf0] }
  0x9a   :  { %3347 = vmatmul.bf16.vlgmr.msra.gmra.mxu2 %v10111_v8  ;;  %v9413_v52 = vld [vmem:[#allocation5 + $0x90c] sm:$0xf]  ;;  %v6707_v57 = vor.u32 %v9285_v49, %v6704_v51  ;;  %v6390_v47 = vld [vmem:[#allocation5 + $0x290] sm:$0xf] }
  0x9b   :  { %3391 = vmatpush.bf16.msrb.mxu2 %v7539_v58  ;;  %3366 = vmatpush.bf16.msrb.mxu0 %v6451_v4  ;;  %v7216_v53 = vld [vmem:[#allocation5 + $0x948] sm:$0xf0]  ;;  %v9214_v48 = vld [vmem:[#allocation5 + $0x2cc] sm:$0xf0] }
  0x9c   :  { %3360 = vmatmul.bf16.vlgmr.msra.gmra.mxu3 %v10113_v9  ;;  %v9541_v54 = vld [vmem:[#allocation5 + $0xd0c] sm:$0xf]  ;;  %v7219_v58 = vor.u32 %v9413_v52, %v7216_v53  ;;  %v6902_v49 = vld [vmem:[#allocation5 + $0x690] sm:$0xf] }
  0x9d   :  { %3404 = vmatpush.bf16.msrb.mxu3 %v8051_v62  ;;  %3379 = vmatpush.bf16.msrb.mxu1 %v6963_v5  ;;  %v7728_v55 = vld [vmem:[#allocation5 + $0xd48] sm:$0xf0]  ;;  %v9342_v51 = vld [vmem:[#allocation5 + $0x6cc] sm:$0xf0] }
  0x9e   :  { %v9141_v59 = vld [vmem:[#allocation5 + $0x8c] sm:$0xf]  ;;  %v7731_v62 = vor.u32 %v9541_v54, %v7728_v55  ;;  %v7414_v52 = vld [vmem:[#allocation5 + $0xa90] sm:$0xf] }
  0x9f   :  { %3392 = vmatpush.bf16.msrb.mxu2 %v7475_v6  ;;  %3367 = vmatpush.bf16.msrb.mxu0 %v6387_v19  ;;  %v6128_v60 = vld [vmem:[#allocation5 + $0xc8] sm:$0xf0]  ;;  %v6518_v19 = vld [vmem:[#allocation5 + $0x390] sm:$0xf] }
  0xa0   :  { %v9269_v61 = vld [vmem:[#allocation5 + $0x48c] sm:$0xf]  ;;  %v6131_v4 = vor.u32 %v9141_v59, %v6128_v60  ;;  %v9470_v53 = vld [vmem:[#allocation5 + $0xacc] sm:$0xf0] }
  0xa1   :  { %3405 = vmatpush.bf16.msrb.mxu3 %v7987_v12  ;;  %3380 = vmatpush.bf16.msrb.mxu1 %v6899_v20  ;;  %v6640_v63 = vld [vmem:[#allocation5 + $0x4c8] sm:$0xf0]  ;;  %v9246_v20 = vld [vmem:[#allocation5 + $0x3cc] sm:$0xf0] }
  0xa2   :  { %v9397_v0 = vld [vmem:[#allocation5 + $0x88c] sm:$0xf]  ;;  %v6643_v7 = vor.u32 %v9269_v61, %v6640_v63  ;;  %v7926_v54 = vld [vmem:[#allocation5 + $0xe90] sm:$0xf] }
  0xa3   :  { %3393 = vmatpush.bf16.msrb.mxu2 %v7411_v21  ;;  %3368 = vmatpush.bf16.msrb.mxu0 %v6323_v32  ;;  %v7152_v1 = vld [vmem:[#allocation5 + $0x8c8] sm:$0xf0]  ;;  %v7030_v21 = vld [vmem:[#allocation5 + $0x790] sm:$0xf]  ;;  %v6519_v32 = vor.u32 %v9246_v20, %v6518_v19 }
  0xa4   :  { %v9525_v2 = vld [vmem:[#allocation5 + $0xc8c] sm:$0xf]  ;;  %v7155_v10 = vor.u32 %v9397_v0, %v7152_v1  ;;  %v9598_v55 = vld [vmem:[#allocation5 + $0xecc] sm:$0xf0] }
  0xa5   :  { %3406 = vmatpush.bf16.msrb.mxu3 %v7923_v26  ;;  %3381 = vmatpush.bf16.msrb.mxu1 %v6835_v33  ;;  %v7664_v3 = vld [vmem:[#allocation5 + $0xcc8] sm:$0xf0]  ;;  %v9502_v26 = vld [vmem:[#allocation5 + $0xbcc] sm:$0xf0]  ;;  %v7031_v33 = vor.u32 %v9374_v23, %v7030_v21 }
  0xa6   :  { %v9125_v5 = vld [vmem:[#allocation5 + $0xc] sm:$0xf]  ;;  %v7667_v14 = vor.u32 %v9525_v2, %v7664_v3  ;;  %v6326_v59 = vld [vmem:[#allocation5 + $0x210] sm:$0xf] }
  0xa7   :  { %3394 = vmatpush.bf16.msrb.mxu2 %v7347_v34  ;;  %3369 = vmatpush.bf16.msrb.mxu0 %v6259_v44  ;;  %v6064_v6 = vld [vmem:[#allocation5 + $0x48] sm:$0xf0]  ;;  %v7543_v34 = vor.u32 %v9502_v26, %v7542_v24  ;;  %v6455_v44 = vor.u32 %v9230_v36, %v6454_v35  ;;  %v9198_v60 = vld [vmem:[#allocation5 + $0x24c] sm:$0xf0] }
  0xa8   :  { %v9253_v11 = vld [vmem:[#allocation5 + $0x40c] sm:$0xf]  ;;  %v6067_v22 = vor.u32 %v9125_v5, %v6064_v6  ;;  %v6838_v61 = vld [vmem:[#allocation5 + $0x610] sm:$0xf] }
  0xa9   :  { %3407 = vmatpush.bf16.msrb.mxu3 %v7859_v38  ;;  %3382 = vmatpush.bf16.msrb.mxu1 %v6771_v45  ;;  %v6576_v12 = vld [vmem:[#allocation5 + $0x448] sm:$0xf0]  ;;  %v8055_v38 = vor.u32 %v9630_v30, %v8054_v29  ;;  %v6967_v45 = vor.u32 %v9358_v39, %v6966_v37  ;;  %v9326_v63 = vld [vmem:[#allocation5 + $0x64c] sm:$0xf0] }
  0xaa   :  { %v9381_v13 = vld [vmem:[#allocation5 + $0x80c] sm:$0xf]  ;;  %v6579_v27 = vor.u32 %v9253_v11, %v6576_v12  ;;  %v7350_v0 = vld [vmem:[#allocation5 + $0xa10] sm:$0xf]  ;;  %v6839_v5 = vor.u32 %v9326_v63, %v6838_v61  ;;  %v9494_v61 = vld [vmem:[#allocation5 + $0xb94] sm:$0xf] }
  0xab   :  { %3395 = vmatpush.bf16.msrb.mxu2 %v7283_v46  ;;  %3370 = vmatpush.bf16.msrb.mxu0 %v6195_v56  ;;  %v7088_v15 = vld [vmem:[#allocation5 + $0x848] sm:$0xf0]  ;;  %v7479_v46 = vor.u32 %v9486_v41, %v7478_v40  ;;  %v6391_v56 = vor.u32 %v9214_v48, %v6390_v47  ;;  %v9454_v1 = vld [vmem:[#allocation5 + $0xa4c] sm:$0xf0] }
  0xac   :  { %v9509_v16 = vld [vmem:[#allocation5 + $0xc0c] sm:$0xf]  ;;  %v7091_v28 = vor.u32 %v9381_v13, %v7088_v15  ;;  %v7862_v2 = vld [vmem:[#allocation5 + $0xe10] sm:$0xf]  ;;  %v7351_v6 = vor.u32 %v9454_v1, %v7350_v0  ;;  %v9622_v1 = vld [vmem:[#allocation5 + $0xf94] sm:$0xf] }
  0xad   :  { %3408 = vmatpush.bf16.msrb.mxu3 %v7795_v50  ;;  %3383 = vmatpush.bf16.msrb.mxu1 %v6707_v57  ;;  %v7600_v17 = vld [vmem:[#allocation5 + $0xc48] sm:$0xf0]  ;;  %v7991_v50 = vor.u32 %v9614_v43, %v7990_v42  ;;  %v6903_v57 = vor.u32 %v9342_v51, %v6902_v49  ;;  %v9582_v3 = vld [vmem:[#allocation5 + $0xe4c] sm:$0xf0] }
  0xae   :  { %v7603_v31 = vor.u32 %v9509_v16, %v7600_v17  ;;  %v6774_v11 = vld [vmem:[#allocation5 + $0x590] sm:$0xf]  ;;  %v7863_v12 = vor.u32 %v9582_v3, %v7862_v2  ;;  %v8056_v2 = vld [vmem:[#allocation5 + $0xfd0] sm:$0xf0] }
  0xaf   :  { %3396 = vmatpush.bf16.msrb.mxu2 %v7219_v58  ;;  %3371 = vmatpush.bf16.msrb.mxu0 %v6131_v4  ;;  %v7415_v58 = vor.u32 %v9470_v53, %v7414_v52  ;;  %v6327_v4 = vor.u32 %v9198_v60, %v6326_v59  ;;  %v9310_v13 = vld [vmem:[#allocation5 + $0x5cc] sm:$0xf0]  ;;  %v7032_v60 = vld [vmem:[#allocation5 + $0x7d0] sm:$0xf0] }
  0xb0   :  { %v9438_v15 = vld [vmem:[#allocation5 + $0x9cc] sm:$0xf0]  ;;  %v6775_v20 = vor.u32 %v9310_v13, %v6774_v11  ;;  %v9350_v11 = vld [vmem:[#allocation5 + $0x714] sm:$0xf] }
  0xb1   :  { %3409 = vmatpush.bf16.msrb.mxu3 %v7731_v62  ;;  %3384 = vmatpush.bf16.msrb.mxu1 %v6643_v7  ;;  %v7927_v62 = vor.u32 %v9598_v55, %v7926_v54  ;;  %v6262_v7 = vld [vmem:[#allocation5 + $0x190] sm:$0xf]  ;;  %v6968_v13 = vld [vmem:[#allocation5 + $0x750] sm:$0xf0] }
  0xb2   :  { %v7798_v16 = vld [vmem:[#allocation5 + $0xd90] sm:$0xf] }
  0xb3   :  { %3397 = vmatpush.bf16.msrb.mxu2 %v7155_v10  ;;  %3372 = vmatpush.bf16.msrb.mxu0 %v6067_v22  ;;  %v9182_v10 = vld [vmem:[#allocation5 + $0x1cc] sm:$0xf0] }
  0xb4   :  { %v9566_v17 = vld [vmem:[#allocation5 + $0xdcc] sm:$0xf0]  ;;  %v6263_v19 = vor.u32 %v9182_v10, %v6262_v7  ;;  %v9222_v7 = vld [vmem:[#allocation5 + $0x314] sm:$0xf] }
  0xb5   :  { %3410 = vmatpush.bf16.msrb.mxu3 %v7667_v14  ;;  %3385 = vmatpush.bf16.msrb.mxu1 %v6579_v27  ;;  %v7286_v14 = vld [vmem:[#allocation5 + $0x990] sm:$0xf]  ;;  %v7799_v26 = vor.u32 %v9566_v17, %v7798_v16  ;;  %v6456_v10 = vld [vmem:[#allocation5 + $0x350] sm:$0xf0] }
  0xb6   :  { %3373 = vmatmul.bf16.vlgmr.msrb.gmra.mxu0 %v10117_v18  ;;  %v7287_v21 = vor.u32 %v9438_v15, %v7286_v14  ;;  %v6198_v22 = vld [vmem:[#allocation5 + $0x110] sm:$0xf]  ;;  %v9478_v14 = vld [vmem:[#allocation5 + $0xb14] sm:$0xf] }
  0xb7   :  { %3398 = vmatpush.bf16.msrb.mxu2 %v7091_v28  ;;  %3417 = vmatpush.bf16.msra.mxu0 %v6519_v32  ;;  %v9166_v23 = vld [vmem:[#allocation5 + $0x14c] sm:$0xf0]  ;;  %v7480_v15 = vld [vmem:[#allocation5 + $0xb50] sm:$0xf0] }
  0xb8   :  { %3386 = vmatmul.bf16.vlgmr.msrb.gmra.mxu1 %v10119_v25  ;;  %v6710_v24 = vld [vmem:[#allocation5 + $0x510] sm:$0xf]  ;;  %v6199_v32 = vor.u32 %v9166_v23, %v6198_v22  ;;  %v9606_v16 = vld [vmem:[#allocation5 + $0xf14] sm:$0xf] }
  0xb9   :  { %3411 = vmatpush.bf16.msrb.mxu3 %v7603_v31  ;;  %3430 = vmatpush.bf16.msra.mxu1 %v7031_v33  ;;  %v9294_v27 = vld [vmem:[#allocation5 + $0x54c] sm:$0xf0]  ;;  %v7992_v17 = vld [vmem:[#allocation5 + $0xf50] sm:$0xf0] }
  0xba   :  { %3399 = vmatmul.bf16.vlgmr.msrb.gmra.mxu2 %v10111_v8  ;;  %v7222_v28 = vld [vmem:[#allocation5 + $0x910] sm:$0xf]  ;;  %v6711_v33 = vor.u32 %v9294_v27, %v6710_v24  ;;  %v9206_v22 = vld [vmem:[#allocation5 + $0x294] sm:$0xf] }
  0xbb   :  { %3443 = vmatpush.bf16.msra.mxu2 %v7543_v34  ;;  %3418 = vmatpush.bf16.msra.mxu0 %v6455_v44  ;;  %v9422_v29 = vld [vmem:[#allocation5 + $0x94c] sm:$0xf0]  ;;  %v6392_v23 = vld [vmem:[#allocation5 + $0x2d0] sm:$0xf0] }
  0xbc   :  { %3412 = vmatmul.bf16.vlgmr.msrb.gmra.mxu3 %v10113_v9  ;;  %v7734_v30 = vld [vmem:[#allocation5 + $0xd10] sm:$0xf]  ;;  %v7223_v34 = vor.u32 %v9422_v29, %v7222_v28  ;;  %v9334_v24 = vld [vmem:[#allocation5 + $0x694] sm:$0xf] }
  0xbd   :  { %3456 = vmatpush.bf16.msra.mxu3 %v8055_v38  ;;  %3431 = vmatpush.bf16.msra.mxu1 %v6967_v45  ;;  %v9550_v31 = vld [vmem:[#allocation5 + $0xd4c] sm:$0xf0]  ;;  %v6904_v27 = vld [vmem:[#allocation5 + $0x6d0] sm:$0xf0] }
  0xbe   :  { %v6134_v35 = vld [vmem:[#allocation5 + $0x90] sm:$0xf]  ;;  %v7735_v38 = vor.u32 %v9550_v31, %v7734_v30  ;;  %v9462_v28 = vld [vmem:[#allocation5 + $0xa94] sm:$0xf] }
  0xbf   :  { %3444 = vmatpush.bf16.msra.mxu2 %v7479_v46  ;;  %3419 = vmatpush.bf16.msra.mxu0 %v6391_v56  ;;  %v9150_v36 = vld [vmem:[#allocation5 + $0xcc] sm:$0xf0]  ;;  %v9238_v56 = vld [vmem:[#allocation5 + $0x394] sm:$0xf] }
  0xc0   :  { %v6646_v37 = vld [vmem:[#allocation5 + $0x490] sm:$0xf]  ;;  %v6135_v44 = vor.u32 %v9150_v36, %v6134_v35  ;;  %v7416_v29 = vld [vmem:[#allocation5 + $0xad0] sm:$0xf0] }
  0xc1   :  { %3457 = vmatpush.bf16.msra.mxu3 %v7991_v50  ;;  %3432 = vmatpush.bf16.msra.mxu1 %v6903_v57  ;;  %v9278_v39 = vld [vmem:[#allocation5 + $0x4cc] sm:$0xf0]  ;;  %v6520_v57 = vld [vmem:[#allocation5 + $0x3d0] sm:$0xf0] }
  0xc2   :  { %v7158_v40 = vld [vmem:[#allocation5 + $0x890] sm:$0xf]  ;;  %v6647_v47 = vor.u32 %v9278_v39, %v6646_v37  ;;  %v9590_v30 = vld [vmem:[#allocation5 + $0xe94] sm:$0xf] }
  0xc3   :  { %3445 = vmatpush.bf16.msra.mxu2 %v7415_v58  ;;  %3420 = vmatpush.bf16.msra.mxu0 %v6327_v4  ;;  %v9406_v41 = vld [vmem:[#allocation5 + $0x8cc] sm:$0xf0]  ;;  %v9366_v58 = vld [vmem:[#allocation5 + $0x794] sm:$0xf]  ;;  %v6523_v4 = vor.u32 %v9238_v56, %v6520_v57 }
  0xc4   :  { %v7670_v42 = vld [vmem:[#allocation5 + $0xc90] sm:$0xf]  ;;  %v7159_v48 = vor.u32 %v9406_v41, %v7158_v40  ;;  %v7928_v31 = vld [vmem:[#allocation5 + $0xed0] sm:$0xf0] }
  0xc5   :  { %3458 = vmatpush.bf16.msra.mxu3 %v7927_v62  ;;  %3433 = vmatpush.bf16.msra.mxu1 %v6839_v5  ;;  %v9534_v43 = vld [vmem:[#allocation5 + $0xccc] sm:$0xf0]  ;;  %v7544_v62 = vld [vmem:[#allocation5 + $0xbd0] sm:$0xf0]  ;;  %v7035_v5 = vor.u32 %v9366_v58, %v7032_v60 }
  0xc6   :  { %v6070_v45 = vld [vmem:[#allocation5 + $0x10] sm:$0xf]  ;;  %v7671_v52 = vor.u32 %v9534_v43, %v7670_v42  ;;  %v9190_v35 = vld [vmem:[#allocation5 + $0x214] sm:$0xf] }
  0xc7   :  { %3446 = vmatpush.bf16.msra.mxu2 %v7351_v6  ;;  %3421 = vmatpush.bf16.msra.mxu0 %v6263_v19  ;;  %v9134_v46 = vld [vmem:[#allocation5 + $0x4c] sm:$0xf0]  ;;  %v7547_v6 = vor.u32 %v9494_v61, %v7544_v62  ;;  %v6459_v19 = vor.u32 %v9222_v7, %v6456_v10  ;;  %v6328_v36 = vld [vmem:[#allocation5 + $0x250] sm:$0xf0] }
  0xc8   :  { %v6582_v49 = vld [vmem:[#allocation5 + $0x410] sm:$0xf]  ;;  %v6071_v59 = vor.u32 %v9134_v46, %v6070_v45  ;;  %v9318_v37 = vld [vmem:[#allocation5 + $0x614] sm:$0xf] }
  0xc9   :  { %3459 = vmatpush.bf16.msra.mxu3 %v7863_v12  ;;  %3434 = vmatpush.bf16.msra.mxu1 %v6775_v20  ;;  %v9262_v50 = vld [vmem:[#allocation5 + $0x44c] sm:$0xf0]  ;;  %v8059_v12 = vor.u32 %v9622_v1, %v8056_v2  ;;  %v6971_v20 = vor.u32 %v9350_v11, %v6968_v13  ;;  %v6840_v39 = vld [vmem:[#allocation5 + $0x650] sm:$0xf0] }
  0xca   :  { %v7094_v51 = vld [vmem:[#allocation5 + $0x810] sm:$0xf]  ;;  %v6583_v63 = vor.u32 %v9262_v50, %v6582_v49  ;;  %v9446_v40 = vld [vmem:[#allocation5 + $0xa14] sm:$0xf]  ;;  %v6843_v46 = vor.u32 %v9318_v37, %v6840_v39  ;;  %v10139_v50 = vld [vmem:[#allocation7] sm:$0xff] }
  0xcb   :  { %3447 = vmatpush.bf16.msra.mxu2 %v7287_v21  ;;  %3422 = vmatpush.bf16.msra.mxu0 %v6199_v32  ;;  %v9390_v53 = vld [vmem:[#allocation5 + $0x84c] sm:$0xf0]  ;;  %v7483_v21 = vor.u32 %v9478_v14, %v7480_v15  ;;  %v6395_v32 = vor.u32 %v9206_v22, %v6392_v23  ;;  %v7352_v41 = vld [vmem:[#allocation5 + $0xa50] sm:$0xf0]  ;;  %v617_v58 = vperm.slane %v10139_v50, 0 }
  0xcc   :  { %v7606_v54 = vld [vmem:[#allocation5 + $0xc10] sm:$0xf]  ;;  %v7095_v0 = vor.u32 %v9390_v53, %v7094_v51  ;;  %v9574_v42 = vld [vmem:[#allocation5 + $0xe14] sm:$0xf] }
  0xcd   :  { %3460 = vmatpush.bf16.msra.mxu3 %v7799_v26  ;;  %3435 = vmatpush.bf16.msra.mxu1 %v6711_v33  ;;  %v9518_v55 = vld [vmem:[#allocation5 + $0xc4c] sm:$0xf0]  ;;  %v7995_v26 = vor.u32 %v9606_v16, %v7992_v17  ;;  %v6907_v33 = vor.u32 %v9334_v24, %v6904_v27  ;;  %v7864_v43 = vld [vmem:[#allocation5 + $0xe50] sm:$0xf0] }
  0xce   :  { %v7607_v3 = vor.u32 %v9518_v55, %v7606_v54  ;;  %v9174_v45 = vld [vmem:[#allocation5 + $0x194] sm:$0xf]  ;;  %v7867_v51 = vor.u32 %v9574_v42, %v7864_v43  ;;  %v6526_v42 = vld [vmem:[#allocation5 + $0x398] sm:$0xf] }
  0xcf   :  { %3448 = vmatpush.bf16.msra.mxu2 %v7223_v34  ;;  %3423 = vmatpush.bf16.msra.mxu0 %v6135_v44  ;;  %v7419_v34 = vor.u32 %v9462_v28, %v7416_v29  ;;  %v6331_v44 = vor.u32 %v9190_v35, %v6328_v36  ;;  %v9302_v49 = vld [vmem:[#allocation5 + $0x594] sm:$0xf]  ;;  %v9247_v43 = vld [vmem:[#allocation5 + $0x3d4] sm:$0xf0] }
  0xd0   :  { %v9430_v53 = vld [vmem:[#allocation5 + $0x994] sm:$0xf] }
  0xd1   :  { %3461 = vmatpush.bf16.msra.mxu3 %v7735_v38  ;;  %3436 = vmatpush.bf16.msra.mxu1 %v6647_v47  ;;  %v7931_v38 = vor.u32 %v9590_v30, %v7928_v31  ;;  %v7355_v47 = vor.u32 %v9446_v40, %v7352_v41  ;;  %v7288_v54 = vld [vmem:[#allocation5 + $0x9d0] sm:$0xf0] }
  0xd2   :  { %v9558_v55 = vld [vmem:[#allocation5 + $0xd94] sm:$0xf]  ;;  %v7291_v60 = vor.u32 %v9430_v53, %v7288_v54  ;;  %v8062_v54 = vld [vmem:[#allocation5 + $0xf98] sm:$0xf] }
  0xd3   :  { %3449 = vmatpush.bf16.msra.mxu2 %v7159_v48  ;;  %3424 = vmatpush.bf16.msra.mxu0 %v6071_v59  ;;  %v6264_v48 = vld [vmem:[#allocation5 + $0x1d0] sm:$0xf0] }
  0xd4   :  { %v7800_v56 = vld [vmem:[#allocation5 + $0xdd0] sm:$0xf0]  ;;  %v6267_v57 = vor.u32 %v9174_v45, %v6264_v48  ;;  %v7550_v48 = vld [vmem:[#allocation5 + $0xb98] sm:$0xf] }
  0xd5   :  { %3462 = vmatpush.bf16.msra.mxu3 %v7671_v52  ;;  %3437 = vmatpush.bf16.msra.mxu1 %v6583_v63  ;;  %v6776_v52 = vld [vmem:[#allocation5 + $0x5d0] sm:$0xf0]  ;;  %v3231_v11 = vpop.f32.mrf.mxu1 }
  0xd6   :  { %3425 = vmatmul.bf16.vlgmr.msra.gmra.mxu0 %v10117_v18  ;;  %v6779_v59 = vor.u32 %v9302_v49, %v6776_v52  ;;  %v9158_v61 = vld [vmem:[#allocation5 + $0x114] sm:$0xf]  ;;  %v9503_v49 = vld [vmem:[#allocation5 + $0xbd4] sm:$0xf0] }
  0xd7   :  { %3450 = vmatpush.bf16.msra.mxu2 %v7095_v0  ;;  %3469 = vmatpush.bf16.msrb.mxu0 %v6523_v4  ;;  %v6200_v62 = vld [vmem:[#allocation5 + $0x150] sm:$0xf0]  ;;  %v7803_v0 = vor.u32 %v9558_v55, %v7800_v56  ;;  %v9631_v55 = vld [vmem:[#allocation5 + $0xfd4] sm:$0xf0] }
  0xd8   :  { %3438 = vmatmul.bf16.vlgmr.msra.gmra.mxu1 %v10119_v25  ;;  %v9286_v63 = vld [vmem:[#allocation5 + $0x514] sm:$0xf]  ;;  %v6203_v7 = vor.u32 %v9158_v61, %v6200_v62  ;;  %v7551_v61 = vor.u32 %v9503_v49, %v7550_v48  ;;  %v6462_v62 = vld [vmem:[#allocation5 + $0x318] sm:$0xf] }
  0xd9   :  { %3463 = vmatpush.bf16.msra.mxu3 %v7607_v3  ;;  %3482 = vmatpush.bf16.msrb.mxu1 %v7035_v5  ;;  %v6712_v1 = vld [vmem:[#allocation5 + $0x550] sm:$0xf0]  ;;  %v7294_v48 = vld [vmem:[#allocation5 + $0x998] sm:$0xf] }
  0xda   :  { %3451 = vmatmul.bf16.vlgmr.msra.gmra.mxu2 %v10111_v8  ;;  %v9414_v2 = vld [vmem:[#allocation5 + $0x914] sm:$0xf]  ;;  %v9439_v49 = vld [vmem:[#allocation5 + $0x9d4] sm:$0xf0] }
  0xdb   :  { %3495 = vmatpush.bf16.msrb.mxu2 %v7547_v6  ;;  %3470 = vmatpush.bf16.msrb.mxu0 %v6459_v19  ;;  %v7224_v3 = vld [vmem:[#allocation5 + $0x950] sm:$0xf0]  ;;  %v3218_v6 = vpop.f32.mrf.mxu0 }
  0xdc   :  { %3464 = vmatmul.bf16.vlgmr.msra.gmra.mxu3 %v10113_v9  ;;  %v9542_v4 = vld [vmem:[#allocation5 + $0xd14] sm:$0xf]  ;;  %v3219_v10 = vadd.f32 %v3218_v6, %v617_v58  ;;  %v7227_v13 = vor.u32 %v9414_v2, %v7224_v3  ;;  %v9359_v2 = vld [vmem:[#allocation5 + $0x754] sm:$0xf0] }
  0xdd   :  { %3508 = vmatpush.bf16.msrb.mxu3 %v8059_v12  ;;  %3483 = vmatpush.bf16.msrb.mxu1 %v6971_v20  ;;  %v7736_v5 = vld [vmem:[#allocation5 + $0xd50] sm:$0xf0]  ;;  %v6715_v12 = vor.u32 %v9286_v63, %v6712_v1  ;;  %v3244_v23 = vpop.f32.mrf.mxu2  ;;  %v9231_v63 = vld [vmem:[#allocation5 + $0x354] sm:$0xf0]  ;;  %v8063_v1 = vor.u32 %v9631_v55, %v8062_v54 }
  0xde   :  { %v9142_v14 = vld [vmem:[#allocation5 + $0x94] sm:$0xf]  ;;  %v7739_v17 = vor.u32 %v9542_v4, %v7736_v5  ;;  %v3232_v22 = vadd.f32 %v3231_v11, %v3219_v10  ;;  %v7486_v3 = vld [vmem:[#allocation5 + $0xb18] sm:$0xf] }
  0xdf   :  { %3496 = vmatpush.bf16.msrb.mxu2 %v7483_v21  ;;  %3471 = vmatpush.bf16.msrb.mxu0 %v6395_v32  ;;  %v6136_v15 = vld [vmem:[#allocation5 + $0xd0] sm:$0xf0]  ;;  %v3257_v24 = vpop.f32.mrf.mxu3  ;;  %v9487_v4 = vld [vmem:[#allocation5 + $0xb54] sm:$0xf0] }
  0xe0   :  { %v9270_v16 = vld [vmem:[#allocation5 + $0x494] sm:$0xf]  ;;  %v6139_v28 = vor.u32 %v9142_v14, %v6136_v15  ;;  %v3245_v31 = vadd.f32 %v3244_v23, %v3232_v22  ;;  %v7998_v5 = vld [vmem:[#allocation5 + $0xf18] sm:$0xf]  ;;  %v7487_v11 = vor.u32 %v9487_v4, %v7486_v3 }
  0xe1   :  { %3509 = vmatpush.bf16.msrb.mxu3 %v7995_v26  ;;  %3484 = vmatpush.bf16.msrb.mxu1 %v6907_v33  ;;  %v6648_v19 = vld [vmem:[#allocation5 + $0x4d0] sm:$0xf0]  ;;  %v9615_v6 = vld [vmem:[#allocation5 + $0xf54] sm:$0xf0] }
  0xe2   :  { %v9398_v20 = vld [vmem:[#allocation5 + $0x894] sm:$0xf]  ;;  %v6651_v32 = vor.u32 %v9270_v16, %v6648_v19  ;;  %v10142_v41 = vadd.f32 %v3257_v24, %v3245_v31  ;;  %v6910_v14 = vld [vmem:[#allocation5 + $0x698] sm:$0xf]  ;;  %v7999_v15 = vor.u32 %v9615_v6, %v7998_v5 }
  0xe3   :  { %3497 = vmatpush.bf16.msrb.mxu2 %v7419_v34  ;;  %3472 = vmatpush.bf16.msrb.mxu0 %v6331_v44  ;;  %v7160_v21 = vld [vmem:[#allocation5 + $0x8d0] sm:$0xf0]  ;;  %v7038_v44 = vld [vmem:[#allocation5 + $0x798] sm:$0xf]  ;;  %v3220_v45 = vpop.f32.mrf.mxu0 }
  0xe4   :  { %v9526_v26 = vld [vmem:[#allocation5 + $0xc94] sm:$0xf]  ;;  %v7163_v33 = vor.u32 %v9398_v20, %v7160_v21  ;;  %v9343_v16 = vld [vmem:[#allocation5 + $0x6d4] sm:$0xf0] }
  0xe5   :  { %3510 = vmatpush.bf16.msrb.mxu3 %v7931_v38  ;;  %3485 = vmatpush.bf16.msrb.mxu1 %v6843_v46  ;;  %v7672_v27 = vld [vmem:[#allocation5 + $0xcd0] sm:$0xf0]  ;;  %v3246_v58 = vpop.f32.mrf.mxu2  ;;  %v9471_v19 = vld [vmem:[#allocation5 + $0xad4] sm:$0xf0]  ;;  %v6911_v24 = vor.u32 %v9343_v16, %v6910_v14 }
  0xe6   :  { %v9126_v29 = vld [vmem:[#allocation5 + $0x14] sm:$0xf]  ;;  %v7675_v37 = vor.u32 %v9526_v26, %v7672_v27  ;;  %v7934_v20 = vld [vmem:[#allocation5 + $0xe98] sm:$0xf] }
  0xe7   :  { %3498 = vmatpush.bf16.msrb.mxu2 %v7355_v47  ;;  %3473 = vmatpush.bf16.msrb.mxu0 %v6267_v57  ;;  %v6072_v30 = vld [vmem:[#allocation5 + $0x50] sm:$0xf0]  ;;  %v9375_v47 = vld [vmem:[#allocation5 + $0x7d4] sm:$0xf0]  ;;  %v6527_v57 = vor.u32 %v9247_v43, %v6526_v42 }
  0xe8   :  { %v9254_v34 = vld [vmem:[#allocation5 + $0x414] sm:$0xf]  ;;  %v6075_v46 = vor.u32 %v9126_v29, %v6072_v30  ;;  %v9599_v21 = vld [vmem:[#allocation5 + $0xed4] sm:$0xf0]  ;;  %v618_v29 = vperm.slane %v10139_v50, 1 }
  0xe9   :  { %3511 = vmatpush.bf16.msrb.mxu3 %v7867_v51  ;;  %3486 = vmatpush.bf16.msrb.mxu1 %v6779_v59  ;;  %v6584_v35 = vld [vmem:[#allocation5 + $0x450] sm:$0xf0]  ;;  %v3233_v51 = vpop.f32.mrf.mxu1  ;;  %v3259_v59 = vpop.f32.mrf.mxu3  ;;  %v6334_v23 = vld [vmem:[#allocation5 + $0x218] sm:$0xf]  ;;  %v7935_v30 = vor.u32 %v9599_v21, %v7934_v20 }
  0xea   :  { %v9382_v36 = vld [vmem:[#allocation5 + $0x814] sm:$0xf]  ;;  %v6587_v52 = vor.u32 %v9254_v34, %v6584_v35  ;;  %v9199_v27 = vld [vmem:[#allocation5 + $0x254] sm:$0xf0] }
  0xeb   :  { %3499 = vmatpush.bf16.msrb.mxu2 %v7291_v60  ;;  %3474 = vmatpush.bf16.msrb.mxu0 %v6203_v7  ;;  %v7096_v38 = vld [vmem:[#allocation5 + $0x850] sm:$0xf0]  ;;  %v7039_v60 = vor.u32 %v9375_v47, %v7038_v44  ;;  %v6463_v7 = vor.u32 %v9231_v63, %v6462_v62  ;;  %v9327_v31 = vld [vmem:[#allocation5 + $0x654] sm:$0xf0] }
  0xec   :  { %v9510_v39 = vld [vmem:[#allocation5 + $0xc14] sm:$0xf]  ;;  %v7099_v53 = vor.u32 %v9382_v36, %v7096_v38  ;;  %v7870_v34 = vld [vmem:[#allocation5 + $0xe18] sm:$0xf]  ;;  %v6335_v36 = vor.u32 %v9199_v27, %v6334_v23 }
  0xed   :  { %3512 = vmatpush.bf16.msrb.mxu3 %v7803_v0  ;;  %3487 = vmatpush.bf16.msrb.mxu1 %v6715_v12  ;;  %v7608_v40 = vld [vmem:[#allocation5 + $0xc50] sm:$0xf0]  ;;  %v6974_v0 = vld [vmem:[#allocation5 + $0x718] sm:$0xf] }
  0xee   :  { %v7611_v56 = vor.u32 %v9510_v39, %v7608_v40  ;;  %v6975_v10 = vor.u32 %v9359_v2, %v6974_v0  ;;  %v6398_v12 = vld [vmem:[#allocation5 + $0x298] sm:$0xf] }
  0xef   :  { %3500 = vmatpush.bf16.msrb.mxu2 %v7227_v13  ;;  %3475 = vmatpush.bf16.msrb.mxu0 %v6139_v28  ;;  %v9215_v13 = vld [vmem:[#allocation5 + $0x2d4] sm:$0xf0] }
  0xf0   :  { %v6399_v22 = vor.u32 %v9215_v13, %v6398_v12  ;;  %v6846_v28 = vld [vmem:[#allocation5 + $0x618] sm:$0xf] }
  0xf1   :  { %3513 = vmatpush.bf16.msrb.mxu3 %v7739_v17  ;;  %3488 = vmatpush.bf16.msrb.mxu1 %v6651_v32  ;;  %v7422_v17 = vld [vmem:[#allocation5 + $0xa98] sm:$0xf]  ;;  %v6847_v38 = vor.u32 %v9327_v31, %v6846_v28 }
  0xf2   :  { %v7423_v26 = vor.u32 %v9471_v19, %v7422_v17  ;;  %v7358_v32 = vld [vmem:[#allocation5 + $0xa18] sm:$0xf] }
  0xf3   :  { %3501 = vmatpush.bf16.msrb.mxu2 %v7163_v33  ;;  %3476 = vmatpush.bf16.msrb.mxu0 %v6075_v46  ;;  %v9455_v33 = vld [vmem:[#allocation5 + $0xa54] sm:$0xf0] }
  0xf4   :  { %v9583_v35 = vld [vmem:[#allocation5 + $0xe54] sm:$0xf0]  ;;  %v7359_v39 = vor.u32 %v9455_v33, %v7358_v32 }
  0xf5   :  { %3514 = vmatpush.bf16.msrb.mxu3 %v7675_v37  ;;  %3489 = vmatpush.bf16.msrb.mxu1 %v6587_v52  ;;  %v3270_v37 = vpop.f32.mrf.mxu0  ;;  %v6270_v40 = vld [vmem:[#allocation5 + $0x198] sm:$0xf]  ;;  %v3283_v45 = vpop.f32.mrf.mxu1  ;;  %v7871_v46 = vor.u32 %v9583_v35, %v7870_v34 }
  0xf6   :  { %3477 = vmatmul.bf16.vlgmr.msrb.gmra.mxu0 %v10117_v18  ;;  %v9183_v42 = vld [vmem:[#allocation5 + $0x1d4] sm:$0xf0]  ;;  %v3271_v44 = vadd.f32 %v3270_v37, %v618_v29 }
  0xf7   :  { %3502 = vmatpush.bf16.msrb.mxu2 %v7099_v53  ;;  %3521 = vmatpush.bf16.msra.mxu0 %v6527_v57  ;;  %v6782_v43 = vld [vmem:[#allocation5 + $0x598] sm:$0xf]  ;;  %v6271_v54 = vor.u32 %v9183_v42, %v6270_v40  ;;  %v9367_v40 = vld [vmem:[#allocation5 + $0x79c] sm:$0xf] }
  0xf8   :  { %3490 = vmatmul.bf16.vlgmr.msrb.gmra.mxu1 %v10119_v25  ;;  %v9311_v47 = vld [vmem:[#allocation5 + $0x5d4] sm:$0xf0]  ;;  %v3284_v53 = vadd.f32 %v3283_v45, %v3271_v44  ;;  %v9495_v44 = vld [vmem:[#allocation5 + $0xb9c] sm:$0xf] }
  0xf9   :  { %3515 = vmatpush.bf16.msrb.mxu3 %v7611_v56  ;;  %3534 = vmatpush.bf16.msra.mxu1 %v7039_v60  ;;  %v7806_v51 = vld [vmem:[#allocation5 + $0xd98] sm:$0xf]  ;;  %v6783_v55 = vor.u32 %v9311_v47, %v6782_v43  ;;  %v7295_v56 = vor.u32 %v9439_v49, %v7294_v48  ;;  %v7040_v43 = vld [vmem:[#allocation5 + $0x7d8] sm:$0xf0] }
  0xfa   :  { %3503 = vmatmul.bf16.vlgmr.msrb.gmra.mxu2 %v10111_v8  ;;  %v9567_v52 = vld [vmem:[#allocation5 + $0xdd4] sm:$0xf0]  ;;  %v7552_v45 = vld [vmem:[#allocation5 + $0xbd8] sm:$0xf0] }
  0xfb   :  { %3547 = vmatpush.bf16.msra.mxu2 %v7551_v61  ;;  %3522 = vmatpush.bf16.msra.mxu0 %v6463_v7  ;;  %v6206_v57 = vld [vmem:[#allocation5 + $0x118] sm:$0xf]  ;;  %v7807_v61 = vor.u32 %v9567_v52, %v7806_v51  ;;  %v9623_v48 = vld [vmem:[#allocation5 + $0xf9c] sm:$0xf] }
  0xfc   :  { %3516 = vmatmul.bf16.vlgmr.msrb.gmra.mxu3 %v10113_v9  ;;  %v9167_v58 = vld [vmem:[#allocation5 + $0x154] sm:$0xf0]  ;;  %v8064_v49 = vld [vmem:[#allocation5 + $0xfd8] sm:$0xf0] }
  0xfd   :  { %3560 = vmatpush.bf16.msra.mxu3 %v8063_v1  ;;  %3535 = vmatpush.bf16.msra.mxu1 %v6975_v10  ;;  %v6718_v59 = vld [vmem:[#allocation5 + $0x518] sm:$0xf]  ;;  %v3296_v60 = vpop.f32.mrf.mxu2  ;;  %v6207_v5 = vor.u32 %v9167_v58, %v6206_v57  ;;  %v3272_v7 = vpop.f32.mrf.mxu0  ;;  %v9351_v57 = vld [vmem:[#allocation5 + $0x71c] sm:$0xf]  ;;  %v8067_v58 = vor.u32 %v9623_v48, %v8064_v49 }
  0xfe   :  { %v9295_v62 = vld [vmem:[#allocation5 + $0x554] sm:$0xf0]  ;;  %v3297_v1 = vadd.f32 %v3296_v60, %v3284_v53  ;;  %v7043_v53 = vor.u32 %v9367_v40, %v7040_v43  ;;  %v9479_v60 = vld [vmem:[#allocation5 + $0xb1c] sm:$0xf] }
  0xff   :  { %3548 = vmatpush.bf16.msra.mxu2 %v7487_v11  ;;  %3523 = vmatpush.bf16.msra.mxu0 %v6399_v22  ;;  %v7230_v63 = vld [vmem:[#allocation5 + $0x918] sm:$0xf]  ;;  %v3309_v2 = vpop.f32.mrf.mxu3  ;;  %v6719_v10 = vor.u32 %v9295_v62, %v6718_v59  ;;  %v6976_v59 = vld [vmem:[#allocation5 + $0x758] sm:$0xf0] }
 0x100   :  { %v9423_v0 = vld [vmem:[#allocation5 + $0x954] sm:$0xf0]  ;;  %v10149_v6 = vadd.f32 %v3309_v2, %v3297_v1  ;;  %v9607_v62 = vld [vmem:[#allocation5 + $0xf1c] sm:$0xf]  ;;  %v6979_v1 = vor.u32 %v9351_v57, %v6976_v59 }
 0x101   :  { %3561 = vmatpush.bf16.msra.mxu3 %v7999_v15  ;;  %3536 = vmatpush.bf16.msra.mxu1 %v6911_v24  ;;  %v7742_v3 = vld [vmem:[#allocation5 + $0xd18] sm:$0xf]  ;;  %v7231_v11 = vor.u32 %v9423_v0, %v7230_v63  ;;  %v3285_v15 = vpop.f32.mrf.mxu1  ;;  %v8000_v63 = vld [vmem:[#allocation5 + $0xf58] sm:$0xf0] }
 0x102   :  { %v9551_v4 = vld [vmem:[#allocation5 + $0xd54] sm:$0xf0]  ;;  %v8003_v7 = vor.u32 %v9607_v62, %v8000_v63  ;;  %v6784_v40 = vld [vmem:[#allocation5 + $0x5d8] sm:$0xf0] }
 0x103   :  { %3549 = vmatpush.bf16.msra.mxu2 %v7423_v26  ;;  %3524 = vmatpush.bf16.msra.mxu0 %v6335_v36  ;;  %v6142_v12 = vld [vmem:[#allocation5 + $0x98] sm:$0xf]  ;;  %v7743_v16 = vor.u32 %v9551_v4, %v7742_v3  ;;  %v9207_v3 = vld [vmem:[#allocation5 + $0x29c] sm:$0xf] }
 0x104   :  { %v9151_v13 = vld [vmem:[#allocation5 + $0xd4] sm:$0xf0]  ;;  %v6400_v4 = vld [vmem:[#allocation5 + $0x2d8] sm:$0xf0] }
 0x105   :  { %3562 = vmatpush.bf16.msra.mxu3 %v7935_v30  ;;  %3537 = vmatpush.bf16.msra.mxu1 %v6847_v38  ;;  %v6654_v14 = vld [vmem:[#allocation5 + $0x498] sm:$0xf]  ;;  %v6143_v23 = vor.u32 %v9151_v13, %v6142_v12  ;;  %v3298_v32 = vpop.f32.mrf.mxu2  ;;  %v9239_v38 = vld [vmem:[#allocation5 + $0x39c] sm:$0xf]  ;;  %v6403_v15 = vor.u32 %v9207_v3, %v6400_v4 }
 0x106   :  { %v9279_v17 = vld [vmem:[#allocation5 + $0x4d4] sm:$0xf0]  ;;  %v7424_v12 = vld [vmem:[#allocation5 + $0xad8] sm:$0xf0] }
 0x107   :  { %3550 = vmatpush.bf16.msra.mxu2 %v7359_v39  ;;  %3525 = vmatpush.bf16.msra.mxu0 %v6271_v54  ;;  %v7166_v19 = vld [vmem:[#allocation5 + $0x898] sm:$0xf]  ;;  %v6655_v27 = vor.u32 %v9279_v17, %v6654_v14  ;;  %v3311_v37 = vpop.f32.mrf.mxu3  ;;  %v6528_v39 = vld [vmem:[#allocation5 + $0x3d8] sm:$0xf0]  ;;  %v7555_v54 = vor.u32 %v9495_v44, %v7552_v45 }
 0x108   :  { %v9407_v20 = vld [vmem:[#allocation5 + $0x8d4] sm:$0xf0]  ;;  %v6531_v52 = vor.u32 %v9239_v38, %v6528_v39  ;;  %v9591_v13 = vld [vmem:[#allocation5 + $0xe9c] sm:$0xf] }
 0x109   :  { %3563 = vmatpush.bf16.msra.mxu3 %v7871_v46  ;;  %3538 = vmatpush.bf16.msra.mxu1 %v6783_v55  ;;  %v7678_v21 = vld [vmem:[#allocation5 + $0xc98] sm:$0xf]  ;;  %v7167_v28 = vor.u32 %v9407_v20, %v7166_v19  ;;  %v9223_v55 = vld [vmem:[#allocation5 + $0x31c] sm:$0xf] }
 0x10a   :  { %v9535_v22 = vld [vmem:[#allocation5 + $0xcd4] sm:$0xf0]  ;;  %v7936_v14 = vld [vmem:[#allocation5 + $0xed8] sm:$0xf0] }
 0x10b   :  { %3551 = vmatpush.bf16.msra.mxu2 %v7295_v56  ;;  %3526 = vmatpush.bf16.msra.mxu0 %v6207_v5  ;;  %v6078_v24 = vld [vmem:[#allocation5 + $0x18] sm:$0xf]  ;;  %v7679_v33 = vor.u32 %v9535_v22, %v7678_v21  ;;  %v6464_v56 = vld [vmem:[#allocation5 + $0x358] sm:$0xf0]  ;;  %v619_v22 = vperm.slane %v10139_v50, 2 }
 0x10c   :  { %v9135_v26 = vld [vmem:[#allocation5 + $0x54] sm:$0xf0]  ;;  %v6467_v0 = vor.u32 %v9223_v55, %v6464_v56  ;;  %v9335_v5 = vld [vmem:[#allocation5 + $0x69c] sm:$0xf] }
 0x10d   :  { %3564 = vmatpush.bf16.msra.mxu3 %v7807_v61  ;;  %3539 = vmatpush.bf16.msra.mxu1 %v6719_v10  ;;  %v6590_v29 = vld [vmem:[#allocation5 + $0x418] sm:$0xf]  ;;  %v6079_v42 = vor.u32 %v9135_v26, %v6078_v24  ;;  %v7488_v61 = vld [vmem:[#allocation5 + $0xb58] sm:$0xf0] }
 0x10e   :  { %v9263_v30 = vld [vmem:[#allocation5 + $0x454] sm:$0xf0]  ;;  %v7491_v2 = vor.u32 %v9479_v60, %v7488_v61  ;;  %v6912_v10 = vld [vmem:[#allocation5 + $0x6d8] sm:$0xf0] }
 0x10f   :  { %3552 = vmatpush.bf16.msra.mxu2 %v7231_v11  ;;  %v7102_v31 = vld [vmem:[#allocation5 + $0x818] sm:$0xf]  ;;  %3527 = vmatpush.bf16.msra.mxu0 %v6143_v23  ;;  %v6591_v46 = vor.u32 %v9263_v30, %v6590_v29  ;;  %v9463_v11 = vld [vmem:[#allocation5 + $0xa9c] sm:$0xf]  ;;  %v6915_v17 = vor.u32 %v9335_v5, %v6912_v10  ;;  %v7939_v23 = vor.u32 %v9591_v13, %v7936_v14 }
 0x110   :  { %v9391_v34 = vld [vmem:[#allocation5 + $0x854] sm:$0xf0]  ;;  %v7427_v19 = vor.u32 %v9463_v11, %v7424_v12  ;;  %v6336_v20 = vld [vmem:[#allocation5 + $0x258] sm:$0xf0] }
 0x111   :  { %3565 = vmatpush.bf16.msra.mxu3 %v7743_v16  ;;  %v7614_v35 = vld [vmem:[#allocation5 + $0xc18] sm:$0xf]  ;;  %3540 = vmatpush.bf16.msra.mxu1 %v6655_v27  ;;  %v7103_v47 = vor.u32 %v9391_v34, %v7102_v31  ;;  %v9191_v16 = vld [vmem:[#allocation5 + $0x21c] sm:$0xf] }
 0x112   :  { %v9519_v36 = vld [vmem:[#allocation5 + $0xc54] sm:$0xf0]  ;;  %v9319_v21 = vld [vmem:[#allocation5 + $0x61c] sm:$0xf]  ;;  %v6339_v30 = vor.u32 %v9191_v16, %v6336_v20 }
 0x113   :  { %3553 = vmatpush.bf16.msra.mxu2 %v7167_v28  ;;  %v7615_v51 = vor.u32 %v9519_v36, %v7614_v35  ;;  %3528 = vmatpush.bf16.msra.mxu0 %v6079_v42  ;;  %v6848_v24 = vld [vmem:[#allocation5 + $0x658] sm:$0xf0]  ;;  %v3322_v31 = vpop.f32.mrf.mxu0 }
 0x114   :  { %v9447_v26 = vld [vmem:[#allocation5 + $0xa1c] sm:$0xf]  ;;  %v6851_v32 = vor.u32 %v9319_v21, %v6848_v24  ;;  %v3323_v37 = vadd.f32 %v3322_v31, %v619_v22 }
 0x115   :  { %3566 = vmatpush.bf16.msra.mxu3 %v7679_v33  ;;  %3541 = vmatpush.bf16.msra.mxu1 %v6591_v46  ;;  %v7360_v27 = vld [vmem:[#allocation5 + $0xa58] sm:$0xf0]  ;;  %v3335_v38 = vpop.f32.mrf.mxu1 }
 0x116   :  { %3529 = vmatmul.bf16.vlgmr.msra.gmra.mxu0 %v10117_v18  ;;  %v9575_v28 = vld [vmem:[#allocation5 + $0xe1c] sm:$0xf]  ;;  %v7363_v33 = vor.u32 %v9447_v26, %v7360_v27  ;;  %v3336_v46 = vadd.f32 %v3335_v38, %v3323_v37  ;;  %v9376_v37 = vld [vmem:[#allocation5 + $0x7dc] sm:$0xf0] }
 0x117   :  { %3554 = vmatpush.bf16.msra.mxu2 %v7103_v47  ;;  %3573 = vmatpush.bf16.msrb.mxu0 %v6531_v52  ;;  %v7872_v29 = vld [vmem:[#allocation5 + $0xe58] sm:$0xf0]  ;;  %v7558_v38 = vld [vmem:[#allocation5 + $0xba0] sm:$0xf] }
 0x118   :  { %3542 = vmatmul.bf16.vlgmr.msra.gmra.mxu1 %v10119_v25  ;;  %v9175_v34 = vld [vmem:[#allocation5 + $0x19c] sm:$0xf]  ;;  %v7875_v39 = vor.u32 %v9575_v28, %v7872_v29 }
 0x119   :  { %3567 = vmatpush.bf16.msra.mxu3 %v7615_v51  ;;  %3586 = vmatpush.bf16.msrb.mxu1 %v7043_v53  ;;  %v6272_v35 = vld [vmem:[#allocation5 + $0x1d8] sm:$0xf0] }
 0x11a   :  { %3555 = vmatmul.bf16.vlgmr.msra.gmra.mxu2 %v10111_v8  ;;  %v9303_v36 = vld [vmem:[#allocation5 + $0x59c] sm:$0xf]  ;;  %v6275_v47 = vor.u32 %v9175_v34, %v6272_v35  ;;  %v9248_v34 = vld [vmem:[#allocation5 + $0x3dc] sm:$0xf0] }
 0x11b   :  { %3599 = vmatpush.bf16.msrb.mxu2 %v7555_v54  ;;  %3574 = vmatpush.bf16.msrb.mxu0 %v6467_v0  ;;  %v9431_v42 = vld [vmem:[#allocation5 + $0x99c] sm:$0xf]  ;;  %v6787_v48 = vor.u32 %v9303_v36, %v6784_v40  ;;  %v7046_v35 = vld [vmem:[#allocation5 + $0x7a0] sm:$0xf] }
 0x11c   :  { %3568 = vmatmul.bf16.vlgmr.msra.gmra.mxu3 %v10113_v9  ;;  %v7296_v43 = vld [vmem:[#allocation5 + $0x9d8] sm:$0xf0] }
 0x11d   :  { %3612 = vmatpush.bf16.msrb.mxu3 %v8067_v58  ;;  %3587 = vmatpush.bf16.msrb.mxu1 %v6979_v1  ;;  %v9559_v44 = vld [vmem:[#allocation5 + $0xd9c] sm:$0xf]  ;;  %v7299_v49 = vor.u32 %v9431_v42, %v7296_v43  ;;  %v3348_v54 = vpop.f32.mrf.mxu2  ;;  %v3324_v1 = vpop.f32.mrf.mxu0  ;;  %v8070_v43 = vld [vmem:[#allocation5 + $0xfa0] sm:$0xf] }
 0x11e   :  { %v7808_v45 = vld [vmem:[#allocation5 + $0xdd8] sm:$0xf0]  ;;  %v3349_v59 = vadd.f32 %v3348_v54, %v3336_v46  ;;  %v3337_v10 = vpop.f32.mrf.mxu1  ;;  %v9360_v54 = vld [vmem:[#allocation5 + $0x75c] sm:$0xf0] }
 0x11f   :  { %3600 = vmatpush.bf16.msrb.mxu2 %v7491_v2  ;;  %3575 = vmatpush.bf16.msrb.mxu0 %v6403_v15  ;;  %v9159_v51 = vld [vmem:[#allocation5 + $0x11c] sm:$0xf]  ;;  %v7811_v55 = vor.u32 %v9559_v44, %v7808_v45  ;;  %v3361_v60 = vpop.f32.mrf.mxu3  ;;  %v9632_v44 = vld [vmem:[#allocation5 + $0xfdc] sm:$0xf0] }
 0x120   :  { %v6208_v52 = vld [vmem:[#allocation5 + $0x158] sm:$0xf0]  ;;  %v10156_v0 = vadd.f32 %v3361_v60, %v3349_v59  ;;  %v6918_v1 = vld [vmem:[#allocation5 + $0x6a0] sm:$0xf] }
 0x121   :  { %3613 = vmatpush.bf16.msrb.mxu3 %v8003_v7  ;;  %3588 = vmatpush.bf16.msrb.mxu1 %v6915_v17  ;;  %v9287_v53 = vld [vmem:[#allocation5 + $0x51c] sm:$0xf]  ;;  %v6211_v63 = vor.u32 %v9159_v51, %v6208_v52  ;;  %v9232_v51 = vld [vmem:[#allocation5 + $0x35c] sm:$0xf0] }
 0x122   :  { %v6720_v56 = vld [vmem:[#allocation5 + $0x558] sm:$0xf0]  ;;  %v6982_v52 = vld [vmem:[#allocation5 + $0x720] sm:$0xf] }
 0x123   :  { %3601 = vmatpush.bf16.msrb.mxu2 %v7427_v19  ;;  %3576 = vmatpush.bf16.msrb.mxu0 %v6339_v30  ;;  %v9415_v57 = vld [vmem:[#allocation5 + $0x91c] sm:$0xf]  ;;  %v6723_v2 = vor.u32 %v9287_v53, %v6720_v56  ;;  %v8071_v53 = vor.u32 %v9632_v44, %v8070_v43  ;;  %v9488_v56 = vld [vmem:[#allocation5 + $0xb5c] sm:$0xf0]  ;;  %v6983_v60 = vor.u32 %v9360_v54, %v6982_v52 }
 0x124   :  { %v7232_v58 = vld [vmem:[#allocation5 + $0x958] sm:$0xf0]  ;;  %v9600_v10 = vld [vmem:[#allocation5 + $0xedc] sm:$0xf0] }
 0x125   :  { %3614 = vmatpush.bf16.msrb.mxu3 %v7939_v23  ;;  %3589 = vmatpush.bf16.msrb.mxu1 %v6851_v32  ;;  %v9543_v61 = vld [vmem:[#allocation5 + $0xd1c] sm:$0xf]  ;;  %v7235_v3 = vor.u32 %v9415_v57, %v7232_v58  ;;  %v3350_v27 = vpop.f32.mrf.mxu2  ;;  %v8006_v57 = vld [vmem:[#allocation5 + $0xf20] sm:$0xf] }
 0x126   :  { %v7744_v62 = vld [vmem:[#allocation5 + $0xd58] sm:$0xf0]  ;;  %v9616_v58 = vld [vmem:[#allocation5 + $0xf5c] sm:$0xf0] }
 0x127   :  { %3602 = vmatpush.bf16.msrb.mxu2 %v7363_v33  ;;  %3577 = vmatpush.bf16.msrb.mxu0 %v6275_v47  ;;  %v9143_v4 = vld [vmem:[#allocation5 + $0x9c] sm:$0xf]  ;;  %v7747_v11 = vor.u32 %v9543_v61, %v7744_v62  ;;  %v3363_v32 = vpop.f32.mrf.mxu3  ;;  %v6534_v33 = vld [vmem:[#allocation5 + $0x3a0] sm:$0xf]  ;;  %v7047_v47 = vor.u32 %v9376_v37, %v7046_v35 }
 0x128   :  { %v6144_v5 = vld [vmem:[#allocation5 + $0xd8] sm:$0xf0]  ;;  %v6535_v46 = vor.u32 %v9248_v34, %v6534_v33  ;;  %v6406_v62 = vld [vmem:[#allocation5 + $0x2a0] sm:$0xf] }
 0x129   :  { %3615 = vmatpush.bf16.msrb.mxu3 %v7875_v39  ;;  %3590 = vmatpush.bf16.msrb.mxu1 %v6787_v48  ;;  %v9271_v7 = vld [vmem:[#allocation5 + $0x49c] sm:$0xf]  ;;  %v6147_v17 = vor.u32 %v9143_v4, %v6144_v5  ;;  %v9504_v39 = vld [vmem:[#allocation5 + $0xbdc] sm:$0xf0] }
 0x12a   :  { %v6656_v12 = vld [vmem:[#allocation5 + $0x4d8] sm:$0xf0]  ;;  %v7559_v48 = vor.u32 %v9504_v39, %v7558_v38  ;;  %v7430_v4 = vld [vmem:[#allocation5 + $0xaa0] sm:$0xf] }
 0x12b   :  { %3603 = vmatpush.bf16.msrb.mxu2 %v7299_v49  ;;  %v9399_v13 = vld [vmem:[#allocation5 + $0x89c] sm:$0xf]  ;;  %3578 = vmatpush.bf16.msrb.mxu0 %v6211_v63  ;;  %v6659_v21 = vor.u32 %v9271_v7, %v6656_v12  ;;  %v6470_v49 = vld [vmem:[#allocation5 + $0x320] sm:$0xf] }
 0x12c   :  { %v7168_v14 = vld [vmem:[#allocation5 + $0x8d8] sm:$0xf0]  ;;  %v6471_v59 = vor.u32 %v9232_v51, %v6470_v49  ;;  %v9216_v63 = vld [vmem:[#allocation5 + $0x2dc] sm:$0xf0] }
 0x12d   :  { %3616 = vmatpush.bf16.msrb.mxu3 %v7811_v55  ;;  %v9527_v15 = vld [vmem:[#allocation5 + $0xc9c] sm:$0xf]  ;;  %3591 = vmatpush.bf16.msrb.mxu1 %v6723_v2  ;;  %v7171_v22 = vor.u32 %v9399_v13, %v7168_v14  ;;  %v7494_v55 = vld [vmem:[#allocation5 + $0xb20] sm:$0xf]  ;;  %v8007_v2 = vor.u32 %v9616_v58, %v8006_v57 }
 0x12e   :  { %v7680_v16 = vld [vmem:[#allocation5 + $0xcd8] sm:$0xf0]  ;;  %v7495_v61 = vor.u32 %v9488_v56, %v7494_v55  ;;  %v9472_v5 = vld [vmem:[#allocation5 + $0xadc] sm:$0xf0] }
 0x12f   :  { %v9127_v19 = vld [vmem:[#allocation5 + $0x1c] sm:$0xf]  ;;  %3604 = vmatpush.bf16.msrb.mxu2 %v7235_v3  ;;  %v7683_v28 = vor.u32 %v9527_v15, %v7680_v16  ;;  %3579 = vmatpush.bf16.msrb.mxu0 %v6147_v17  ;;  %v9344_v3 = vld [vmem:[#allocation5 + $0x6dc] sm:$0xf0]  ;;  %v7431_v14 = vor.u32 %v9472_v5, %v7430_v4  ;;  %v620_v17 = vperm.slane %v10139_v50, 3 }
 0x130   :  { %v6080_v20 = vld [vmem:[#allocation5 + $0x58] sm:$0xf0]  ;;  %v7942_v7 = vld [vmem:[#allocation5 + $0xea0] sm:$0xf]  ;;  %v6919_v13 = vor.u32 %v9344_v3, %v6918_v1 }
 0x131   :  { %v9255_v23 = vld [vmem:[#allocation5 + $0x41c] sm:$0xf]  ;;  %3617 = vmatpush.bf16.msrb.mxu3 %v7747_v11  ;;  %v6083_v36 = vor.u32 %v9127_v19, %v6080_v20  ;;  %3592 = vmatpush.bf16.msrb.mxu1 %v6659_v21  ;;  %v6407_v11 = vor.u32 %v9216_v63, %v6406_v62  ;;  %v6342_v12 = vld [vmem:[#allocation5 + $0x220] sm:$0xf]  ;;  %v7943_v19 = vor.u32 %v9600_v10, %v7942_v7 }
 0x132   :  { %v6592_v24 = vld [vmem:[#allocation5 + $0x458] sm:$0xf0]  ;;  %v9200_v15 = vld [vmem:[#allocation5 + $0x25c] sm:$0xf0] }
 0x133   :  { %v9383_v26 = vld [vmem:[#allocation5 + $0x81c] sm:$0xf]  ;;  %3605 = vmatpush.bf16.msrb.mxu2 %v7171_v22  ;;  %v6595_v40 = vor.u32 %v9255_v23, %v6592_v24  ;;  %3580 = vmatpush.bf16.msrb.mxu0 %v6083_v36  ;;  %v6854_v16 = vld [vmem:[#allocation5 + $0x620] sm:$0xf]  ;;  %v3374_v27 = vpop.f32.mrf.mxu0 }
 0x134   :  { %v7104_v29 = vld [vmem:[#allocation5 + $0x858] sm:$0xf0]  ;;  %v9328_v20 = vld [vmem:[#allocation5 + $0x65c] sm:$0xf0]  ;;  %v3375_v33 = vadd.f32 %v3374_v27, %v620_v17 }
 0x135   :  { %v9511_v30 = vld [vmem:[#allocation5 + $0xc1c] sm:$0xf]  ;;  %v7107_v42 = vor.u32 %v9383_v26, %v7104_v29  ;;  %3618 = vmatpush.bf16.msrb.mxu3 %v7683_v28  ;;  %3593 = vmatpush.bf16.msrb.mxu1 %v6595_v40  ;;  %v7366_v21 = vld [vmem:[#allocation5 + $0xa20] sm:$0xf]  ;;  %v6343_v26 = vor.u32 %v9200_v15, %v6342_v12  ;;  %v6855_v28 = vor.u32 %v9328_v20, %v6854_v16  ;;  %v3387_v34 = vpop.f32.mrf.mxu1 }
 0x136   :  { %v7616_v31 = vld [vmem:[#allocation5 + $0xc58] sm:$0xf0]  ;;  %3581 = vmatmul.bf16.vlgmr.msrb.gmra.mxu0 %v10117_v18  ;;  %v9456_v22 = vld [vmem:[#allocation5 + $0xa5c] sm:$0xf0]  ;;  %v3388_v40 = vadd.f32 %v3387_v34, %v3375_v33  ;;  %v7048_v33 = vld [vmem:[#allocation5 + $0x7e0] sm:$0xf0] }
 0x137   :  { %v7619_v45 = vor.u32 %v9511_v30, %v7616_v31  ;;  %3606 = vmatpush.bf16.msrb.mxu2 %v7107_v42  ;;  %3625 = vmatpush.bf16.msra.mxu0 %v6535_v46  ;;  %v7878_v23 = vld [vmem:[#allocation5 + $0xe20] sm:$0xf]  ;;  %v7367_v29 = vor.u32 %v9456_v22, %v7366_v21  ;;  %v9496_v34 = vld [vmem:[#allocation5 + $0xba4] sm:$0xf] }
 0x138   :  { %3594 = vmatmul.bf16.vlgmr.msrb.gmra.mxu1 %v10119_v25  ;;  %v9584_v24 = vld [vmem:[#allocation5 + $0xe5c] sm:$0xf0] }
 0x139   :  { %3619 = vmatpush.bf16.msrb.mxu3 %v7619_v45  ;;  %3638 = vmatpush.bf16.msra.mxu1 %v7047_v47  ;;  %v6278_v30 = vld [vmem:[#allocation5 + $0x1a0] sm:$0xf]  ;;  %v7879_v50 = vor.u32 %v9584_v24, %v7878_v23 }
 0x13a   :  { %3607 = vmatmul.bf16.vlgmr.msrb.gmra.mxu2 %v10111_v8  ;;  %v9184_v31 = vld [vmem:[#allocation5 + $0x1dc] sm:$0xf0] }
 0x13b   :  { %3651 = vmatpush.bf16.msra.mxu2 %v7559_v48  ;;  %3626 = vmatpush.bf16.msra.mxu0 %v6471_v59  ;;  %v6790_v32 = vld [vmem:[#allocation5 + $0x5a0] sm:$0xf]  ;;  %v6279_v42 = vor.u32 %v9184_v31, %v6278_v30  ;;  %v6536_v30 = vld [vmem:[#allocation5 + $0x3e0] sm:$0xf0] }
 0x13c   :  { %3620 = vmatmul.bf16.vlgmr.msrb.gmra.mxu3 %v10113_v9  ;;  %v9312_v35 = vld [vmem:[#allocation5 + $0x5dc] sm:$0xf0]  ;;  %v9368_v31 = vld [vmem:[#allocation5 + $0x7a4] sm:$0xf] }
 0x13d   :  { %3664 = vmatpush.bf16.msra.mxu3 %v8071_v53  ;;  %3639 = vmatpush.bf16.msra.mxu1 %v6983_v60  ;;  %v7302_v36 = vld [vmem:[#allocation5 + $0x9a0] sm:$0xf]  ;;  %v6791_v43 = vor.u32 %v9312_v35, %v6790_v32  ;;  %v3400_v48 = vpop.f32.mrf.mxu2  ;;  %v3376_v60 = vpop.f32.mrf.mxu0 }
 0x13e   :  { %v9440_v37 = vld [vmem:[#allocation5 + $0x9dc] sm:$0xf0]  ;;  %v3401_v54 = vadd.f32 %v3400_v48, %v3388_v40  ;;  %v3389_v3 = vpop.f32.mrf.mxu1  ;;  %v6984_v48 = vld [vmem:[#allocation5 + $0x760] sm:$0xf0] }
 0x13f   :  { %3652 = vmatpush.bf16.msra.mxu2 %v7495_v61  ;;  %3627 = vmatpush.bf16.msra.mxu0 %v6407_v11  ;;  %v7814_v38 = vld [vmem:[#allocation5 + $0xda0] sm:$0xf]  ;;  %v7303_v44 = vor.u32 %v9440_v37, %v7302_v36  ;;  %v3413_v55 = vpop.f32.mrf.mxu3  ;;  %v9624_v37 = vld [vmem:[#allocation5 + $0xfa4] sm:$0xf] }
 0x140   :  { %v9568_v39 = vld [vmem:[#allocation5 + $0xddc] sm:$0xf0]  ;;  %v10163_v59 = vadd.f32 %v3413_v55, %v3401_v54  ;;  %v9336_v60 = vld [vmem:[#allocation5 + $0x6a4] sm:$0xf] }
 0x141   :  { %3665 = vmatpush.bf16.msra.mxu3 %v8007_v2  ;;  %3640 = vmatpush.bf16.msra.mxu1 %v6919_v13  ;;  %v6214_v45 = vld [vmem:[#allocation5 + $0x120] sm:$0xf]  ;;  %v7815_v49 = vor.u32 %v9568_v39, %v7814_v38  ;;  %v8072_v38 = vld [vmem:[#allocation5 + $0xfe0] sm:$0xf0] }
 0x142   :  { %v9168_v46 = vld [vmem:[#allocation5 + $0x15c] sm:$0xf0]  ;;  %v7944_v3 = vld [vmem:[#allocation5 + $0xee0] sm:$0xf0] }
 0x143   :  { %3653 = vmatpush.bf16.msra.mxu2 %v7431_v14  ;;  %3628 = vmatpush.bf16.msra.mxu0 %v6343_v26  ;;  %v6726_v47 = vld [vmem:[#allocation5 + $0x520] sm:$0xf]  ;;  %v6215_v58 = vor.u32 %v9168_v46, %v6214_v45  ;;  %v6472_v45 = vld [vmem:[#allocation5 + $0x360] sm:$0xf0] }
 0x144   :  { %v9296_v51 = vld [vmem:[#allocation5 + $0x55c] sm:$0xf0]  ;;  %v9352_v46 = vld [vmem:[#allocation5 + $0x724] sm:$0xf] }
 0x145   :  { %3666 = vmatpush.bf16.msra.mxu3 %v7943_v19  ;;  %3641 = vmatpush.bf16.msra.mxu1 %v6855_v28  ;;  %v7238_v52 = vld [vmem:[#allocation5 + $0x920] sm:$0xf]  ;;  %v6727_v61 = vor.u32 %v9296_v51, %v6726_v47  ;;  %v3402_v22 = vpop.f32.mrf.mxu2  ;;  %v8075_v47 = vor.u32 %v9624_v37, %v8072_v38  ;;  %v7496_v51 = vld [vmem:[#allocation5 + $0xb60] sm:$0xf0]  ;;  %v6987_v55 = vor.u32 %v9352_v46, %v6984_v48 }
 0x146   :  { %v9424_v53 = vld [vmem:[#allocation5 + $0x95c] sm:$0xf0]  ;;  %v9416_v48 = vld [vmem:[#allocation5 + $0x924] sm:$0xf] }
 0x147   :  { %3654 = vmatpush.bf16.msra.mxu2 %v7367_v29  ;;  %v7750_v56 = vld [vmem:[#allocation5 + $0xd20] sm:$0xf]  ;;  %3629 = vmatpush.bf16.msra.mxu0 %v6279_v42  ;;  %v7239_v62 = vor.u32 %v9424_v53, %v7238_v52  ;;  %v3415_v28 = vpop.f32.mrf.mxu3  ;;  %v9240_v29 = vld [vmem:[#allocation5 + $0x3a4] sm:$0xf]  ;;  %v7051_v42 = vor.u32 %v9368_v31, %v7048_v33 }
 0x148   :  { %v9552_v57 = vld [vmem:[#allocation5 + $0xd5c] sm:$0xf0]  ;;  %v6539_v40 = vor.u32 %v9240_v29, %v6536_v30  ;;  %v9608_v52 = vld [vmem:[#allocation5 + $0xf24] sm:$0xf] }
 0x149   :  { %3667 = vmatpush.bf16.msra.mxu3 %v7879_v50  ;;  %3642 = vmatpush.bf16.msra.mxu1 %v6791_v43  ;;  %v6150_v63 = vld [vmem:[#allocation5 + $0xa0] sm:$0xf]  ;;  %v7751_v4 = vor.u32 %v9552_v57, %v7750_v56  ;;  %v7560_v50 = vld [vmem:[#allocation5 + $0xbe0] sm:$0xf0] }
 0x14a   :  { %v9152_v1 = vld [vmem:[#allocation5 + $0xdc] sm:$0xf0]  ;;  %v7563_v43 = vor.u32 %v9496_v34, %v7560_v50  ;;  %v8008_v53 = vld [vmem:[#allocation5 + $0xf60] sm:$0xf0] }
 0x14b   :  { %3655 = vmatpush.bf16.msra.mxu2 %v7303_v44  ;;  %v6662_v2 = vld [vmem:[#allocation5 + $0x4a0] sm:$0xf]  ;;  %3630 = vmatpush.bf16.msra.mxu0 %v6215_v58  ;;  %v6151_v13 = vor.u32 %v9152_v1, %v6150_v63  ;;  %v9224_v44 = vld [vmem:[#allocation5 + $0x324] sm:$0xf] }
 0x14c   :  { %v9280_v5 = vld [vmem:[#allocation5 + $0x4dc] sm:$0xf0]  ;;  %v6475_v54 = vor.u32 %v9224_v44, %v6472_v45  ;;  %v9208_v57 = vld [vmem:[#allocation5 + $0x2a4] sm:$0xf] }
 0x14d   :  { %3668 = vmatpush.bf16.msra.mxu3 %v7815_v49  ;;  %v7174_v7 = vld [vmem:[#allocation5 + $0x8a0] sm:$0xf]  ;;  %3643 = vmatpush.bf16.msra.mxu1 %v6727_v61  ;;  %v6663_v16 = vor.u32 %v9280_v5, %v6662_v2  ;;  %v9480_v49 = vld [vmem:[#allocation5 + $0xb24] sm:$0xf]  ;;  %v8011_v61 = vor.u32 %v9608_v52, %v8008_v53 }
 0x14e   :  { %v9408_v10 = vld [vmem:[#allocation5 + $0x8dc] sm:$0xf0]  ;;  %v7499_v56 = vor.u32 %v9480_v49, %v7496_v51  ;;  %v6408_v58 = vld [vmem:[#allocation5 + $0x2e0] sm:$0xf0] }
 0x14f   :  { %v7686_v11 = vld [vmem:[#allocation5 + $0xca0] sm:$0xf]  ;;  %3656 = vmatpush.bf16.msra.mxu2 %v7239_v62  ;;  %v7175_v17 = vor.u32 %v9408_v10, %v7174_v7  ;;  %3631 = vmatpush.bf16.msra.mxu0 %v6151_v13  ;;  %v6920_v62 = vld [vmem:[#allocation5 + $0x6e0] sm:$0xf0] }
 0x150   :  { %v9536_v12 = vld [vmem:[#allocation5 + $0xcdc] sm:$0xf0]  ;;  %v9464_v63 = vld [vmem:[#allocation5 + $0xaa4] sm:$0xf]  ;;  %v6923_v7 = vor.u32 %v9336_v60, %v6920_v62 }
 0x151   :  { %v6086_v14 = vld [vmem:[#allocation5 + $0x20] sm:$0xf]  ;;  %3669 = vmatpush.bf16.msra.mxu3 %v7751_v4  ;;  %v7687_v23 = vor.u32 %v9536_v12, %v7686_v11  ;;  %3644 = vmatpush.bf16.msra.mxu1 %v6663_v16  ;;  %v7432_v1 = vld [vmem:[#allocation5 + $0xae0] sm:$0xf0]  ;;  %v6411_v4 = vor.u32 %v9208_v57, %v6408_v58 }
 0x152   :  { %v9136_v15 = vld [vmem:[#allocation5 + $0x5c] sm:$0xf0]  ;;  %v9592_v2 = vld [vmem:[#allocation5 + $0xea4] sm:$0xf]  ;;  %v7435_v10 = vor.u32 %v9464_v63, %v7432_v1 }
 0x153   :  { %v6598_v19 = vld [vmem:[#allocation5 + $0x420] sm:$0xf]  ;;  %v6087_v32 = vor.u32 %v9136_v15, %v6086_v14  ;;  %3657 = vmatpush.bf16.msra.mxu2 %v7175_v17  ;;  %v9192_v5 = vld [vmem:[#allocation5 + $0x224] sm:$0xf]  ;;  %v7947_v15 = vor.u32 %v9592_v2, %v7944_v3 }
 0x154   :  { %v9264_v20 = vld [vmem:[#allocation5 + $0x45c] sm:$0xf0]  ;;  %v6344_v11 = vld [vmem:[#allocation5 + $0x260] sm:$0xf0] }
 0x155   :  { %v7110_v21 = vld [vmem:[#allocation5 + $0x820] sm:$0xf]  ;;  %v6599_v35 = vor.u32 %v9264_v20, %v6598_v19  ;;  %3670 = vmatpush.bf16.msra.mxu3 %v7687_v23  ;;  %3632 = vmatpush.bf16.msra.mxu0 %v6087_v32  ;;  %v9320_v12 = vld [vmem:[#allocation5 + $0x624] sm:$0xf]  ;;  %v6347_v22 = vor.u32 %v9192_v5, %v6344_v11  ;;  %v3426_v23 = vpop.f32.mrf.mxu0  ;;  %v3439_v31 = vpop.f32.mrf.mxu1 }
 0x156   :  { %v9392_v24 = vld [vmem:[#allocation5 + $0x85c] sm:$0xf0]  ;;  %v6856_v16 = vld [vmem:[#allocation5 + $0x660] sm:$0xf0] }
 0x157   :  { %v7622_v26 = vld [vmem:[#allocation5 + $0xc20] sm:$0xf]  ;;  %v7111_v36 = vor.u32 %v9392_v24, %v7110_v21  ;;  %3645 = vmatpush.bf16.msra.mxu1 %v6599_v35  ;;  %v9448_v17 = vld [vmem:[#allocation5 + $0xa24] sm:$0xf]  ;;  %v6859_v24 = vor.u32 %v9320_v12, %v6856_v16 }
 0x158   :  { %v9520_v27 = vld [vmem:[#allocation5 + $0xc5c] sm:$0xf0]  ;;  %3633 = vmatmul.bf16.vlgmr.msra.gmra.mxu0 %v10117_v18  ;;  %v7368_v19 = vld [vmem:[#allocation5 + $0xa60] sm:$0xf0] }
 0x159   :  { %v7623_v39 = vor.u32 %v9520_v27, %v7622_v26  ;;  %3658 = vmatpush.bf16.msra.mxu2 %v7111_v36  ;;  %3677 = vmatpush.bf16.msrb.mxu0 %v6539_v40  ;;  %v10169_v13 = vld [vmem:[#allocation7] sm:$0xff]  ;;  %v7371_v26 = vor.u32 %v9448_v17, %v7368_v19 }
 0x15a   :  { %3646 = vmatmul.bf16.vlgmr.msra.gmra.mxu1 %v10119_v25  ;;  %v621_v14 = vperm.slane %v10169_v13, 4  ;;  %v9576_v20 = vld [vmem:[#allocation5 + $0xe24] sm:$0xf] }
 0x15b   :  { %3671 = vmatpush.bf16.msra.mxu3 %v7623_v39  ;;  %3690 = vmatpush.bf16.msrb.mxu1 %v7051_v42  ;;  %v7880_v21 = vld [vmem:[#allocation5 + $0xe60] sm:$0xf0] }
 0x15c   :  { %3659 = vmatmul.bf16.vlgmr.msra.gmra.mxu2 %v10111_v8  ;;  %v9176_v27 = vld [vmem:[#allocation5 + $0x1a4] sm:$0xf]  ;;  %v3427_v30 = vadd.f32 %v3426_v23, %v621_v14  ;;  %v7883_v32 = vor.u32 %v9576_v20, %v7880_v21 }
 0x15d   :  { %3703 = vmatpush.bf16.msrb.mxu2 %v7563_v43  ;;  %3678 = vmatpush.bf16.msrb.mxu0 %v6475_v54  ;;  %v6280_v28 = vld [vmem:[#allocation5 + $0x1e0] sm:$0xf0]  ;;  %v3452_v45 = vpop.f32.mrf.mxu2  ;;  %v3428_v57 = vpop.f32.mrf.mxu0 }
 0x15e   :  { %3672 = vmatmul.bf16.vlgmr.msra.gmra.mxu3 %v10113_v9  ;;  %v9304_v29 = vld [vmem:[#allocation5 + $0x5a4] sm:$0xf]  ;;  %v3440_v37 = vadd.f32 %v3439_v31, %v3427_v30  ;;  %v6283_v38 = vor.u32 %v9176_v27, %v6280_v28  ;;  %v3441_v1 = vpop.f32.mrf.mxu1  ;;  %v6542_v28 = vld [vmem:[#allocation5 + $0x3a8] sm:$0xf] }
 0x15f   :  { %3716 = vmatpush.bf16.msrb.mxu3 %v8075_v47  ;;  %3691 = vmatpush.bf16.msrb.mxu1 %v6987_v55  ;;  %v6792_v33 = vld [vmem:[#allocation5 + $0x5e0] sm:$0xf0]  ;;  %v3465_v52 = vpop.f32.mrf.mxu3  ;;  %v7054_v30 = vld [vmem:[#allocation5 + $0x7a8] sm:$0xf] }
 0x160   :  { %v9432_v34 = vld [vmem:[#allocation5 + $0x9a4] sm:$0xf]  ;;  %v6795_v39 = vor.u32 %v9304_v29, %v6792_v33  ;;  %v3453_v51 = vadd.f32 %v3452_v45, %v3440_v37  ;;  %v9249_v29 = vld [vmem:[#allocation5 + $0x3e4] sm:$0xf0] }
 0x161   :  { %3704 = vmatpush.bf16.msrb.mxu2 %v7499_v56  ;;  %3679 = vmatpush.bf16.msrb.mxu0 %v6411_v4  ;;  %v7304_v50 = vld [vmem:[#allocation5 + $0x9e0] sm:$0xf0]  ;;  %v7566_v33 = vld [vmem:[#allocation5 + $0xba8] sm:$0xf] }
 0x162   :  { %v9560_v35 = vld [vmem:[#allocation5 + $0xda4] sm:$0xf]  ;;  %v7307_v40 = vor.u32 %v9432_v34, %v7304_v50  ;;  %v10172_v56 = vadd.f32 %v3465_v52, %v3453_v51  ;;  %v9505_v34 = vld [vmem:[#allocation5 + $0xbe4] sm:$0xf0] }
 0x163   :  { %3717 = vmatpush.bf16.msrb.mxu3 %v8011_v61  ;;  %3692 = vmatpush.bf16.msrb.mxu1 %v6923_v7  ;;  %v7816_v36 = vld [vmem:[#allocation5 + $0xde0] sm:$0xf0]  ;;  %v9633_v37 = vld [vmem:[#allocation5 + $0xfe4] sm:$0xf0] }
 0x164   :  { %v9160_v42 = vld [vmem:[#allocation5 + $0x124] sm:$0xf]  ;;  %v7819_v46 = vor.u32 %v9560_v35, %v7816_v36  ;;  %v8078_v36 = vld [vmem:[#allocation5 + $0xfa8] sm:$0xf] }
 0x165   :  { %3705 = vmatpush.bf16.msrb.mxu2 %v7435_v10  ;;  %3680 = vmatpush.bf16.msrb.mxu0 %v6347_v22  ;;  %v6216_v43 = vld [vmem:[#allocation5 + $0x160] sm:$0xf0]  ;;  %v3454_v21 = vpop.f32.mrf.mxu2  ;;  %v6990_v45 = vld [vmem:[#allocation5 + $0x728] sm:$0xf] }
 0x166   :  { %v9288_v44 = vld [vmem:[#allocation5 + $0x524] sm:$0xf]  ;;  %v6219_v55 = vor.u32 %v9160_v42, %v6216_v43  ;;  %v7567_v42 = vor.u32 %v9505_v34, %v7566_v33  ;;  %v6478_v43 = vld [vmem:[#allocation5 + $0x328] sm:$0xf] }
 0x167   :  { %3718 = vmatpush.bf16.msrb.mxu3 %v7947_v15  ;;  %3693 = vmatpush.bf16.msrb.mxu1 %v6859_v24  ;;  %v6728_v47 = vld [vmem:[#allocation5 + $0x560] sm:$0xf0]  ;;  %v3467_v27 = vpop.f32.mrf.mxu3  ;;  %v8014_v51 = vld [vmem:[#allocation5 + $0xf28] sm:$0xf] }
 0x168   :  { %v7240_v49 = vld [vmem:[#allocation5 + $0x960] sm:$0xf0]  ;;  %v6731_v58 = vor.u32 %v9288_v44, %v6728_v47  ;;  %v9233_v44 = vld [vmem:[#allocation5 + $0x364] sm:$0xf0] }
 0x169   :  { %3706 = vmatpush.bf16.msrb.mxu2 %v7371_v26  ;;  %v9544_v53 = vld [vmem:[#allocation5 + $0xd24] sm:$0xf]  ;;  %3681 = vmatpush.bf16.msrb.mxu0 %v6283_v38  ;;  %v7243_v60 = vor.u32 %v9416_v48, %v7240_v49  ;;  %v9361_v47 = vld [vmem:[#allocation5 + $0x764] sm:$0xf0] }
 0x16a   :  { %v7752_v54 = vld [vmem:[#allocation5 + $0xd60] sm:$0xf0]  ;;  %v7502_v48 = vld [vmem:[#allocation5 + $0xb28] sm:$0xf] }
 0x16b   :  { %3719 = vmatpush.bf16.msrb.mxu3 %v7883_v32  ;;  %3694 = vmatpush.bf16.msrb.mxu1 %v6795_v39  ;;  %v9144_v61 = vld [vmem:[#allocation5 + $0xa4] sm:$0xf]  ;;  %v7755_v2 = vor.u32 %v9544_v53, %v7752_v54  ;;  %v9377_v32 = vld [vmem:[#allocation5 + $0x7e4] sm:$0xf0]  ;;  %v6543_v39 = vor.u32 %v9249_v29, %v6542_v28  ;;  %v6479_v53 = vor.u32 %v9233_v44, %v6478_v43 }
 0x16c   :  { %v6152_v62 = vld [vmem:[#allocation5 + $0xe0] sm:$0xf0]  ;;  %v9489_v49 = vld [vmem:[#allocation5 + $0xb64] sm:$0xf0]  ;;  %v6991_v54 = vor.u32 %v9361_v47, %v6990_v45 }
 0x16d   :  { %3707 = vmatpush.bf16.msrb.mxu2 %v7307_v40  ;;  %v9272_v63 = vld [vmem:[#allocation5 + $0x4a4] sm:$0xf]  ;;  %3682 = vmatpush.bf16.msrb.mxu0 %v6219_v55  ;;  %v6155_v11 = vor.u32 %v9144_v61, %v6152_v62  ;;  %v7055_v40 = vor.u32 %v9377_v32, %v7054_v30  ;;  %v9617_v52 = vld [vmem:[#allocation5 + $0xf64] sm:$0xf0]  ;;  %v7503_v55 = vor.u32 %v9489_v49, %v7502_v48 }
 0x16e   :  { %v6664_v3 = vld [vmem:[#allocation5 + $0x4e0] sm:$0xf0]  ;;  %v6414_v57 = vld [vmem:[#allocation5 + $0x2a8] sm:$0xf]  ;;  %v8015_v61 = vor.u32 %v9617_v52, %v8014_v51 }
 0x16f   :  { %3720 = vmatpush.bf16.msrb.mxu3 %v7819_v46  ;;  %v9400_v4 = vld [vmem:[#allocation5 + $0x8a4] sm:$0xf]  ;;  %3695 = vmatpush.bf16.msrb.mxu1 %v6731_v58  ;;  %v6667_v15 = vor.u32 %v9272_v63, %v6664_v3  ;;  %v8079_v46 = vor.u32 %v9633_v37, %v8078_v36  ;;  %v9217_v58 = vld [vmem:[#allocation5 + $0x2e4] sm:$0xf0] }
 0x170   :  { %v7176_v5 = vld [vmem:[#allocation5 + $0x8e0] sm:$0xf0]  ;;  %v9345_v62 = vld [vmem:[#allocation5 + $0x6e4] sm:$0xf0] }
 0x171   :  { %v9528_v7 = vld [vmem:[#allocation5 + $0xca4] sm:$0xf]  ;;  %3708 = vmatpush.bf16.msrb.mxu2 %v7243_v60  ;;  %v7179_v16 = vor.u32 %v9400_v4, %v7176_v5  ;;  %3683 = vmatpush.bf16.msrb.mxu0 %v6155_v11  ;;  %v6926_v60 = vld [vmem:[#allocation5 + $0x6a8] sm:$0xf]  ;;  %v6415_v4 = vor.u32 %v9217_v58, %v6414_v57 }
 0x172   :  { %v7688_v10 = vld [vmem:[#allocation5 + $0xce0] sm:$0xf0]  ;;  %v7438_v63 = vld [vmem:[#allocation5 + $0xaa8] sm:$0xf] }
 0x173   :  { %v9128_v12 = vld [vmem:[#allocation5 + $0x24] sm:$0xf]  ;;  %3721 = vmatpush.bf16.msrb.mxu3 %v7755_v2  ;;  %v7691_v22 = vor.u32 %v9528_v7, %v7688_v10  ;;  %3696 = vmatpush.bf16.msrb.mxu1 %v6667_v15  ;;  %v9473_v1 = vld [vmem:[#allocation5 + $0xae4] sm:$0xf0]  ;;  %v6927_v7 = vor.u32 %v9345_v62, %v6926_v60 }
 0x174   :  { %v6088_v14 = vld [vmem:[#allocation5 + $0x60] sm:$0xf0]  ;;  %v7950_v2 = vld [vmem:[#allocation5 + $0xea8] sm:$0xf]  ;;  %v7439_v10 = vor.u32 %v9473_v1, %v7438_v63 }
 0x175   :  { %v9256_v17 = vld [vmem:[#allocation5 + $0x424] sm:$0xf]  ;;  %v6091_v31 = vor.u32 %v9128_v12, %v6088_v14  ;;  %3709 = vmatpush.bf16.msrb.mxu2 %v7179_v16  ;;  %v9601_v3 = vld [vmem:[#allocation5 + $0xee4] sm:$0xf0]  ;;  %v622_v14 = vperm.slane %v10169_v13, 5 }
 0x176   :  { %v6600_v19 = vld [vmem:[#allocation5 + $0x460] sm:$0xf0]  ;;  %v6350_v5 = vld [vmem:[#allocation5 + $0x228] sm:$0xf]  ;;  %v7951_v15 = vor.u32 %v9601_v3, %v7950_v2 }
 0x177   :  { %v9384_v20 = vld [vmem:[#allocation5 + $0x824] sm:$0xf]  ;;  %v6603_v50 = vor.u32 %v9256_v17, %v6600_v19  ;;  %3722 = vmatpush.bf16.msrb.mxu3 %v7691_v22  ;;  %3684 = vmatpush.bf16.msrb.mxu0 %v6091_v31  ;;  %v9201_v11 = vld [vmem:[#allocation5 + $0x264] sm:$0xf0]  ;;  %v3491_v31 = vpop.f32.mrf.mxu1 }
 0x178   :  { %v7112_v23 = vld [vmem:[#allocation5 + $0x860] sm:$0xf0]  ;;  %v6862_v12 = vld [vmem:[#allocation5 + $0x628] sm:$0xf]  ;;  %v6351_v22 = vor.u32 %v9201_v11, %v6350_v5 }
 0x179   :  { %v9512_v24 = vld [vmem:[#allocation5 + $0xc24] sm:$0xf]  ;;  %v7115_v35 = vor.u32 %v9384_v20, %v7112_v23  ;;  %3697 = vmatpush.bf16.msrb.mxu1 %v6603_v50  ;;  %v9329_v16 = vld [vmem:[#allocation5 + $0x664] sm:$0xf0]  ;;  %v3478_v23 = vpop.f32.mrf.mxu0 }
 0x17a   :  { %v7624_v26 = vld [vmem:[#allocation5 + $0xc60] sm:$0xf0]  ;;  %3685 = vmatmul.bf16.vlgmr.msrb.gmra.mxu0 %v10117_v18  ;;  %v7374_v17 = vld [vmem:[#allocation5 + $0xa28] sm:$0xf]  ;;  %v3479_v30 = vadd.f32 %v3478_v23, %v622_v14 }
 0x17b   :  { %v7627_v38 = vor.u32 %v9512_v24, %v7624_v26  ;;  %3710 = vmatpush.bf16.msrb.mxu2 %v7115_v35  ;;  %3729 = vmatpush.bf16.msra.mxu0 %v6543_v39  ;;  %v9457_v19 = vld [vmem:[#allocation5 + $0xa64] sm:$0xf0]  ;;  %v6863_v24 = vor.u32 %v9329_v16, %v6862_v12 }
 0x17c   :  { %3698 = vmatmul.bf16.vlgmr.msrb.gmra.mxu1 %v10119_v25  ;;  %v7886_v20 = vld [vmem:[#allocation5 + $0xe28] sm:$0xf]  ;;  %v7375_v26 = vor.u32 %v9457_v19, %v7374_v17  ;;  %v3492_v37 = vadd.f32 %v3491_v31, %v3479_v30  ;;  %v6544_v30 = vld [vmem:[#allocation5 + $0x3e8] sm:$0xf0] }
 0x17d   :  { %3723 = vmatpush.bf16.msrb.mxu3 %v7627_v38  ;;  %3742 = vmatpush.bf16.msra.mxu1 %v7055_v40  ;;  %v9585_v21 = vld [vmem:[#allocation5 + $0xe64] sm:$0xf0]  ;;  %v3504_v45 = vpop.f32.mrf.mxu2  ;;  %v9369_v31 = vld [vmem:[#allocation5 + $0x7ac] sm:$0xf] }
 0x17e   :  { %3711 = vmatmul.bf16.vlgmr.msrb.gmra.mxu2 %v10111_v8  ;;  %v6286_v27 = vld [vmem:[#allocation5 + $0x1a8] sm:$0xf]  ;;  %v7887_v32 = vor.u32 %v9585_v21, %v7886_v20  ;;  %v3505_v51 = vadd.f32 %v3504_v45, %v3492_v37  ;;  %v9625_v37 = vld [vmem:[#allocation5 + $0xfac] sm:$0xf] }
 0x17f   :  { %3755 = vmatpush.bf16.msra.mxu2 %v7567_v42  ;;  %3730 = vmatpush.bf16.msra.mxu0 %v6479_v53  ;;  %v9185_v28 = vld [vmem:[#allocation5 + $0x1e4] sm:$0xf0]  ;;  %v3517_v52 = vpop.f32.mrf.mxu3  ;;  %v3493_v2 = vpop.f32.mrf.mxu1  ;;  %v6480_v45 = vld [vmem:[#allocation5 + $0x368] sm:$0xf0] }
 0x180   :  { %3724 = vmatmul.bf16.vlgmr.msrb.gmra.mxu3 %v10113_v9  ;;  %v6798_v29 = vld [vmem:[#allocation5 + $0x5a8] sm:$0xf]  ;;  %v6287_v38 = vor.u32 %v9185_v28, %v6286_v27  ;;  %v10179_v57 = vadd.f32 %v3517_v52, %v3505_v51  ;;  %v7504_v51 = vld [vmem:[#allocation5 + $0xb68] sm:$0xf0] }
 0x181   :  { %3768 = vmatpush.bf16.msra.mxu3 %v8079_v46  ;;  %3743 = vmatpush.bf16.msra.mxu1 %v6991_v54  ;;  %v9313_v33 = vld [vmem:[#allocation5 + $0x5e4] sm:$0xf0]  ;;  %v3480_v58 = vpop.f32.mrf.mxu0  ;;  %v9609_v52 = vld [vmem:[#allocation5 + $0xf2c] sm:$0xf] }
 0x182   :  { %v7310_v34 = vld [vmem:[#allocation5 + $0x9a8] sm:$0xf]  ;;  %v6799_v39 = vor.u32 %v9313_v33, %v6798_v29  ;;  %v9241_v29 = vld [vmem:[#allocation5 + $0x3ac] sm:$0xf] }
 0x183   :  { %3756 = vmatpush.bf16.msra.mxu2 %v7503_v55  ;;  %3731 = vmatpush.bf16.msra.mxu0 %v6415_v4  ;;  %v9441_v50 = vld [vmem:[#allocation5 + $0x9e4] sm:$0xf0]  ;;  %v7056_v33 = vld [vmem:[#allocation5 + $0x7e8] sm:$0xf0] }
 0x184   :  { %v7822_v35 = vld [vmem:[#allocation5 + $0xda8] sm:$0xf]  ;;  %v7311_v40 = vor.u32 %v9441_v50, %v7310_v34  ;;  %v9497_v34 = vld [vmem:[#allocation5 + $0xbac] sm:$0xf] }
 0x185   :  { %3769 = vmatpush.bf16.msra.mxu3 %v8015_v61  ;;  %3744 = vmatpush.bf16.msra.mxu1 %v6927_v7  ;;  %v9569_v36 = vld [vmem:[#allocation5 + $0xde4] sm:$0xf0]  ;;  %v7568_v50 = vld [vmem:[#allocation5 + $0xbe8] sm:$0xf0] }
 0x186   :  { %v6222_v42 = vld [vmem:[#allocation5 + $0x128] sm:$0xf]  ;;  %v7823_v46 = vor.u32 %v9569_v36, %v7822_v35  ;;  %v9465_v2 = vld [vmem:[#allocation5 + $0xaac] sm:$0xf] }
 0x187   :  { %3757 = vmatpush.bf16.msra.mxu2 %v7439_v10  ;;  %3732 = vmatpush.bf16.msra.mxu0 %v6351_v22  ;;  %v9169_v43 = vld [vmem:[#allocation5 + $0x164] sm:$0xf0]  ;;  %v3506_v22 = vpop.f32.mrf.mxu2  ;;  %v3519_v28 = vpop.f32.mrf.mxu3 }
 0x188   :  { %v6734_v44 = vld [vmem:[#allocation5 + $0x528] sm:$0xf]  ;;  %v6223_v55 = vor.u32 %v9169_v43, %v6222_v42  ;;  %v7059_v42 = vor.u32 %v9369_v31, %v7056_v33  ;;  %v7571_v43 = vor.u32 %v9497_v34, %v7568_v50  ;;  %v9577_v22 = vld [vmem:[#allocation5 + $0xe2c] sm:$0xf] }
 0x189   :  { %3770 = vmatpush.bf16.msra.mxu3 %v7951_v15  ;;  %3745 = vmatpush.bf16.msra.mxu1 %v6863_v24  ;;  %v9297_v47 = vld [vmem:[#allocation5 + $0x564] sm:$0xf0]  ;;  %v9305_v31 = vld [vmem:[#allocation5 + $0x5ac] sm:$0xf] }
 0x18a   :  { %v7246_v48 = vld [vmem:[#allocation5 + $0x928] sm:$0xf]  ;;  %v6735_v60 = vor.u32 %v9297_v47, %v6734_v44  ;;  %v9225_v44 = vld [vmem:[#allocation5 + $0x32c] sm:$0xf] }
 0x18b   :  { %3758 = vmatpush.bf16.msra.mxu2 %v7375_v26  ;;  %v9425_v49 = vld [vmem:[#allocation5 + $0x964] sm:$0xf0]  ;;  %3733 = vmatpush.bf16.msra.mxu0 %v6287_v38  ;;  %v8080_v38 = vld [vmem:[#allocation5 + $0xfe8] sm:$0xf0] }
 0x18c   :  { %v7758_v53 = vld [vmem:[#allocation5 + $0xd28] sm:$0xf]  ;;  %v7247_v61 = vor.u32 %v9425_v49, %v7246_v48  ;;  %v8083_v47 = vor.u32 %v9625_v37, %v8080_v38  ;;  %v6992_v48 = vld [vmem:[#allocation5 + $0x768] sm:$0xf0] }
 0x18d   :  { %3771 = vmatpush.bf16.msra.mxu3 %v7887_v32  ;;  %v9553_v54 = vld [vmem:[#allocation5 + $0xd64] sm:$0xf0]  ;;  %3746 = vmatpush.bf16.msra.mxu1 %v6799_v39  ;;  %v9481_v49 = vld [vmem:[#allocation5 + $0xb2c] sm:$0xf] }
 0x18e   :  { %v6158_v62 = vld [vmem:[#allocation5 + $0xa8] sm:$0xf]  ;;  %v7759_v3 = vor.u32 %v9553_v54, %v7758_v53  ;;  %v8016_v53 = vld [vmem:[#allocation5 + $0xf68] sm:$0xf0]  ;;  %v6483_v54 = vor.u32 %v9225_v44, %v6480_v45  ;;  %v7507_v58 = vor.u32 %v9481_v49, %v7504_v51 }
 0x18f   :  { %3759 = vmatpush.bf16.msra.mxu2 %v7311_v40  ;;  %v9153_v63 = vld [vmem:[#allocation5 + $0xe4] sm:$0xf0]  ;;  %3734 = vmatpush.bf16.msra.mxu0 %v6223_v55  ;;  %v6547_v40 = vor.u32 %v9241_v29, %v6544_v30  ;;  %v9177_v29 = vld [vmem:[#allocation5 + $0x1ac] sm:$0xf] }
 0x190   :  { %v6670_v1 = vld [vmem:[#allocation5 + $0x4a8] sm:$0xf]  ;;  %v6159_v12 = vor.u32 %v9153_v63, %v6158_v62  ;;  %v9337_v62 = vld [vmem:[#allocation5 + $0x6ac] sm:$0xf]  ;;  %v8019_v63 = vor.u32 %v9609_v52, %v8016_v53 }
 0x191   :  { %3772 = vmatpush.bf16.msra.mxu3 %v7823_v46  ;;  %v9281_v4 = vld [vmem:[#allocation5 + $0x4e4] sm:$0xf0]  ;;  %3747 = vmatpush.bf16.msra.mxu1 %v6735_v60  ;;  %v9353_v46 = vld [vmem:[#allocation5 + $0x72c] sm:$0xf] }
 0x192   :  { %v7182_v5 = vld [vmem:[#allocation5 + $0x8a8] sm:$0xf]  ;;  %v6671_v16 = vor.u32 %v9281_v4, %v6670_v1  ;;  %v6995_v55 = vor.u32 %v9353_v46, %v6992_v48  ;;  %v9209_v60 = vld [vmem:[#allocation5 + $0x2ac] sm:$0xf] }
 0x193   :  { %v9409_v7 = vld [vmem:[#allocation5 + $0x8e4] sm:$0xf0]  ;;  %3760 = vmatpush.bf16.msra.mxu2 %v7247_v61  ;;  %3735 = vmatpush.bf16.msra.mxu0 %v6159_v12  ;;  %v6416_v61 = vld [vmem:[#allocation5 + $0x2e8] sm:$0xf0] }
 0x194   :  { %v7694_v10 = vld [vmem:[#allocation5 + $0xca8] sm:$0xf]  ;;  %v7183_v17 = vor.u32 %v9409_v7, %v7182_v5  ;;  %v6928_v1 = vld [vmem:[#allocation5 + $0x6e8] sm:$0xf0]  ;;  %v6419_v7 = vor.u32 %v9209_v60, %v6416_v61 }
 0x195   :  { %v9537_v11 = vld [vmem:[#allocation5 + $0xce4] sm:$0xf0]  ;;  %3773 = vmatpush.bf16.msra.mxu3 %v7759_v3  ;;  %3748 = vmatpush.bf16.msra.mxu1 %v6671_v16  ;;  %v7440_v3 = vld [vmem:[#allocation5 + $0xae8] sm:$0xf0]  ;;  %v623_v16 = vperm.slane %v10169_v13, 6  ;;  %v3543_v33 = vpop.f32.mrf.mxu1 }
 0x196   :  { %v6094_v14 = vld [vmem:[#allocation5 + $0x28] sm:$0xf]  ;;  %v7695_v23 = vor.u32 %v9537_v11, %v7694_v10  ;;  %v9593_v4 = vld [vmem:[#allocation5 + $0xeac] sm:$0xf]  ;;  %v6931_v11 = vor.u32 %v9337_v62, %v6928_v1  ;;  %v7443_v12 = vor.u32 %v9465_v2, %v7440_v3 }
 0x197   :  { %v9137_v15 = vld [vmem:[#allocation5 + $0x64] sm:$0xf0]  ;;  %3761 = vmatpush.bf16.msra.mxu2 %v7183_v17  ;;  %v7952_v5 = vld [vmem:[#allocation5 + $0xee8] sm:$0xf0] }
 0x198   :  { %v6606_v19 = vld [vmem:[#allocation5 + $0x428] sm:$0xf]  ;;  %v6095_v32 = vor.u32 %v9137_v15, %v6094_v14  ;;  %v9193_v10 = vld [vmem:[#allocation5 + $0x22c] sm:$0xf]  ;;  %v7955_v17 = vor.u32 %v9593_v4, %v7952_v5 }
 0x199   :  { %v9265_v20 = vld [vmem:[#allocation5 + $0x464] sm:$0xf0]  ;;  %3774 = vmatpush.bf16.msra.mxu3 %v7695_v23  ;;  %v6352_v14 = vld [vmem:[#allocation5 + $0x268] sm:$0xf0] }
 0x19a   :  { %v7118_v21 = vld [vmem:[#allocation5 + $0x828] sm:$0xf]  ;;  %v6607_v35 = vor.u32 %v9265_v20, %v6606_v19  ;;  %3736 = vmatpush.bf16.msra.mxu0 %v6095_v32  ;;  %v9321_v15 = vld [vmem:[#allocation5 + $0x62c] sm:$0xf] }
 0x19b   :  { %v9393_v24 = vld [vmem:[#allocation5 + $0x864] sm:$0xf0]  ;;  %v6864_v19 = vld [vmem:[#allocation5 + $0x668] sm:$0xf0] }
 0x19c   :  { %v7630_v26 = vld [vmem:[#allocation5 + $0xc28] sm:$0xf]  ;;  %v7119_v36 = vor.u32 %v9393_v24, %v7118_v21  ;;  %3749 = vmatpush.bf16.msra.mxu1 %v6607_v35  ;;  %v9449_v20 = vld [vmem:[#allocation5 + $0xa2c] sm:$0xf]  ;;  %v6355_v24 = vor.u32 %v9193_v10, %v6352_v14 }
 0x19d   :  { %v9521_v27 = vld [vmem:[#allocation5 + $0xc64] sm:$0xf0]  ;;  %3737 = vmatmul.bf16.vlgmr.msra.gmra.mxu0 %v10117_v18  ;;  %v7376_v21 = vld [vmem:[#allocation5 + $0xa68] sm:$0xf0]  ;;  %v3545_v5 = vpop.f32.mrf.mxu1 }
 0x19e   :  { %v7631_v39 = vor.u32 %v9521_v27, %v7630_v26  ;;  %3762 = vmatpush.bf16.msra.mxu2 %v7119_v36  ;;  %3781 = vmatpush.bf16.msrb.mxu0 %v6547_v40  ;;  %v7888_v23 = vld [vmem:[#allocation5 + $0xe68] sm:$0xf0]  ;;  %v3530_v26 = vpop.f32.mrf.mxu0  ;;  %v6867_v27 = vor.u32 %v9321_v15, %v6864_v19  ;;  %v7379_v28 = vor.u32 %v9449_v20, %v7376_v21  ;;  %v9346_v5 = vld [vmem:[#allocation5 + $0x6ec] sm:$0xf0] }
 0x19f   :  { %3750 = vmatmul.bf16.vlgmr.msra.gmra.mxu1 %v10119_v25  ;;  %v6288_v30 = vld [vmem:[#allocation5 + $0x1e8] sm:$0xf0]  ;;  %v3531_v32 = vadd.f32 %v3530_v26, %v623_v16  ;;  %v7891_v34 = vor.u32 %v9577_v22, %v7888_v23 }
 0x1a0   :  { %3775 = vmatpush.bf16.msra.mxu3 %v7631_v39  ;;  %3794 = vmatpush.bf16.msrb.mxu1 %v7059_v42  ;;  %v6800_v50 = vld [vmem:[#allocation5 + $0x5e8] sm:$0xf0]  ;;  %v6291_v40 = vor.u32 %v9177_v29, %v6288_v30 }
 0x1a1   :  { %3763 = vmatmul.bf16.vlgmr.msra.gmra.mxu2 %v10111_v8  ;;  %v9433_v35 = vld [vmem:[#allocation5 + $0x9ac] sm:$0xf]  ;;  %v3544_v39 = vadd.f32 %v3543_v33, %v3531_v32  ;;  %v6803_v42 = vor.u32 %v9305_v31, %v6800_v50  ;;  %v6550_v32 = vld [vmem:[#allocation5 + $0x3b0] sm:$0xf] }
 0x1a2   :  { %3807 = vmatpush.bf16.msrb.mxu2 %v7571_v43  ;;  %3782 = vmatpush.bf16.msrb.mxu0 %v6483_v54  ;;  %v7312_v36 = vld [vmem:[#allocation5 + $0x9e8] sm:$0xf0]  ;;  %v3569_v54 = vpop.f32.mrf.mxu3  ;;  %v9250_v33 = vld [vmem:[#allocation5 + $0x3ec] sm:$0xf0] }
 0x1a3   :  { %3776 = vmatmul.bf16.vlgmr.msra.gmra.mxu3 %v10113_v9  ;;  %v9561_v37 = vld [vmem:[#allocation5 + $0xdac] sm:$0xf]  ;;  %v7315_v43 = vor.u32 %v9433_v35, %v7312_v36  ;;  %v9378_v35 = vld [vmem:[#allocation5 + $0x7ec] sm:$0xf0] }
 0x1a4   :  { %3820 = vmatpush.bf16.msrb.mxu3 %v8083_v47  ;;  %3795 = vmatpush.bf16.msrb.mxu1 %v6995_v55  ;;  %v7824_v38 = vld [vmem:[#allocation5 + $0xde8] sm:$0xf0]  ;;  %v3556_v47 = vpop.f32.mrf.mxu2  ;;  %v7574_v36 = vld [vmem:[#allocation5 + $0xbb0] sm:$0xf] }
 0x1a5   :  { %v9161_v44 = vld [vmem:[#allocation5 + $0x12c] sm:$0xf]  ;;  %v7827_v48 = vor.u32 %v9561_v37, %v7824_v38  ;;  %v3557_v53 = vadd.f32 %v3556_v47, %v3544_v39  ;;  %v9506_v37 = vld [vmem:[#allocation5 + $0xbec] sm:$0xf0] }
 0x1a6   :  { %3808 = vmatpush.bf16.msrb.mxu2 %v7507_v58  ;;  %3783 = vmatpush.bf16.msrb.mxu0 %v6419_v7  ;;  %v6224_v45 = vld [vmem:[#allocation5 + $0x168] sm:$0xf0]  ;;  %v3532_v62 = vpop.f32.mrf.mxu0  ;;  %v6486_v47 = vld [vmem:[#allocation5 + $0x330] sm:$0xf] }
 0x1a7   :  { %v9289_v46 = vld [vmem:[#allocation5 + $0x52c] sm:$0xf]  ;;  %v6227_v60 = vor.u32 %v9161_v44, %v6224_v45  ;;  %v10186_v61 = vadd.f32 %v3569_v54, %v3557_v53  ;;  %v6551_v44 = vor.u32 %v9250_v33, %v6550_v32  ;;  %v7510_v53 = vld [vmem:[#allocation5 + $0xb30] sm:$0xf] }
 0x1a8   :  { %3821 = vmatpush.bf16.msrb.mxu3 %v8019_v63  ;;  %3796 = vmatpush.bf16.msrb.mxu1 %v6931_v11  ;;  %v6736_v49 = vld [vmem:[#allocation5 + $0x568] sm:$0xf0]  ;;  %v9490_v54 = vld [vmem:[#allocation5 + $0xb6c] sm:$0xf0] }
 0x1a9   :  { %v9417_v51 = vld [vmem:[#allocation5 + $0x92c] sm:$0xf]  ;;  %v6739_v63 = vor.u32 %v9289_v46, %v6736_v49  ;;  %v7575_v46 = vor.u32 %v9506_v37, %v7574_v36  ;;  %v6998_v49 = vld [vmem:[#allocation5 + $0x730] sm:$0xf] }
 0x1aa   :  { %3809 = vmatpush.bf16.msrb.mxu2 %v7443_v12  ;;  %3784 = vmatpush.bf16.msrb.mxu0 %v6355_v24  ;;  %v7248_v52 = vld [vmem:[#allocation5 + $0x968] sm:$0xf0]  ;;  %v3571_v31 = vpop.f32.mrf.mxu3  ;;  %v6294_v33 = vld [vmem:[#allocation5 + $0x1b0] sm:$0xf] }
 0x1ab   :  { %v9545_v55 = vld [vmem:[#allocation5 + $0xd2c] sm:$0xf]  ;;  %v7251_v1 = vor.u32 %v9417_v51, %v7248_v52  ;;  %v9362_v52 = vld [vmem:[#allocation5 + $0x76c] sm:$0xf0] }
 0x1ac   :  { %3822 = vmatpush.bf16.msrb.mxu3 %v7955_v17  ;;  %3797 = vmatpush.bf16.msrb.mxu1 %v6867_v27  ;;  %v7760_v58 = vld [vmem:[#allocation5 + $0xd68] sm:$0xf0]  ;;  %v3558_v26 = vpop.f32.mrf.mxu2  ;;  %v6999_v62 = vor.u32 %v9362_v52, %v6998_v49  ;;  %v9314_v37 = vld [vmem:[#allocation5 + $0x5ec] sm:$0xf0] }
 0x1ad   :  { %v9145_v2 = vld [vmem:[#allocation5 + $0xac] sm:$0xf]  ;;  %v7763_v7 = vor.u32 %v9545_v55, %v7760_v58  ;;  %v8022_v55 = vld [vmem:[#allocation5 + $0xf30] sm:$0xf] }
 0x1ae   :  { %3810 = vmatpush.bf16.msrb.mxu2 %v7379_v28  ;;  %3785 = vmatpush.bf16.msrb.mxu0 %v6291_v40  ;;  %v6160_v3 = vld [vmem:[#allocation5 + $0xe8] sm:$0xf0]  ;;  %v8086_v40 = vld [vmem:[#allocation5 + $0xfb0] sm:$0xf] }
 0x1af   :  { %v9273_v4 = vld [vmem:[#allocation5 + $0x4ac] sm:$0xf]  ;;  %v6163_v16 = vor.u32 %v9145_v2, %v6160_v3  ;;  %v9618_v58 = vld [vmem:[#allocation5 + $0xf6c] sm:$0xf0] }
 0x1b0   :  { %3823 = vmatpush.bf16.msrb.mxu3 %v7891_v34  ;;  %3798 = vmatpush.bf16.msrb.mxu1 %v6803_v42  ;;  %v6672_v10 = vld [vmem:[#allocation5 + $0x4e8] sm:$0xf0]  ;;  %v7062_v34 = vld [vmem:[#allocation5 + $0x7b0] sm:$0xf] }
 0x1b1   :  { %v9401_v11 = vld [vmem:[#allocation5 + $0x8ac] sm:$0xf]  ;;  %v6675_v20 = vor.u32 %v9273_v4, %v6672_v10  ;;  %v9634_v42 = vld [vmem:[#allocation5 + $0xfec] sm:$0xf0]  ;;  %v7063_v45 = vor.u32 %v9378_v35, %v7062_v34  ;;  %v8023_v4 = vor.u32 %v9618_v58, %v8022_v55 }
 0x1b2   :  { %3811 = vmatpush.bf16.msrb.mxu2 %v7315_v43  ;;  %v7184_v12 = vld [vmem:[#allocation5 + $0x8e8] sm:$0xf0]  ;;  %3786 = vmatpush.bf16.msrb.mxu0 %v6227_v60  ;;  %v8087_v51 = vor.u32 %v9634_v42, %v8086_v40  ;;  %v9218_v2 = vld [vmem:[#allocation5 + $0x2ec] sm:$0xf0] }
 0x1b3   :  { %v9529_v14 = vld [vmem:[#allocation5 + $0xcac] sm:$0xf]  ;;  %v7187_v21 = vor.u32 %v9401_v11, %v7184_v12  ;;  %v6934_v3 = vld [vmem:[#allocation5 + $0x6b0] sm:$0xf] }
 0x1b4   :  { %3824 = vmatpush.bf16.msrb.mxu3 %v7827_v48  ;;  %v7696_v15 = vld [vmem:[#allocation5 + $0xce8] sm:$0xf0]  ;;  %3799 = vmatpush.bf16.msrb.mxu1 %v6739_v63  ;;  %v9234_v48 = vld [vmem:[#allocation5 + $0x36c] sm:$0xf0]  ;;  %v7511_v63 = vor.u32 %v9490_v54, %v7510_v53 }
 0x1b5   :  { %v9129_v17 = vld [vmem:[#allocation5 + $0x2c] sm:$0xf]  ;;  %v7699_v27 = vor.u32 %v9529_v14, %v7696_v15  ;;  %v6487_v60 = vor.u32 %v9234_v48, %v6486_v47  ;;  %v9474_v10 = vld [vmem:[#allocation5 + $0xaec] sm:$0xf0]  ;;  %v3595_v36 = vpop.f32.mrf.mxu1 }
 0x1b6   :  { %v6096_v19 = vld [vmem:[#allocation5 + $0x68] sm:$0xf0]  ;;  %3812 = vmatpush.bf16.msrb.mxu2 %v7251_v1  ;;  %3787 = vmatpush.bf16.msrb.mxu0 %v6163_v16  ;;  %v6422_v1 = vld [vmem:[#allocation5 + $0x2b0] sm:$0xf]  ;;  %v6935_v16 = vor.u32 %v9346_v5, %v6934_v3 }
 0x1b7   :  { %v9257_v22 = vld [vmem:[#allocation5 + $0x42c] sm:$0xf]  ;;  %v6099_v50 = vor.u32 %v9129_v17, %v6096_v19  ;;  %v7958_v11 = vld [vmem:[#allocation5 + $0xeb0] sm:$0xf]  ;;  %v6423_v14 = vor.u32 %v9218_v2, %v6422_v1 }
 0x1b8   :  { %v6608_v23 = vld [vmem:[#allocation5 + $0x468] sm:$0xf0]  ;;  %3825 = vmatpush.bf16.msrb.mxu3 %v7763_v7  ;;  %3800 = vmatpush.bf16.msrb.mxu1 %v6675_v20  ;;  %v7446_v7 = vld [vmem:[#allocation5 + $0xab0] sm:$0xf] }
 0x1b9   :  { %v9385_v24 = vld [vmem:[#allocation5 + $0x82c] sm:$0xf]  ;;  %v6611_v38 = vor.u32 %v9257_v22, %v6608_v23  ;;  %v9602_v12 = vld [vmem:[#allocation5 + $0xeec] sm:$0xf0]  ;;  %v7447_v17 = vor.u32 %v9474_v10, %v7446_v7 }
 0x1ba   :  { %v7120_v28 = vld [vmem:[#allocation5 + $0x868] sm:$0xf0]  ;;  %3813 = vmatpush.bf16.msrb.mxu2 %v7187_v21  ;;  %3788 = vmatpush.bf16.msrb.mxu0 %v6099_v50  ;;  %v6358_v15 = vld [vmem:[#allocation5 + $0x230] sm:$0xf]  ;;  %v624_v21 = vperm.slane %v10169_v13, 7  ;;  %v7959_v22 = vor.u32 %v9602_v12, %v7958_v11 }
 0x1bb   :  { %v9513_v29 = vld [vmem:[#allocation5 + $0xc2c] sm:$0xf]  ;;  %v7123_v39 = vor.u32 %v9385_v24, %v7120_v28  ;;  %v9202_v19 = vld [vmem:[#allocation5 + $0x26c] sm:$0xf0] }
 0x1bc   :  { %v7632_v30 = vld [vmem:[#allocation5 + $0xc68] sm:$0xf0]  ;;  %3826 = vmatpush.bf16.msrb.mxu3 %v7699_v27  ;;  %3801 = vmatpush.bf16.msrb.mxu1 %v6611_v38  ;;  %v6870_v20 = vld [vmem:[#allocation5 + $0x630] sm:$0xf] }
 0x1bd   :  { %v7635_v43 = vor.u32 %v9513_v29, %v7632_v30  ;;  %3789 = vmatmul.bf16.vlgmr.msrb.gmra.mxu0 %v10117_v18  ;;  %v9330_v23 = vld [vmem:[#allocation5 + $0x66c] sm:$0xf0]  ;;  %v6359_v29 = vor.u32 %v9202_v19, %v6358_v15  ;;  %v3582_v30 = vpop.f32.mrf.mxu0  ;;  %v3597_v12 = vpop.f32.mrf.mxu1 }
 0x1be   :  { %3814 = vmatpush.bf16.msrb.mxu2 %v7123_v39  ;;  %3833 = vmatpush.bf16.msra.mxu0 %v6551_v44  ;;  %v7382_v24 = vld [vmem:[#allocation5 + $0xa30] sm:$0xf]  ;;  %v6871_v31 = vor.u32 %v9330_v23, %v6870_v20  ;;  %v3583_v35 = vadd.f32 %v3582_v30, %v624_v21  ;;  %v6936_v12 = vld [vmem:[#allocation5 + $0x6f0] sm:$0xf0] }
 0x1bf   :  { %3802 = vmatmul.bf16.vlgmr.msrb.gmra.mxu1 %v10119_v25  ;;  %v9458_v26 = vld [vmem:[#allocation5 + $0xa6c] sm:$0xf0] }
 0x1c0   :  { %3827 = vmatpush.bf16.msrb.mxu3 %v7635_v43  ;;  %3846 = vmatpush.bf16.msra.mxu1 %v7063_v45  ;;  %v7894_v27 = vld [vmem:[#allocation5 + $0xe30] sm:$0xf]  ;;  %v7383_v32 = vor.u32 %v9458_v26, %v7382_v24  ;;  %v3596_v43 = vadd.f32 %v3595_v36, %v3583_v35  ;;  %v9242_v35 = vld [vmem:[#allocation5 + $0x3b4] sm:$0xf] }
 0x1c1   :  { %3815 = vmatmul.bf16.vlgmr.msrb.gmra.mxu2 %v10111_v8  ;;  %v9586_v28 = vld [vmem:[#allocation5 + $0xe6c] sm:$0xf0]  ;;  %v6552_v36 = vld [vmem:[#allocation5 + $0x3f0] sm:$0xf0] }
 0x1c2   :  { %3859 = vmatpush.bf16.msra.mxu2 %v7575_v46  ;;  %3834 = vmatpush.bf16.msra.mxu0 %v6487_v60  ;;  %v9186_v34 = vld [vmem:[#allocation5 + $0x1ec] sm:$0xf0]  ;;  %v7895_v13 = vor.u32 %v9586_v28, %v7894_v27  ;;  %v3621_v60 = vpop.f32.mrf.mxu3 }
 0x1c3   :  { %3828 = vmatmul.bf16.vlgmr.msrb.gmra.mxu3 %v10113_v9  ;;  %v6806_v50 = vld [vmem:[#allocation5 + $0x5b0] sm:$0xf]  ;;  %v6295_v44 = vor.u32 %v9186_v34, %v6294_v33 }
 0x1c4   :  { %3872 = vmatpush.bf16.msra.mxu3 %v8087_v51  ;;  %3847 = vmatpush.bf16.msra.mxu1 %v6999_v62  ;;  %v7318_v38 = vld [vmem:[#allocation5 + $0x9b0] sm:$0xf]  ;;  %v6807_v45 = vor.u32 %v9314_v37, %v6806_v50  ;;  %v3608_v51 = vpop.f32.mrf.mxu2 }
 0x1c5   :  { %v9442_v39 = vld [vmem:[#allocation5 + $0x9ec] sm:$0xf0]  ;;  %v3609_v58 = vadd.f32 %v3608_v51, %v3596_v43  ;;  %v3584_v3 = vpop.f32.mrf.mxu0  ;;  %v9226_v51 = vld [vmem:[#allocation5 + $0x334] sm:$0xf] }
 0x1c6   :  { %3860 = vmatpush.bf16.msra.mxu2 %v7511_v63  ;;  %3835 = vmatpush.bf16.msra.mxu0 %v6423_v14  ;;  %v7830_v40 = vld [vmem:[#allocation5 + $0xdb0] sm:$0xf]  ;;  %v7319_v46 = vor.u32 %v9442_v39, %v7318_v38  ;;  %v7064_v38 = vld [vmem:[#allocation5 + $0x7f0] sm:$0xf0] }
 0x1c7   :  { %v9570_v42 = vld [vmem:[#allocation5 + $0xdec] sm:$0xf0]  ;;  %v10193_v2 = vadd.f32 %v3621_v60, %v3609_v58  ;;  %v9498_v39 = vld [vmem:[#allocation5 + $0xbb4] sm:$0xf] }
 0x1c8   :  { %3873 = vmatpush.bf16.msra.mxu3 %v8023_v4  ;;  %3848 = vmatpush.bf16.msra.mxu1 %v6935_v16  ;;  %v6230_v47 = vld [vmem:[#allocation5 + $0x130] sm:$0xf]  ;;  %v7831_v52 = vor.u32 %v9570_v42, %v7830_v40  ;;  %v7576_v40 = vld [vmem:[#allocation5 + $0xbf0] sm:$0xf0] }
 0x1c9   :  { %v9170_v48 = vld [vmem:[#allocation5 + $0x16c] sm:$0xf0]  ;;  %v9482_v58 = vld [vmem:[#allocation5 + $0xb34] sm:$0xf] }
 0x1ca   :  { %3861 = vmatpush.bf16.msra.mxu2 %v7447_v17  ;;  %3836 = vmatpush.bf16.msra.mxu0 %v6359_v29  ;;  %v6742_v49 = vld [vmem:[#allocation5 + $0x530] sm:$0xf]  ;;  %v6231_v1 = vor.u32 %v9170_v48, %v6230_v47  ;;  %v3623_v50 = vpop.f32.mrf.mxu3  ;;  %v6555_v47 = vor.u32 %v9242_v35, %v6552_v36  ;;  %v7512_v60 = vld [vmem:[#allocation5 + $0xb70] sm:$0xf0] }
 0x1cb   :  { %v9298_v53 = vld [vmem:[#allocation5 + $0x56c] sm:$0xf0] }
 0x1cc   :  { %3874 = vmatpush.bf16.msra.mxu3 %v7959_v22  ;;  %3849 = vmatpush.bf16.msra.mxu1 %v6871_v31  ;;  %v7254_v54 = vld [vmem:[#allocation5 + $0x930] sm:$0xf]  ;;  %v6743_v4 = vor.u32 %v9298_v53, %v6742_v49  ;;  %v3610_v30 = vpop.f32.mrf.mxu2  ;;  %v7579_v49 = vor.u32 %v9498_v39, %v7576_v40  ;;  %v9354_v53 = vld [vmem:[#allocation5 + $0x734] sm:$0xf] }
 0x1cd   :  { %v9426_v55 = vld [vmem:[#allocation5 + $0x96c] sm:$0xf0]  ;;  %v9450_v30 = vld [vmem:[#allocation5 + $0xa34] sm:$0xf] }
 0x1ce   :  { %3862 = vmatpush.bf16.msra.mxu2 %v7383_v32  ;;  %v7766_v62 = vld [vmem:[#allocation5 + $0xd30] sm:$0xf]  ;;  %3837 = vmatpush.bf16.msra.mxu0 %v6295_v44  ;;  %v7255_v5 = vor.u32 %v9426_v55, %v7254_v54  ;;  %v9626_v44 = vld [vmem:[#allocation5 + $0xfb4] sm:$0xf] }
 0x1cf   :  { %v9554_v63 = vld [vmem:[#allocation5 + $0xd6c] sm:$0xf0]  ;;  %v7000_v55 = vld [vmem:[#allocation5 + $0x770] sm:$0xf0] }
 0x1d0   :  { %3875 = vmatpush.bf16.msra.mxu3 %v7895_v13  ;;  %3850 = vmatpush.bf16.msra.mxu1 %v6807_v45  ;;  %v6166_v7 = vld [vmem:[#allocation5 + $0xb0] sm:$0xf]  ;;  %v7767_v14 = vor.u32 %v9554_v63, %v7766_v62  ;;  %v9370_v13 = vld [vmem:[#allocation5 + $0x7b4] sm:$0xf]  ;;  %v7003_v3 = vor.u32 %v9354_v53, %v7000_v55 }
 0x1d1   :  { %v9154_v10 = vld [vmem:[#allocation5 + $0xec] sm:$0xf0]  ;;  %v8088_v45 = vld [vmem:[#allocation5 + $0xff0] sm:$0xf0]  ;;  %v7067_v48 = vor.u32 %v9370_v13, %v7064_v38 }
 0x1d2   :  { %3863 = vmatpush.bf16.msra.mxu2 %v7319_v46  ;;  %v6678_v11 = vld [vmem:[#allocation5 + $0x4b0] sm:$0xf]  ;;  %3838 = vmatpush.bf16.msra.mxu0 %v6231_v1  ;;  %v6167_v21 = vor.u32 %v9154_v10, %v6166_v7  ;;  %v8091_v54 = vor.u32 %v9626_v44, %v8088_v45  ;;  %v9610_v62 = vld [vmem:[#allocation5 + $0xf34] sm:$0xf] }
 0x1d3   :  { %v9282_v15 = vld [vmem:[#allocation5 + $0x4ec] sm:$0xf0]  ;;  %v8024_v63 = vld [vmem:[#allocation5 + $0xf70] sm:$0xf0] }
 0x1d4   :  { %3876 = vmatpush.bf16.msra.mxu3 %v7831_v52  ;;  %v7190_v16 = vld [vmem:[#allocation5 + $0x8b0] sm:$0xf]  ;;  %3851 = vmatpush.bf16.msra.mxu1 %v6743_v4  ;;  %v6679_v24 = vor.u32 %v9282_v15, %v6678_v11  ;;  %v6488_v52 = vld [vmem:[#allocation5 + $0x370] sm:$0xf0]  ;;  %v7515_v4 = vor.u32 %v9482_v58, %v7512_v60  ;;  %v8027_v11 = vor.u32 %v9610_v62, %v8024_v63 }
 0x1d5   :  { %v9410_v17 = vld [vmem:[#allocation5 + $0x8ec] sm:$0xf0]  ;;  %v6491_v1 = vor.u32 %v9226_v51, %v6488_v52  ;;  %v6424_v7 = vld [vmem:[#allocation5 + $0x2f0] sm:$0xf0]  ;;  %v3634_v50 = vpop.f32.mrf.mxu0 }
 0x1d6   :  { %v7702_v19 = vld [vmem:[#allocation5 + $0xcb0] sm:$0xf]  ;;  %3864 = vmatpush.bf16.msra.mxu2 %v7255_v5  ;;  %v7191_v26 = vor.u32 %v9410_v17, %v7190_v16  ;;  %3839 = vmatpush.bf16.msra.mxu0 %v6167_v21  ;;  %v9210_v5 = vld [vmem:[#allocation5 + $0x2b4] sm:$0xf]  ;;  %v10199_v21 = vld [vmem:[#allocation7 + $0x8] sm:$0xff] }
 0x1d7   :  { %v9538_v20 = vld [vmem:[#allocation5 + $0xcec] sm:$0xf0]  ;;  %v9338_v10 = vld [vmem:[#allocation5 + $0x6b4] sm:$0xf]  ;;  %v3647_v40 = vpop.f32.mrf.mxu1 }
 0x1d8   :  { %v6102_v22 = vld [vmem:[#allocation5 + $0x30] sm:$0xf]  ;;  %3877 = vmatpush.bf16.msra.mxu3 %v7767_v14  ;;  %v7703_v31 = vor.u32 %v9538_v20, %v7702_v19  ;;  %3852 = vmatpush.bf16.msra.mxu1 %v6679_v24  ;;  %v9466_v14 = vld [vmem:[#allocation5 + $0xab4] sm:$0xf]  ;;  %v6427_v19 = vor.u32 %v9210_v5, %v6424_v7 }
 0x1d9   :  { %v9138_v23 = vld [vmem:[#allocation5 + $0x6c] sm:$0xf0]  ;;  %v7448_v15 = vld [vmem:[#allocation5 + $0xaf0] sm:$0xf0] }
 0x1da   :  { %v6614_v27 = vld [vmem:[#allocation5 + $0x430] sm:$0xf]  ;;  %v6103_v37 = vor.u32 %v9138_v23, %v6102_v22  ;;  %3865 = vmatpush.bf16.msra.mxu2 %v7191_v26  ;;  %v9594_v16 = vld [vmem:[#allocation5 + $0xeb4] sm:$0xf]  ;;  %v6939_v22 = vor.u32 %v9338_v10, %v6936_v12  ;;  %v7451_v23 = vor.u32 %v9466_v14, %v7448_v15 }
 0x1db   :  { %v9266_v28 = vld [vmem:[#allocation5 + $0x46c] sm:$0xf0]  ;;  %v7960_v17 = vld [vmem:[#allocation5 + $0xef0] sm:$0xf0] }
 0x1dc   :  { %v7126_v29 = vld [vmem:[#allocation5 + $0x830] sm:$0xf]  ;;  %v6615_v42 = vor.u32 %v9266_v28, %v6614_v27  ;;  %3878 = vmatpush.bf16.msra.mxu3 %v7703_v31  ;;  %3840 = vmatpush.bf16.msra.mxu0 %v6103_v37  ;;  %v9194_v20 = vld [vmem:[#allocation5 + $0x234] sm:$0xf]  ;;  %v625_v27 = vperm.slane %v10199_v21, 0  ;;  %v7963_v28 = vor.u32 %v9594_v16, %v7960_v17 }
 0x1dd   :  { %v9394_v32 = vld [vmem:[#allocation5 + $0x86c] sm:$0xf0]  ;;  %v6360_v24 = vld [vmem:[#allocation5 + $0x270] sm:$0xf0]  ;;  %v3636_v12 = vpop.f32.mrf.mxu0 }
 0x1de   :  { %v7638_v33 = vld [vmem:[#allocation5 + $0xc30] sm:$0xf]  ;;  %v7127_v43 = vor.u32 %v9394_v32, %v7126_v29  ;;  %3853 = vmatpush.bf16.msra.mxu1 %v6615_v42  ;;  %v9322_v26 = vld [vmem:[#allocation5 + $0x634] sm:$0xf]  ;;  %v3635_v39 = vadd.f32 %v3634_v50, %v625_v27  ;;  %v9619_v12 = vld [vmem:[#allocation5 + $0xf74] sm:$0xf0] }
 0x1df   :  { %v9522_v34 = vld [vmem:[#allocation5 + $0xc6c] sm:$0xf0]  ;;  %3841 = vmatmul.bf16.vlgmr.msra.gmra.mxu0 %v10117_v18  ;;  %v6872_v29 = vld [vmem:[#allocation5 + $0x670] sm:$0xf0]  ;;  %v3660_v58 = vpop.f32.mrf.mxu2 }
 0x1e0   :  { %v7639_v46 = vor.u32 %v9522_v34, %v7638_v33  ;;  %3866 = vmatpush.bf16.msra.mxu2 %v7127_v43  ;;  %3885 = vmatpush.bf16.msrb.mxu0 %v6555_v47  ;;  %v7384_v31 = vld [vmem:[#allocation5 + $0xa70] sm:$0xf0]  ;;  %v6363_v34 = vor.u32 %v9194_v20, %v6360_v24  ;;  %v6875_v35 = vor.u32 %v9322_v26, %v6872_v29  ;;  %v3649_v20 = vpop.f32.mrf.mxu1 }
 0x1e1   :  { %3854 = vmatmul.bf16.vlgmr.msra.gmra.mxu1 %v10119_v25  ;;  %v9578_v32 = vld [vmem:[#allocation5 + $0xe34] sm:$0xf]  ;;  %v7387_v36 = vor.u32 %v9450_v30, %v7384_v31  ;;  %v6942_v20 = vld [vmem:[#allocation5 + $0x6b8] sm:$0xf] }
 0x1e2   :  { %3879 = vmatpush.bf16.msra.mxu3 %v7639_v46  ;;  %3898 = vmatpush.bf16.msrb.mxu1 %v7067_v48  ;;  %v7896_v33 = vld [vmem:[#allocation5 + $0xe70] sm:$0xf0]  ;;  %v3648_v48 = vadd.f32 %v3647_v40, %v3635_v39 }
 0x1e3   :  { %3867 = vmatmul.bf16.vlgmr.msra.gmra.mxu2 %v10111_v8  ;;  %v9178_v13 = vld [vmem:[#allocation5 + $0x1b4] sm:$0xf]  ;;  %v7899_v42 = vor.u32 %v9578_v32, %v7896_v33 }
 0x1e4   :  { %3911 = vmatpush.bf16.msrb.mxu2 %v7579_v49  ;;  %3886 = vmatpush.bf16.msrb.mxu0 %v6491_v1  ;;  %v6296_v37 = vld [vmem:[#allocation5 + $0x1f0] sm:$0xf0] }
 0x1e5   :  { %3880 = vmatmul.bf16.vlgmr.msra.gmra.mxu3 %v10113_v9  ;;  %v9306_v38 = vld [vmem:[#allocation5 + $0x5b4] sm:$0xf]  ;;  %v6299_v49 = vor.u32 %v9178_v13, %v6296_v37 }
 0x1e6   :  { %3924 = vmatpush.bf16.msrb.mxu3 %v8091_v54  ;;  %3899 = vmatpush.bf16.msrb.mxu1 %v7003_v3  ;;  %v6808_v43 = vld [vmem:[#allocation5 + $0x5f0] sm:$0xf0]  ;;  %v3661_v3 = vadd.f32 %v3660_v58, %v3648_v48  ;;  %v9507_v48 = vld [vmem:[#allocation5 + $0xbf4] sm:$0xf0] }
 0x1e7   :  { %v9434_v44 = vld [vmem:[#allocation5 + $0x9b4] sm:$0xf]  ;;  %v6811_v51 = vor.u32 %v9306_v38, %v6808_v43  ;;  %v9251_v43 = vld [vmem:[#allocation5 + $0x3f4] sm:$0xf0] }
 0x1e8   :  { %3912 = vmatpush.bf16.msrb.mxu2 %v7515_v4  ;;  %3887 = vmatpush.bf16.msrb.mxu0 %v6427_v19  ;;  %v7320_v45 = vld [vmem:[#allocation5 + $0x9f0] sm:$0xf0]  ;;  %v3673_v4 = vpop.f32.mrf.mxu3 }
 0x1e9   :  { %v9562_v46 = vld [vmem:[#allocation5 + $0xdb4] sm:$0xf]  ;;  %v7323_v52 = vor.u32 %v9434_v44, %v7320_v45  ;;  %v7070_v44 = vld [vmem:[#allocation5 + $0x7b8] sm:$0xf] }
 0x1ea   :  { %3925 = vmatpush.bf16.msrb.mxu3 %v8027_v11  ;;  %3900 = vmatpush.bf16.msrb.mxu1 %v6939_v22  ;;  %v7832_v47 = vld [vmem:[#allocation5 + $0xdf0] sm:$0xf0]  ;;  %v10202_v11 = vadd.f32 %v3673_v4, %v3661_v3  ;;  %v9363_v4 = vld [vmem:[#allocation5 + $0x774] sm:$0xf0] }
 0x1eb   :  { %v9162_v53 = vld [vmem:[#allocation5 + $0x134] sm:$0xf]  ;;  %v7835_v60 = vor.u32 %v9562_v46, %v7832_v47  ;;  %v9379_v46 = vld [vmem:[#allocation5 + $0x7f4] sm:$0xf0] }
 0x1ec   :  { %3913 = vmatpush.bf16.msrb.mxu2 %v7451_v23  ;;  %3888 = vmatpush.bf16.msrb.mxu0 %v6363_v34  ;;  %v6232_v54 = vld [vmem:[#allocation5 + $0x170] sm:$0xf0]  ;;  %v7582_v47 = vld [vmem:[#allocation5 + $0xbb8] sm:$0xf]  ;;  %v7071_v58 = vor.u32 %v9379_v46, %v7070_v44 }
 0x1ed   :  { %v9290_v55 = vld [vmem:[#allocation5 + $0x534] sm:$0xf]  ;;  %v6235_v10 = vor.u32 %v9162_v53, %v6232_v54  ;;  %v9635_v53 = vld [vmem:[#allocation5 + $0xff4] sm:$0xf0] }
 0x1ee   :  { %3926 = vmatpush.bf16.msrb.mxu3 %v7963_v28  ;;  %3901 = vmatpush.bf16.msrb.mxu1 %v6875_v35  ;;  %v6744_v62 = vld [vmem:[#allocation5 + $0x570] sm:$0xf0]  ;;  %v9187_v46 = vld [vmem:[#allocation5 + $0x1f4] sm:$0xf0] }
 0x1ef   :  { %v9418_v63 = vld [vmem:[#allocation5 + $0x934] sm:$0xf]  ;;  %v6747_v14 = vor.u32 %v9290_v55, %v6744_v62  ;;  %v6494_v62 = vld [vmem:[#allocation5 + $0x338] sm:$0xf] }
 0x1f0   :  { %3914 = vmatpush.bf16.msrb.mxu2 %v7387_v36  ;;  %v7256_v1 = vld [vmem:[#allocation5 + $0x970] sm:$0xf0]  ;;  %3889 = vmatpush.bf16.msrb.mxu0 %v6299_v49  ;;  %v3662_v36 = vpop.f32.mrf.mxu2  ;;  %v3675_v40 = vpop.f32.mrf.mxu3 }
 0x1f1   :  { %v9546_v5 = vld [vmem:[#allocation5 + $0xd34] sm:$0xf]  ;;  %v7259_v15 = vor.u32 %v9418_v63, %v7256_v1  ;;  %v9235_v63 = vld [vmem:[#allocation5 + $0x374] sm:$0xf0] }
 0x1f2   :  { %3927 = vmatpush.bf16.msrb.mxu3 %v7899_v42  ;;  %v7768_v7 = vld [vmem:[#allocation5 + $0xd70] sm:$0xf0]  ;;  %3902 = vmatpush.bf16.msrb.mxu1 %v6811_v51  ;;  %v6558_v42 = vld [vmem:[#allocation5 + $0x3b8] sm:$0xf] }
 0x1f3   :  { %v9146_v16 = vld [vmem:[#allocation5 + $0xb4] sm:$0xf]  ;;  %v7771_v22 = vor.u32 %v9546_v5, %v7768_v7  ;;  %v6559_v55 = vor.u32 %v9251_v43, %v6558_v42  ;;  %v7006_v1 = vld [vmem:[#allocation5 + $0x738] sm:$0xf] }
 0x1f4   :  { %3915 = vmatpush.bf16.msrb.mxu2 %v7323_v52  ;;  %v6168_v17 = vld [vmem:[#allocation5 + $0xf0] sm:$0xf0]  ;;  %3890 = vmatpush.bf16.msrb.mxu0 %v6235_v10  ;;  %v8094_v52 = vld [vmem:[#allocation5 + $0xfb8] sm:$0xf] }
 0x1f5   :  { %v9274_v19 = vld [vmem:[#allocation5 + $0x4b4] sm:$0xf]  ;;  %v6171_v29 = vor.u32 %v9146_v16, %v6168_v17  ;;  %v8095_v3 = vor.u32 %v9635_v53, %v8094_v52  ;;  %v7518_v5 = vld [vmem:[#allocation5 + $0xb38] sm:$0xf] }
 0x1f6   :  { %3928 = vmatpush.bf16.msrb.mxu3 %v7835_v60  ;;  %v6680_v23 = vld [vmem:[#allocation5 + $0x4f0] sm:$0xf0]  ;;  %3903 = vmatpush.bf16.msrb.mxu1 %v6747_v14  ;;  %v7583_v60 = vor.u32 %v9507_v48, %v7582_v47  ;;  %v9491_v7 = vld [vmem:[#allocation5 + $0xb74] sm:$0xf0]  ;;  %v6495_v14 = vor.u32 %v9235_v63, %v6494_v62 }
 0x1f7   :  { %v9402_v24 = vld [vmem:[#allocation5 + $0x8b4] sm:$0xf]  ;;  %v6683_v32 = vor.u32 %v9274_v19, %v6680_v23  ;;  %v8030_v10 = vld [vmem:[#allocation5 + $0xf38] sm:$0xf]  ;;  %v7519_v16 = vor.u32 %v9491_v7, %v7518_v5  ;;  %v3686_v42 = vpop.f32.mrf.mxu0 }
 0x1f8   :  { %v7192_v26 = vld [vmem:[#allocation5 + $0x8f0] sm:$0xf0]  ;;  %3916 = vmatpush.bf16.msrb.mxu2 %v7259_v15  ;;  %3891 = vmatpush.bf16.msrb.mxu0 %v6171_v29  ;;  %v7007_v15 = vor.u32 %v9363_v4, %v7006_v1  ;;  %v6430_v17 = vld [vmem:[#allocation5 + $0x2b8] sm:$0xf] }
 0x1f9   :  { %v9530_v27 = vld [vmem:[#allocation5 + $0xcb4] sm:$0xf]  ;;  %v7195_v33 = vor.u32 %v9402_v24, %v7192_v26  ;;  %v9219_v19 = vld [vmem:[#allocation5 + $0x2f4] sm:$0xf0] }
 0x1fa   :  { %v7704_v28 = vld [vmem:[#allocation5 + $0xcf0] sm:$0xf0]  ;;  %3929 = vmatpush.bf16.msrb.mxu3 %v7771_v22  ;;  %3904 = vmatpush.bf16.msrb.mxu1 %v6683_v32  ;;  %v8031_v22 = vor.u32 %v9619_v12, %v8030_v10  ;;  %v9347_v23 = vld [vmem:[#allocation5 + $0x6f4] sm:$0xf0]  ;;  %v6431_v29 = vor.u32 %v9219_v19, %v6430_v17 }
 0x1fb   :  { %v9130_v30 = vld [vmem:[#allocation5 + $0x34] sm:$0xf]  ;;  %v7707_v13 = vor.u32 %v9530_v27, %v7704_v28  ;;  %v7454_v24 = vld [vmem:[#allocation5 + $0xab8] sm:$0xf] }
 0x1fc   :  { %v6104_v31 = vld [vmem:[#allocation5 + $0x70] sm:$0xf0]  ;;  %3917 = vmatpush.bf16.msrb.mxu2 %v7195_v33  ;;  %v9475_v26 = vld [vmem:[#allocation5 + $0xaf4] sm:$0xf0] }
 0x1fd   :  { %v9258_v34 = vld [vmem:[#allocation5 + $0x434] sm:$0xf]  ;;  %v6107_v45 = vor.u32 %v9130_v30, %v6104_v31  ;;  %v7966_v27 = vld [vmem:[#allocation5 + $0xeb8] sm:$0xf]  ;;  %v6943_v31 = vor.u32 %v9347_v23, %v6942_v20  ;;  %v7455_v32 = vor.u32 %v9475_v26, %v7454_v24 }
 0x1fe   :  { %v6616_v50 = vld [vmem:[#allocation5 + $0x470] sm:$0xf0]  ;;  %3930 = vmatpush.bf16.msrb.mxu3 %v7707_v13  ;;  %v9603_v28 = vld [vmem:[#allocation5 + $0xef4] sm:$0xf0] }
 0x1ff   :  { %v9386_v35 = vld [vmem:[#allocation5 + $0x834] sm:$0xf]  ;;  %v6619_v49 = vor.u32 %v9258_v34, %v6616_v50  ;;  %3892 = vmatpush.bf16.msrb.mxu0 %v6107_v45  ;;  %v6366_v30 = vld [vmem:[#allocation5 + $0x238] sm:$0xf]  ;;  %v626_v50 = vperm.slane %v10199_v21, 1  ;;  %v3688_v24 = vpop.f32.mrf.mxu0 }
 0x200   :  { %v7128_v37 = vld [vmem:[#allocation5 + $0x870] sm:$0xf0]  ;;  %v9203_v33 = vld [vmem:[#allocation5 + $0x274] sm:$0xf0]  ;;  %v9611_v24 = vld [vmem:[#allocation5 + $0xf3c] sm:$0xf] }
 0x201   :  { %v9514_v38 = vld [vmem:[#allocation5 + $0xc34] sm:$0xf]  ;;  %v7131_v51 = vor.u32 %v9386_v35, %v7128_v37  ;;  %3905 = vmatpush.bf16.msrb.mxu1 %v6619_v49  ;;  %v6878_v34 = vld [vmem:[#allocation5 + $0x638] sm:$0xf]  ;;  %v7967_v35 = vor.u32 %v9603_v28, %v7966_v27  ;;  %v6367_v40 = vor.u32 %v9203_v33, %v6366_v30  ;;  %v3687_v48 = vadd.f32 %v3686_v42, %v626_v50  ;;  %v3699_v49 = vpop.f32.mrf.mxu1  ;;  %v3712_v7 = vpop.f32.mrf.mxu2 }
 0x202   :  { %v7640_v39 = vld [vmem:[#allocation5 + $0xc70] sm:$0xf0]  ;;  %3893 = vmatmul.bf16.vlgmr.msrb.gmra.mxu0 %v10117_v18  ;;  %v9331_v36 = vld [vmem:[#allocation5 + $0x674] sm:$0xf0] }
 0x203   :  { %v7643_v54 = vor.u32 %v9514_v38, %v7640_v39  ;;  %3918 = vmatpush.bf16.msrb.mxu2 %v7131_v51  ;;  %3937 = vmatpush.bf16.msra.mxu0 %v6559_v55  ;;  %v7390_v13 = vld [vmem:[#allocation5 + $0xa38] sm:$0xf]  ;;  %v6879_v43 = vor.u32 %v9331_v36, %v6878_v34  ;;  %v3725_v17 = vpop.f32.mrf.mxu3 }
 0x204   :  { %3906 = vmatmul.bf16.vlgmr.msrb.gmra.mxu1 %v10119_v25  ;;  %v9459_v37 = vld [vmem:[#allocation5 + $0xa74] sm:$0xf0] }
 0x205   :  { %3931 = vmatpush.bf16.msrb.mxu3 %v7643_v54  ;;  %3950 = vmatpush.bf16.msra.mxu1 %v7071_v58  ;;  %v7902_v38 = vld [vmem:[#allocation5 + $0xe38] sm:$0xf]  ;;  %v7391_v44 = vor.u32 %v9459_v37, %v7390_v13 }
 0x206   :  { %3919 = vmatmul.bf16.vlgmr.msrb.gmra.mxu2 %v10111_v8  ;;  %v9587_v39 = vld [vmem:[#allocation5 + $0xe74] sm:$0xf0] }
 0x207   :  { %3963 = vmatpush.bf16.msra.mxu2 %v7583_v60  ;;  %3938 = vmatpush.bf16.msra.mxu0 %v6495_v14  ;;  %v6302_v45 = vld [vmem:[#allocation5 + $0x1b8] sm:$0xf]  ;;  %v7903_v51 = vor.u32 %v9587_v39, %v7902_v38  ;;  %v3700_v60 = vadd.f32 %v3699_v49, %v3687_v48 }
 0x208   :  { %3932 = vmatmul.bf16.vlgmr.msrb.gmra.mxu3 %v10113_v9  ;;  %v6814_v47 = vld [vmem:[#allocation5 + $0x5b8] sm:$0xf]  ;;  %v6303_v62 = vor.u32 %v9187_v46, %v6302_v45 }
 0x209   :  { %3976 = vmatpush.bf16.msra.mxu3 %v8095_v3  ;;  %3951 = vmatpush.bf16.msra.mxu1 %v7007_v15  ;;  %v9315_v52 = vld [vmem:[#allocation5 + $0x5f4] sm:$0xf0]  ;;  %v3714_v45 = vpop.f32.mrf.mxu2 }
 0x20a   :  { %v7326_v53 = vld [vmem:[#allocation5 + $0x9b8] sm:$0xf]  ;;  %v6815_v63 = vor.u32 %v9315_v52, %v6814_v47  ;;  %v9243_v52 = vld [vmem:[#allocation5 + $0x3bc] sm:$0xf] }
 0x20b   :  { %3964 = vmatpush.bf16.msra.mxu2 %v7519_v16  ;;  %3939 = vmatpush.bf16.msra.mxu0 %v6431_v29  ;;  %v9443_v54 = vld [vmem:[#allocation5 + $0x9f4] sm:$0xf0]  ;;  %v3713_v16 = vadd.f32 %v3712_v7, %v3700_v60  ;;  %v9499_v60 = vld [vmem:[#allocation5 + $0xbbc] sm:$0xf] }
 0x20c   :  { %v7838_v55 = vld [vmem:[#allocation5 + $0xdb8] sm:$0xf]  ;;  %v7327_v1 = vor.u32 %v9443_v54, %v7326_v53  ;;  %v6560_v53 = vld [vmem:[#allocation5 + $0x3f8] sm:$0xf0] }
 0x20d   :  { %3977 = vmatpush.bf16.msra.mxu3 %v8031_v22  ;;  %3952 = vmatpush.bf16.msra.mxu1 %v6943_v31  ;;  %v9571_v58 = vld [vmem:[#allocation5 + $0xdf4] sm:$0xf0]  ;;  %v10209_v23 = vadd.f32 %v3725_v17, %v3713_v16  ;;  %v3701_v31 = vpop.f32.mrf.mxu1  ;;  %v9371_v54 = vld [vmem:[#allocation5 + $0x7bc] sm:$0xf]  ;;  %v6563_v7 = vor.u32 %v9243_v52, %v6560_v53 }
 0x20e   :  { %v6238_v3 = vld [vmem:[#allocation5 + $0x138] sm:$0xf]  ;;  %v7839_v10 = vor.u32 %v9571_v58, %v7838_v55  ;;  %v7072_v58 = vld [vmem:[#allocation5 + $0x7f8] sm:$0xf0] }
 0x20f   :  { %3965 = vmatpush.bf16.msra.mxu2 %v7455_v32  ;;  %3940 = vmatpush.bf16.msra.mxu0 %v6367_v40  ;;  %v9171_v4 = vld [vmem:[#allocation5 + $0x174] sm:$0xf0]  ;;  %v9355_v16 = vld [vmem:[#allocation5 + $0x73c] sm:$0xf] }
 0x210   :  { %v6750_v5 = vld [vmem:[#allocation5 + $0x538] sm:$0xf]  ;;  %v6239_v22 = vor.u32 %v9171_v4, %v6238_v3  ;;  %v9627_v3 = vld [vmem:[#allocation5 + $0xfbc] sm:$0xf] }
 0x211   :  { %3978 = vmatpush.bf16.msra.mxu3 %v7967_v35  ;;  %3953 = vmatpush.bf16.msra.mxu1 %v6879_v43  ;;  %v9299_v12 = vld [vmem:[#allocation5 + $0x574] sm:$0xf0]  ;;  %v8096_v4 = vld [vmem:[#allocation5 + $0xff8] sm:$0xf0] }
 0x212   :  { %v7262_v14 = vld [vmem:[#allocation5 + $0x938] sm:$0xf]  ;;  %v6751_v26 = vor.u32 %v9299_v12, %v6750_v5  ;;  %v8099_v17 = vor.u32 %v9627_v3, %v8096_v4  ;;  %v6432_v31 = vld [vmem:[#allocation5 + $0x2f8] sm:$0xf0] }
 0x213   :  { %3966 = vmatpush.bf16.msra.mxu2 %v7391_v44  ;;  %v9427_v15 = vld [vmem:[#allocation5 + $0x974] sm:$0xf0]  ;;  %3941 = vmatpush.bf16.msra.mxu0 %v6303_v62  ;;  %v7584_v62 = vld [vmem:[#allocation5 + $0xbf8] sm:$0xf0] }
 0x214   :  { %v7774_v19 = vld [vmem:[#allocation5 + $0xd38] sm:$0xf]  ;;  %v7263_v27 = vor.u32 %v9427_v15, %v7262_v14  ;;  %v7587_v12 = vor.u32 %v9499_v60, %v7584_v62  ;;  %v9227_v14 = vld [vmem:[#allocation5 + $0x33c] sm:$0xf] }
 0x215   :  { %3979 = vmatpush.bf16.msra.mxu3 %v7903_v51  ;;  %v9555_v20 = vld [vmem:[#allocation5 + $0xd74] sm:$0xf0]  ;;  %3954 = vmatpush.bf16.msra.mxu1 %v6815_v63  ;;  %v3727_v51 = vpop.f32.mrf.mxu3  ;;  %v6496_v15 = vld [vmem:[#allocation5 + $0x378] sm:$0xf0] }
 0x216   :  { %v6174_v28 = vld [vmem:[#allocation5 + $0xb8] sm:$0xf]  ;;  %v7775_v32 = vor.u32 %v9555_v20, %v7774_v19  ;;  %v7008_v19 = vld [vmem:[#allocation5 + $0x778] sm:$0xf0] }
 0x217   :  { %3967 = vmatpush.bf16.msra.mxu2 %v7327_v1  ;;  %v9155_v29 = vld [vmem:[#allocation5 + $0xf4] sm:$0xf0]  ;;  %3942 = vmatpush.bf16.msra.mxu0 %v6239_v22  ;;  %v9483_v20 = vld [vmem:[#allocation5 + $0xb3c] sm:$0xf] }
 0x218   :  { %v6686_v30 = vld [vmem:[#allocation5 + $0x4b8] sm:$0xf]  ;;  %v6175_v13 = vor.u32 %v9155_v29, %v6174_v28  ;;  %v7520_v22 = vld [vmem:[#allocation5 + $0xb78] sm:$0xf0]  ;;  %v7011_v28 = vor.u32 %v9355_v16, %v7008_v19 }
 0x219   :  { %3980 = vmatpush.bf16.msra.mxu3 %v7839_v10  ;;  %v9283_v33 = vld [vmem:[#allocation5 + $0x4f4] sm:$0xf0]  ;;  %3955 = vmatpush.bf16.msra.mxu1 %v6751_v26  ;;  %v7075_v10 = vor.u32 %v9371_v54, %v7072_v58  ;;  %v8032_v26 = vld [vmem:[#allocation5 + $0xf78] sm:$0xf0]  ;;  %v7523_v29 = vor.u32 %v9483_v20, %v7520_v22 }
 0x21a   :  { %v7198_v34 = vld [vmem:[#allocation5 + $0x8b8] sm:$0xf]  ;;  %v6687_v39 = vor.u32 %v9283_v33, %v6686_v30  ;;  %v9211_v30 = vld [vmem:[#allocation5 + $0x2bc] sm:$0xf]  ;;  %v8035_v33 = vor.u32 %v9611_v24, %v8032_v26  ;;  %v3738_v53 = vpop.f32.mrf.mxu0 }
 0x21b   :  { %v9411_v50 = vld [vmem:[#allocation5 + $0x8f4] sm:$0xf0]  ;;  %3968 = vmatpush.bf16.msra.mxu2 %v7263_v27  ;;  %3943 = vmatpush.bf16.msra.mxu0 %v6175_v13  ;;  %v6499_v27 = vor.u32 %v9227_v14, %v6496_v15  ;;  %v7968_v13 = vld [vmem:[#allocation5 + $0xef8] sm:$0xf0] }
 0x21c   :  { %v7710_v35 = vld [vmem:[#allocation5 + $0xcb8] sm:$0xf]  ;;  %v7199_v40 = vor.u32 %v9411_v50, %v7198_v34  ;;  %v6944_v34 = vld [vmem:[#allocation5 + $0x6f8] sm:$0xf0] }
 0x21d   :  { %v9539_v36 = vld [vmem:[#allocation5 + $0xcf4] sm:$0xf0]  ;;  %3981 = vmatpush.bf16.msra.mxu3 %v7775_v32  ;;  %3956 = vmatpush.bf16.msra.mxu1 %v6687_v39  ;;  %v9339_v32 = vld [vmem:[#allocation5 + $0x6bc] sm:$0xf] }
 0x21e   :  { %v6110_v37 = vld [vmem:[#allocation5 + $0x38] sm:$0xf]  ;;  %v7711_v46 = vor.u32 %v9539_v36, %v7710_v35  ;;  %v9467_v50 = vld [vmem:[#allocation5 + $0xabc] sm:$0xf]  ;;  %v6947_v39 = vor.u32 %v9339_v32, %v6944_v34 }
 0x21f   :  { %v9139_v38 = vld [vmem:[#allocation5 + $0x74] sm:$0xf0]  ;;  %3969 = vmatpush.bf16.msra.mxu2 %v7199_v40  ;;  %v7456_v35 = vld [vmem:[#allocation5 + $0xaf8] sm:$0xf0] }
 0x220   :  { %v6622_v42 = vld [vmem:[#allocation5 + $0x438] sm:$0xf]  ;;  %v6111_v55 = vor.u32 %v9139_v38, %v6110_v37  ;;  %v9595_v36 = vld [vmem:[#allocation5 + $0xebc] sm:$0xf]  ;;  %v6435_v37 = vor.u32 %v9211_v30, %v6432_v31  ;;  %v7459_v40 = vor.u32 %v9467_v50, %v7456_v35 }
 0x221   :  { %v9267_v43 = vld [vmem:[#allocation5 + $0x474] sm:$0xf0]  ;;  %3982 = vmatpush.bf16.msra.mxu3 %v7711_v46  ;;  %v9195_v38 = vld [vmem:[#allocation5 + $0x23c] sm:$0xf]  ;;  %v7971_v45 = vor.u32 %v9595_v36, %v7968_v13 }
 0x222   :  { %v7134_v44 = vld [vmem:[#allocation5 + $0x838] sm:$0xf]  ;;  %v6623_v63 = vor.u32 %v9267_v43, %v6622_v42  ;;  %3944 = vmatpush.bf16.msra.mxu0 %v6111_v55  ;;  %v6368_v42 = vld [vmem:[#allocation5 + $0x278] sm:$0xf0]  ;;  %v3740_v35 = vpop.f32.mrf.mxu0 }
 0x223   :  { %v9395_v47 = vld [vmem:[#allocation5 + $0x874] sm:$0xf0]  ;;  %v9323_v43 = vld [vmem:[#allocation5 + $0x63c] sm:$0xf]  ;;  %v6371_v52 = vor.u32 %v9195_v38, %v6368_v42 }
 0x224   :  { %v7646_v48 = vld [vmem:[#allocation5 + $0xc38] sm:$0xf]  ;;  %v7135_v1 = vor.u32 %v9395_v47, %v7134_v44  ;;  %3957 = vmatpush.bf16.msra.mxu1 %v6623_v63  ;;  %v627_v44 = vperm.slane %v10199_v21, 2  ;;  %v6880_v46 = vld [vmem:[#allocation5 + $0x678] sm:$0xf0]  ;;  %v3764_v24 = vpop.f32.mrf.mxu2 }
 0x225   :  { %v9523_v49 = vld [vmem:[#allocation5 + $0xc74] sm:$0xf0]  ;;  %3945 = vmatmul.bf16.vlgmr.msra.gmra.mxu0 %v10117_v18  ;;  %v9451_v47 = vld [vmem:[#allocation5 + $0xa3c] sm:$0xf]  ;;  %v6883_v54 = vor.u32 %v9323_v43, %v6880_v46 }
 0x226   :  { %v7647_v5 = vor.u32 %v9523_v49, %v7646_v48  ;;  %3970 = vmatpush.bf16.msra.mxu2 %v7135_v1  ;;  %3989 = vmatpush.bf16.msrb.mxu0 %v6563_v7  ;;  %v7392_v48 = vld [vmem:[#allocation5 + $0xa78] sm:$0xf0]  ;;  %v3739_v63 = vadd.f32 %v3738_v53, %v627_v44  ;;  %v3751_v1 = vpop.f32.mrf.mxu1  ;;  %v3777_v31 = vpop.f32.mrf.mxu3  ;;  %v9681_v35 = vld [vmem:[#allocation8 + $0x164] sm:$0xf0] }
 0x227   :  { %3958 = vmatmul.bf16.vlgmr.msra.gmra.mxu1 %v10119_v25  ;;  %v9579_v49 = vld [vmem:[#allocation5 + $0xe3c] sm:$0xf]  ;;  %v7395_v55 = vor.u32 %v9451_v47, %v7392_v48 }
 0x228   :  { %3983 = vmatpush.bf16.msra.mxu3 %v7647_v5  ;;  %4002 = vmatpush.bf16.msrb.mxu1 %v7075_v10  ;;  %v7904_v51 = vld [vmem:[#allocation5 + $0xe78] sm:$0xf0]  ;;  %v3752_v14 = vadd.f32 %v3751_v1, %v3739_v63 }
 0x229   :  { %3971 = vmatmul.bf16.vlgmr.msra.gmra.mxu2 %v10111_v8  ;;  %v9179_v58 = vld [vmem:[#allocation5 + $0x1bc] sm:$0xf]  ;;  %v7907_v3 = vor.u32 %v9579_v49, %v7904_v51 }
 0x22a   :  { %4015 = vmatpush.bf16.msrb.mxu2 %v7587_v12  ;;  %3990 = vmatpush.bf16.msrb.mxu0 %v6499_v27  ;;  %v6304_v60 = vld [vmem:[#allocation5 + $0x1f8] sm:$0xf0]  ;;  %v3765_v30 = vadd.f32 %v3764_v24, %v3752_v14  ;;  %v9667_v14 = vld [vmem:[#allocation8 + $0xf4] sm:$0xf0] }
 0x22b   :  { %3984 = vmatmul.bf16.vlgmr.msra.gmra.mxu3 %v10113_v9  ;;  %v9307_v62 = vld [vmem:[#allocation5 + $0x5bc] sm:$0xf]  ;;  %v6307_v15 = vor.u32 %v9179_v58, %v6304_v60 }
 0x22c   :  { %4028 = vmatpush.bf16.msrb.mxu3 %v8099_v17  ;;  %4003 = vmatpush.bf16.msrb.mxu1 %v7011_v28  ;;  %v6816_v4 = vld [vmem:[#allocation5 + $0x5f8] sm:$0xf0]  ;;  %v10216_v50 = vadd.f32 %v3777_v31, %v3765_v30  ;;  %v3766_v60 = vpop.f32.mrf.mxu2  ;;  %v9649_v30 = vld [vmem:[#allocation8 + $0x64] sm:$0xf0]  ;;  %v8214_v31 = vld [vmem:[#allocation8 + $0xe0] sm:$0xf] }
 0x22d   :  { %v9435_v5 = vld [vmem:[#allocation5 + $0x9bc] sm:$0xf]  ;;  %v6819_v16 = vor.u32 %v9307_v62, %v6816_v4 }
 0x22e   :  { %4016 = vmatpush.bf16.msrb.mxu2 %v7523_v29  ;;  %3991 = vmatpush.bf16.msrb.mxu0 %v6435_v37  ;;  %v7328_v7 = vld [vmem:[#allocation5 + $0x9f8] sm:$0xf0]  ;;  %v3779_v4 = vpop.f32.mrf.mxu3 }
 0x22f   :  { %v9563_v10 = vld [vmem:[#allocation5 + $0xdbc] sm:$0xf]  ;;  %v7331_v17 = vor.u32 %v9435_v5, %v7328_v7  ;;  %v8158_v5 = vld [vmem:[#allocation8 + $0x70] sm:$0xf]  ;;  %v9651_v7 = vld [vmem:[#allocation8 + $0x74] sm:$0xf0] }
 0x230   :  { %4029 = vmatpush.bf16.msrb.mxu3 %v8035_v33  ;;  %4004 = vmatpush.bf16.msrb.mxu1 %v6947_v39  ;;  %v7840_v12 = vld [vmem:[#allocation5 + $0xdf8] sm:$0xf0] }
 0x231   :  { %v9163_v19 = vld [vmem:[#allocation5 + $0x13c] sm:$0xf]  ;;  %v7843_v26 = vor.u32 %v9563_v10, %v7840_v12  ;;  %v8222_v10 = vld [vmem:[#allocation8 + $0xf0] sm:$0xf] }
 0x232   :  { %4017 = vmatpush.bf16.msrb.mxu2 %v7459_v40  ;;  %3992 = vmatpush.bf16.msrb.mxu0 %v6371_v52  ;;  %v6240_v20 = vld [vmem:[#allocation5 + $0x178] sm:$0xf0]  ;;  %v3753_v40 = vpop.f32.mrf.mxu1 }
 0x233   :  { %v9291_v22 = vld [vmem:[#allocation5 + $0x53c] sm:$0xf]  ;;  %v6243_v34 = vor.u32 %v9163_v19, %v6240_v20  ;;  %v8350_v20 = vld [vmem:[#allocation8 + $0x1f0] sm:$0xf] }
 0x234   :  { %4030 = vmatpush.bf16.msrb.mxu3 %v7971_v45  ;;  %4005 = vmatpush.bf16.msrb.mxu1 %v6883_v54  ;;  %v6752_v27 = vld [vmem:[#allocation5 + $0x578] sm:$0xf0]  ;;  %v8142_v40 = vld [vmem:[#allocation8 + $0x50] sm:$0xf] }
 0x235   :  { %v9419_v28 = vld [vmem:[#allocation5 + $0x93c] sm:$0xf]  ;;  %v6755_v36 = vor.u32 %v9291_v22, %v6752_v27  ;;  %v9699_v22 = vld [vmem:[#allocation8 + $0x1f4] sm:$0xf0]  ;;  %v8223_v27 = vor.u32 %v9667_v14, %v8222_v10 }
 0x236   :  { %4018 = vmatpush.bf16.msrb.mxu2 %v7395_v55  ;;  %v7264_v29 = vld [vmem:[#allocation5 + $0x978] sm:$0xf0]  ;;  %3993 = vmatpush.bf16.msrb.mxu0 %v6307_v15  ;;  %v8286_v15 = vld [vmem:[#allocation8 + $0x170] sm:$0xf]  ;;  %v9643_v10 = vld [vmem:[#allocation8 + $0x34] sm:$0xf0] }
 0x237   :  { %v9547_v32 = vld [vmem:[#allocation5 + $0xd3c] sm:$0xf]  ;;  %v7267_v13 = vor.u32 %v9419_v28, %v7264_v29  ;;  %v8150_v29 = vld [vmem:[#allocation8 + $0x60] sm:$0xf] }
 0x238   :  { %4031 = vmatpush.bf16.msrb.mxu3 %v7907_v3  ;;  %v7776_v33 = vld [vmem:[#allocation5 + $0xd78] sm:$0xf0]  ;;  %4006 = vmatpush.bf16.msrb.mxu1 %v6819_v16  ;;  %v9683_v16 = vld [vmem:[#allocation8 + $0x174] sm:$0xf0] }
 0x239   :  { %v9147_v37 = vld [vmem:[#allocation5 + $0xbc] sm:$0xf]  ;;  %v7779_v42 = vor.u32 %v9547_v32, %v7776_v33  ;;  %v8287_v28 = vor.u32 %v9683_v16, %v8286_v15  ;;  %v8351_v32 = vor.u32 %v9699_v22, %v8350_v20  ;;  %v9665_v33 = vld [vmem:[#allocation8 + $0xe4] sm:$0xf0]  ;;  %v9659_v16 = vld [vmem:[#allocation8 + $0xb4] sm:$0xf0] }
 0x23a   :  { %4019 = vmatpush.bf16.msrb.mxu2 %v7331_v17  ;;  %v6176_v38 = vld [vmem:[#allocation5 + $0xf8] sm:$0xf0]  ;;  %3994 = vmatpush.bf16.msrb.mxu0 %v6243_v34  ;;  %v8278_v34 = vld [vmem:[#allocation8 + $0x160] sm:$0xf]  ;;  %v8318_v20 = vld [vmem:[#allocation8 + $0x1b0] sm:$0xf] }
 0x23b   :  { %v9275_v39 = vld [vmem:[#allocation5 + $0x4bc] sm:$0xf]  ;;  %v6179_v48 = vor.u32 %v9147_v37, %v6176_v38  ;;  %v8151_v37 = vor.u32 %v9649_v30, %v8150_v29  ;;  %v8215_v38 = vor.u32 %v9665_v33, %v8214_v31  ;;  %v9691_v22 = vld [vmem:[#allocation8 + $0x1b4] sm:$0xf0]  ;;  %v8118_v29 = vld [vmem:[#allocation8 + $0x20] sm:$0xf] }
 0x23c   :  { %4032 = vmatpush.bf16.msrb.mxu3 %v7843_v26  ;;  %v6688_v43 = vld [vmem:[#allocation5 + $0x4f8] sm:$0xf0]  ;;  %4007 = vmatpush.bf16.msrb.mxu1 %v6755_v36  ;;  %v8159_v26 = vor.u32 %v9651_v7, %v8158_v5  ;;  %v8342_v36 = vld [vmem:[#allocation8 + $0x1e0] sm:$0xf]  ;;  %v8126_v7 = vld [vmem:[#allocation8 + $0x30] sm:$0xf]  ;;  %v3803_v15 = vpop.f32.mrf.mxu1  ;;  %v8319_v33 = vor.u32 %v9691_v22, %v8318_v20 }
 0x23d   :  { %v9403_v44 = vld [vmem:[#allocation5 + $0x8bc] sm:$0xf]  ;;  %v6691_v52 = vor.u32 %v9275_v39, %v6688_v43  ;;  %v8279_v39 = vor.u32 %v9681_v35, %v8278_v34  ;;  %v8206_v43 = vld [vmem:[#allocation8 + $0xd0] sm:$0xf]  ;;  %v9641_v30 = vld [vmem:[#allocation8 + $0x24] sm:$0xf0] }
 0x23e   :  { %v7200_v45 = vld [vmem:[#allocation5 + $0x8f8] sm:$0xf0]  ;;  %4020 = vmatpush.bf16.msrb.mxu2 %v7267_v13  ;;  %3995 = vmatpush.bf16.msrb.mxu0 %v6179_v48  ;;  %v9697_v13 = vld [vmem:[#allocation8 + $0x1e4] sm:$0xf0]  ;;  %v8334_v48 = vld [vmem:[#allocation8 + $0x1d0] sm:$0xf] }
 0x23f   :  { %v9531_v46 = vld [vmem:[#allocation5 + $0xcbc] sm:$0xf]  ;;  %v7203_v53 = vor.u32 %v9403_v44, %v7200_v45  ;;  %v8343_v44 = vor.u32 %v9697_v13, %v8342_v36  ;;  %v9663_v45 = vld [vmem:[#allocation8 + $0xd4] sm:$0xf0]  ;;  %v8182_v31 = vld [vmem:[#allocation8 + $0xa0] sm:$0xf] }
 0x240   :  { %v7712_v47 = vld [vmem:[#allocation5 + $0xcf8] sm:$0xf0]  ;;  %4033 = vmatpush.bf16.msrb.mxu3 %v7779_v42  ;;  %4008 = vmatpush.bf16.msrb.mxu1 %v6691_v52  ;;  %v9647_v42 = vld [vmem:[#allocation8 + $0x54] sm:$0xf0]  ;;  %v8134_v52 = vld [vmem:[#allocation8 + $0x40] sm:$0xf] }
 0x241   :  { %v9131_v49 = vld [vmem:[#allocation5 + $0x3c] sm:$0xf]  ;;  %v7715_v62 = vor.u32 %v9531_v46, %v7712_v47  ;;  %v8270_v46 = vld [vmem:[#allocation8 + $0x150] sm:$0xf]  ;;  %v9679_v47 = vld [vmem:[#allocation8 + $0x154] sm:$0xf0] }
 0x242   :  { %v6112_v51 = vld [vmem:[#allocation5 + $0x78] sm:$0xf0]  ;;  %4021 = vmatpush.bf16.msrb.mxu2 %v7203_v53  ;;  %v8207_v53 = vor.u32 %v9663_v45, %v8206_v43  ;;  %v9657_v34 = vld [vmem:[#allocation8 + $0xa4] sm:$0xf0]  ;;  %v8246_v35 = vld [vmem:[#allocation8 + $0x120] sm:$0xf] }
 0x243   :  { %v9259_v54 = vld [vmem:[#allocation5 + $0x43c] sm:$0xf]  ;;  %v6115_v12 = vor.u32 %v9131_v49, %v6112_v51  ;;  %v9695_v49 = vld [vmem:[#allocation8 + $0x1d4] sm:$0xf0]  ;;  %v8143_v51 = vor.u32 %v9647_v42, %v8142_v40  ;;  %v9673_v36 = vld [vmem:[#allocation8 + $0x124] sm:$0xf0]  ;;  %v8119_v40 = vor.u32 %v9641_v30, %v8118_v29 }
 0x244   :  { %v6624_v55 = vld [vmem:[#allocation5 + $0x478] sm:$0xf0]  ;;  %4034 = vmatpush.bf16.msrb.mxu3 %v7715_v62  ;;  %v8335_v60 = vor.u32 %v9695_v49, %v8334_v48  ;;  %v8262_v62 = vld [vmem:[#allocation8 + $0x140] sm:$0xf]  ;;  %v8247_v45 = vor.u32 %v9673_v36, %v8246_v35  ;;  %v8174_v48 = vld [vmem:[#allocation8 + $0x90] sm:$0xf]  ;;  %v3805_v49 = vpop.f32.mrf.mxu1 }
 0x245   :  { %v9387_v58 = vld [vmem:[#allocation5 + $0x83c] sm:$0xf]  ;;  %v6627_v17 = vor.u32 %v9259_v54, %v6624_v55  ;;  %3996 = vmatpush.bf16.msrb.mxu0 %v6115_v12  ;;  %v8271_v54 = vor.u32 %v9679_v47, %v8270_v46  ;;  %v8198_v55 = vld [vmem:[#allocation8 + $0xc0] sm:$0xf]  ;;  %v8190_v12 = vld [vmem:[#allocation8 + $0xb0] sm:$0xf] }
 0x246   :  { %v7136_v63 = vld [vmem:[#allocation5 + $0x878] sm:$0xf0]  ;;  %v8110_v46 = vld [vmem:[#allocation8 + $0x10] sm:$0xf]  ;;  %v9639_v47 = vld [vmem:[#allocation8 + $0x14] sm:$0xf0] }
 0x247   :  { %v9515_v1 = vld [vmem:[#allocation5 + $0xc3c] sm:$0xf]  ;;  %v7139_v19 = vor.u32 %v9387_v58, %v7136_v63  ;;  %4009 = vmatpush.bf16.msrb.mxu1 %v6627_v17  ;;  %v628_v58 = vperm.slane %v10199_v21, 3  ;;  %v8326_v63 = vld [vmem:[#allocation8 + $0x1c0] sm:$0xf]  ;;  %v4041_v22 = vmax.f32 %v10142_v41, 0.0 }
 0x248   :  { %v7648_v3 = vld [vmem:[#allocation5 + $0xc78] sm:$0xf0]  ;;  %3997 = vmatmul.bf16.vlgmr.msrb.gmra.mxu0 %v10117_v18  ;;  %v9645_v18 = vld [vmem:[#allocation8 + $0x44] sm:$0xf0]  ;;  %v8254_v17 = vld [vmem:[#allocation8 + $0x130] sm:$0xf] }
 0x249   :  { %v7651_v24 = vor.u32 %v9515_v1, %v7648_v3  ;;  %4022 = vmatpush.bf16.msrb.mxu2 %v7139_v19  ;;  %5615 = vmatpush.bf16.msra.mxu0 %v8159_v26  ;;  %v9693_v1 = vld [vmem:[#allocation8 + $0x1c4] sm:$0xf0]  ;;  %v3790_v3 = vpop.f32.mrf.mxu0  ;;  %v9675_v19 = vld [vmem:[#allocation8 + $0x134] sm:$0xf0]  ;;  %v8127_v26 = vor.u32 %v9643_v10, %v8126_v7  ;;  %v8294_v7 = vld [vmem:[#allocation8 + $0x180] sm:$0xf] }
 0x24a   :  { %4010 = vmatmul.bf16.vlgmr.msrb.gmra.mxu1 %v10119_v25  ;;  %v9661_v25 = vld [vmem:[#allocation8 + $0xc4] sm:$0xf0]  ;;  %v3791_v14 = vadd.f32 %v3790_v3, %v628_v58  ;;  %v8327_v21 = vor.u32 %v9693_v1, %v8326_v63  ;;  %v8111_v58 = vor.u32 %v9639_v47, %v8110_v46  ;;  %v8166_v63 = vld [vmem:[#allocation8 + $0x80] sm:$0xf]  ;;  %v9747_v20 = vld [vmem:[#allocation8 + $0x374] sm:$0xf0] }
 0x24b   :  { %4035 = vmatpush.bf16.msrb.mxu3 %v7651_v24  ;;  %5628 = vmatpush.bf16.msra.mxu1 %v8223_v27  ;;  %v8199_v4 = vor.u32 %v9661_v25, %v8198_v55  ;;  %v8191_v27 = vor.u32 %v9659_v16, %v8190_v12  ;;  %v9687_v55 = vld [vmem:[#allocation8 + $0x194] sm:$0xf0]  ;;  %v9637_v25 = vld [vmem:[#allocation8 + $0x4] sm:$0xf0]  ;;  %v4043_v30 = vmax.f32 %v10156_v0, 0.0  ;;  %v10229_v0 = vpack.c.bf16 %v4041_v22, %v4041_v22 }
 0x24c   :  { %4023 = vmatmul.bf16.vlgmr.msrb.gmra.mxu2 %v10111_v8  ;;  %v9677_v8 = vld [vmem:[#allocation8 + $0x144] sm:$0xf0]  ;;  %v3804_v24 = vadd.f32 %v3803_v15, %v3791_v14  ;;  %v8414_v14 = vld [vmem:[#allocation8 + $0x270] sm:$0xf]  ;;  %v9715_v15 = vld [vmem:[#allocation8 + $0x274] sm:$0xf0] }
 0x24d   :  { %5641 = vmatpush.bf16.msra.mxu2 %v8287_v28  ;;  %5616 = vmatpush.bf16.msra.mxu0 %v8151_v37  ;;  %v8263_v5 = vor.u32 %v9677_v8, %v8262_v62  ;;  %v8255_v28 = vor.u32 %v9675_v19, %v8254_v17  ;;  %v3829_v37 = vpop.f32.mrf.mxu3  ;;  %v9653_v1 = vld [vmem:[#allocation8 + $0x84] sm:$0xf0]  ;;  %v9731_v17 = vld [vmem:[#allocation8 + $0x2f4] sm:$0xf0]  ;;  %v8542_v19 = vld [vmem:[#allocation8 + $0x370] sm:$0xf] }
 0x24e   :  { %4036 = vmatmul.bf16.vlgmr.msrb.gmra.mxu3 %v10113_v9  ;;  %v8135_v9 = vor.u32 %v9645_v18, %v8134_v52  ;;  %v9655_v52 = vld [vmem:[#allocation8 + $0x94] sm:$0xf0]  ;;  %v8302_v18 = vld [vmem:[#allocation8 + $0x190] sm:$0xf]  ;;  %v9685_v10 = vld [vmem:[#allocation8 + $0x184] sm:$0xf0]  ;;  %v8543_v35 = vor.u32 %v9747_v20, %v8542_v19 }
 0x24f   :  { %5654 = vmatpush.bf16.msra.mxu3 %v8351_v32  ;;  %5629 = vmatpush.bf16.msra.mxu1 %v8215_v38  ;;  %v3816_v32 = vpop.f32.mrf.mxu2  ;;  %v8310_v38 = vld [vmem:[#allocation8 + $0x1a0] sm:$0xf]  ;;  %v8175_v62 = vor.u32 %v9655_v52, %v8174_v48  ;;  %v9763_v29 = vld [vmem:[#allocation8 + $0x3f4] sm:$0xf0]  ;;  %v8398_v48 = vld [vmem:[#allocation8 + $0x250] sm:$0xf] }
 0x250   :  { %v3817_v13 = vadd.f32 %v3816_v32, %v3804_v24  ;;  %v4042_v24 = vmax.f32 %v10149_v6, 0.0  ;;  %v8295_v32 = vor.u32 %v9685_v10, %v8294_v7  ;;  %v8406_v36 = vld [vmem:[#allocation8 + $0x260] sm:$0xf]  ;;  %v9711_v49 = vld [vmem:[#allocation8 + $0x254] sm:$0xf0] }
 0x251   :  { %5642 = vmatpush.bf16.msra.mxu2 %v8279_v39  ;;  %5617 = vmatpush.bf16.msra.mxu0 %v8143_v51  ;;  %v9689_v39 = vld [vmem:[#allocation8 + $0x1a4] sm:$0xf0]  ;;  %v3792_v43 = vpop.f32.mrf.mxu0  ;;  %v8470_v41 = vld [vmem:[#allocation8 + $0x2e0] sm:$0xf]  ;;  %v8382_v20 = vld [vmem:[#allocation8 + $0x230] sm:$0xf] }
 0x252   :  { %v10223_v42 = vadd.f32 %v3829_v37, %v3817_v13  ;;  %v8311_v51 = vor.u32 %v9689_v39, %v8310_v38  ;;  %v9713_v13 = vld [vmem:[#allocation8 + $0x264] sm:$0xf0]  ;;  %v8534_v38 = vld [vmem:[#allocation8 + $0x360] sm:$0xf]  ;;  %v9707_v22 = vld [vmem:[#allocation8 + $0x234] sm:$0xf0] }
 0x253   :  { %5655 = vmatpush.bf16.msra.mxu3 %v8343_v44  ;;  %5630 = vmatpush.bf16.msra.mxu1 %v8207_v53  ;;  %v8183_v44 = vor.u32 %v9657_v34, %v8182_v31  ;;  %v8238_v53 = vld [vmem:[#allocation8 + $0x110] sm:$0xf]  ;;  %v4044_v31 = vmax.f32 %v10163_v59, 0.0  ;;  %v9729_v37 = vld [vmem:[#allocation8 + $0x2e4] sm:$0xf0]  ;;  %v10231_v59 = vpack.c.bf16 %v4042_v24, %v4042_v24 }
 0x254   :  { %v9745_v39 = vld [vmem:[#allocation8 + $0x364] sm:$0xf0]  ;;  %v8471_v46 = vor.u32 %v9729_v37, %v8470_v41  ;;  %v8518_v10 = vld [vmem:[#allocation8 + $0x340] sm:$0xf]  ;;  %v8446_v24 = vld [vmem:[#allocation8 + $0x2b0] sm:$0xf] }
 0x255   :  { %5643 = vmatpush.bf16.msra.mxu2 %v8271_v54  ;;  %5618 = vmatpush.bf16.msra.mxu0 %v8135_v9  ;;  %v9671_v54 = vld [vmem:[#allocation8 + $0x114] sm:$0xf0]  ;;  %v8230_v9 = vld [vmem:[#allocation8 + $0x100] sm:$0xf]  ;;  %v3831_v12 = vpop.f32.mrf.mxu3  ;;  %v9761_v43 = vld [vmem:[#allocation8 + $0x3e4] sm:$0xf0]  ;;  %v8535_v47 = vor.u32 %v9745_v39, %v8534_v38  ;;  %v10235_v52 = vpack.c.bf16 %v4044_v31, %v4044_v31 }
 0x256   :  { %v8239_v8 = vor.u32 %v9671_v54, %v8238_v53  ;;  %v9727_v54 = vld [vmem:[#allocation8 + $0x2d4] sm:$0xf0]  ;;  %v9725_v7 = vld [vmem:[#allocation8 + $0x2c4] sm:$0xf0]  ;;  %v8374_v41 = vld [vmem:[#allocation8 + $0x220] sm:$0xf] }
 0x257   :  { %5656 = vmatpush.bf16.msra.mxu3 %v8335_v60  ;;  %5631 = vmatpush.bf16.msra.mxu1 %v8199_v4  ;;  %v8102_v60 = vld [vmem:[#allocation8] sm:$0xf]  ;;  %v3818_v3 = vpop.f32.mrf.mxu2  ;;  %v8303_v4 = vor.u32 %v9687_v55, %v8302_v18  ;;  %v8526_v18 = vld [vmem:[#allocation8 + $0x350] sm:$0xf]  ;;  %v9743_v55 = vld [vmem:[#allocation8 + $0x354] sm:$0xf0] }
 0x258   :  { %v8103_v16 = vor.u32 %v9637_v25, %v8102_v60  ;;  %v9759_v60 = vld [vmem:[#allocation8 + $0x3d4] sm:$0xf0]  ;;  %v8399_v25 = vor.u32 %v9711_v49, %v8398_v48  ;;  %v9741_v12 = vld [vmem:[#allocation8 + $0x344] sm:$0xf0]  ;;  %v8438_v37 = vld [vmem:[#allocation8 + $0x2a0] sm:$0xf] }
 0x259   :  { %5644 = vmatpush.bf16.msra.mxu2 %v8263_v5  ;;  %5619 = vmatpush.bf16.msra.mxu0 %v8127_v26  ;;  %v9669_v5 = vld [vmem:[#allocation8 + $0x104] sm:$0xf0]  ;;  %v8167_v26 = vor.u32 %v9653_v1, %v8166_v63  ;;  %v8527_v63 = vor.u32 %v9743_v55, %v8526_v18  ;;  %v10241_v3 = vld [vmem:[#allocation7 + $0x8] sm:$0xff]  ;;  %v8519_v19 = vor.u32 %v9741_v12, %v8518_v10  ;;  %v8566_v48 = vld [vmem:[#allocation8 + $0x3a0] sm:$0xf] }
 0x25a   :  { %v9709_v1 = vld [vmem:[#allocation8 + $0x244] sm:$0xf0]  ;;  %v9739_v31 = vld [vmem:[#allocation8 + $0x334] sm:$0xf0]  ;;  %v8358_v10 = vld [vmem:[#allocation8 + $0x200] sm:$0xf] }
 0x25b   :  { %5657 = vmatpush.bf16.msra.mxu3 %v8327_v21  ;;  %5632 = vmatpush.bf16.msra.mxu1 %v8191_v27  ;;  %v8478_v21 = vld [vmem:[#allocation8 + $0x2f0] sm:$0xf]  ;;  %v8231_v27 = vor.u32 %v9669_v5, %v8230_v9  ;;  %v8454_v9 = vld [vmem:[#allocation8 + $0x2c0] sm:$0xf]  ;;  %v9753_v49 = vld [vmem:[#allocation8 + $0x3a4] sm:$0xf0] }
 0x25c   :  { %v8479_v34 = vor.u32 %v9731_v17, %v8478_v21  ;;  %v8455_v17 = vor.u32 %v9725_v7, %v8454_v9  ;;  %v9735_v9 = vld [vmem:[#allocation8 + $0x314] sm:$0xf0]  ;;  %v9701_v12 = vld [vmem:[#allocation8 + $0x204] sm:$0xf0] }
 0x25d   :  { %5645 = vmatpush.bf16.msra.mxu2 %v8255_v28  ;;  %5620 = vmatpush.bf16.msra.mxu0 %v8119_v40  ;;  %v8606_v28 = vld [vmem:[#allocation8 + $0x3f0] sm:$0xf]  ;;  %v8598_v40 = vld [vmem:[#allocation8 + $0x3e0] sm:$0xf] }
 0x25e   :  { %v8607_v6 = vor.u32 %v9763_v29, %v8606_v28  ;;  %v8599_v53 = vor.u32 %v9761_v43, %v8598_v40  ;;  %v9723_v29 = vld [vmem:[#allocation8 + $0x2b4] sm:$0xf0]  ;;  %v9721_v40 = vld [vmem:[#allocation8 + $0x2a4] sm:$0xf0]  ;;  %v8502_v43 = vld [vmem:[#allocation8 + $0x320] sm:$0xf] }
 0x25f   :  { %5658 = vmatpush.bf16.msra.mxu3 %v8319_v33  ;;  %5633 = vmatpush.bf16.msra.mxu1 %v8183_v44  ;;  %v8415_v33 = vor.u32 %v9715_v15, %v8414_v14  ;;  %v8407_v44 = vor.u32 %v9713_v13, %v8406_v36  ;;  %v8582_v14 = vld [vmem:[#allocation8 + $0x3c0] sm:$0xf]  ;;  %v9757_v15 = vld [vmem:[#allocation8 + $0x3c4] sm:$0xf0]  ;;  %v8447_v36 = vor.u32 %v9723_v29, %v8446_v24  ;;  %v9779_v29 = vld [vmem:[#allocation8 + $0x474] sm:$0xf0] }
 0x260   :  { %v8583_v28 = vor.u32 %v9757_v15, %v8582_v14  ;;  %v8439_v18 = vor.u32 %v9721_v40, %v8438_v37  ;;  %v8550_v24 = vld [vmem:[#allocation8 + $0x380] sm:$0xf]  ;;  %v9827_v37 = vld [vmem:[#allocation8 + $0x5f4] sm:$0xf0] }
 0x261   :  { %5646 = vmatpush.bf16.msra.mxu2 %v8247_v45  ;;  %5621 = vmatpush.bf16.msra.mxu0 %v8111_v58  ;;  %v10233_v45 = vpack.c.bf16 %v4043_v30, %v4043_v30  ;;  %v8590_v58 = vld [vmem:[#allocation8 + $0x3d0] sm:$0xf] }
 0x262   :  { %v8591_v5 = vor.u32 %v9759_v60, %v8590_v58  ;;  %v8510_v30 = vld [vmem:[#allocation8 + $0x330] sm:$0xf]  ;;  %v9703_v60 = vld [vmem:[#allocation8 + $0x214] sm:$0xf0] }
 0x263   :  { %5659 = vmatpush.bf16.msra.mxu3 %v8311_v51  ;;  %5634 = vmatpush.bf16.msra.mxu1 %v8175_v62  ;;  %v8462_v51 = vld [vmem:[#allocation8 + $0x2d0] sm:$0xf]  ;;  %v8390_v62 = vld [vmem:[#allocation8 + $0x240] sm:$0xf]  ;;  %v8511_v13 = vor.u32 %v9739_v31, %v8510_v30  ;;  %v8359_v31 = vor.u32 %v9701_v12, %v8358_v10  ;;  %v9807_v10 = vld [vmem:[#allocation8 + $0x554] sm:$0xf0] }
 0x264   :  { %v8391_v21 = vor.u32 %v9709_v1, %v8390_v62  ;;  %v8366_v58 = vld [vmem:[#allocation8 + $0x210] sm:$0xf] }
 0x265   :  { %5647 = vmatpush.bf16.msra.mxu2 %v8239_v8  ;;  %5622 = vmatpush.bf16.msra.mxu0 %v8103_v16  ;;  %v8463_v8 = vor.u32 %v9727_v54, %v8462_v51  ;;  %v3842_v16 = vpop.f32.mrf.mxu0  ;;  %v8494_v1 = vld [vmem:[#allocation8 + $0x310] sm:$0xf]  ;;  %v8367_v7 = vor.u32 %v9703_v60, %v8366_v58 }
 0x266   :  { %v3868_v38 = vpop.f32.mrf.mxu2  ;;  %v8495_v15 = vor.u32 %v9735_v9, %v8494_v1  ;;  %v8734_v30 = vld [vmem:[#allocation8 + $0x4f0] sm:$0xf] }
 0x267   :  { %5660 = vmatpush.bf16.msra.mxu3 %v8303_v4  ;;  %5635 = vmatpush.bf16.msra.mxu1 %v8167_v26  ;;  %v629_v4 = vperm.slane %v10241_v3, 4  ;;  %v8718_v1 = vld [vmem:[#allocation8 + $0x4d0] sm:$0xf] }
 0x268   :  { %5623 = vmatmul.bf16.vlgmr.msra.gmra.mxu0 %v10229_v0  ;;  %v8846_v12 = vld [vmem:[#allocation8 + $0x5d0] sm:$0xf] }
 0x269   :  { %5648 = vmatpush.bf16.msra.mxu2 %v8231_v27  ;;  %5667 = vmatpush.bf16.msrb.mxu0 %v8415_v33  ;;  %v3843_v26 = vadd.f32 %v3842_v16, %v629_v4  ;;  %v3855_v27 = vpop.f32.mrf.mxu1  ;;  %v9755_v33 = vld [vmem:[#allocation8 + $0x3b4] sm:$0xf0]  ;;  %v8558_v4 = vld [vmem:[#allocation8 + $0x390] sm:$0xf]  ;;  %v9717_v16 = vld [vmem:[#allocation8 + $0x284] sm:$0xf0] }
 0x26a   :  { %5636 = vmatmul.bf16.vlgmr.msra.gmra.mxu1 %v10231_v59 }
 0x26b   :  { %5661 = vmatpush.bf16.msra.mxu3 %v8295_v32  ;;  %5680 = vmatpush.bf16.msrb.mxu1 %v8479_v34  ;;  %v8574_v32 = vld [vmem:[#allocation8 + $0x3b0] sm:$0xf]  ;;  %v3856_v34 = vadd.f32 %v3855_v27, %v3843_v26  ;;  %v9749_v26 = vld [vmem:[#allocation8 + $0x384] sm:$0xf0] }
 0x26c   :  { %5649 = vmatmul.bf16.vlgmr.msra.gmra.mxu2 %v10233_v45  ;;  %v8575_v39 = vor.u32 %v9755_v33, %v8574_v32  ;;  %v9795_v32 = vld [vmem:[#allocation8 + $0x4f4] sm:$0xf0]  ;;  %v8798_v33 = vld [vmem:[#allocation8 + $0x570] sm:$0xf]  ;;  %v8551_v40 = vor.u32 %v9749_v26, %v8550_v24  ;;  %v9789_v24 = vld [vmem:[#allocation8 + $0x4c4] sm:$0xf0] }
 0x26d   :  { %5693 = vmatpush.bf16.msrb.mxu2 %v8543_v35  ;;  %5668 = vmatpush.bf16.msrb.mxu0 %v8407_v44  ;;  %v8383_v35 = vor.u32 %v9707_v22, %v8382_v20  ;;  %v9737_v44 = vld [vmem:[#allocation8 + $0x324] sm:$0xf0]  ;;  %v3844_v54 = vpop.f32.mrf.mxu0  ;;  %v8774_v26 = vld [vmem:[#allocation8 + $0x540] sm:$0xf] }
 0x26e   :  { %5662 = vmatmul.bf16.vlgmr.msra.gmra.mxu3 %v10235_v52  ;;  %v8503_v55 = vor.u32 %v9737_v44, %v8502_v43  ;;  %v9733_v22 = vld [vmem:[#allocation8 + $0x304] sm:$0xf0]  ;;  %v8735_v44 = vor.u32 %v9795_v32, %v8734_v30 }
 0x26f   :  { %5706 = vmatpush.bf16.msrb.mxu3 %v8607_v6  ;;  %5681 = vmatpush.bf16.msrb.mxu1 %v8471_v46  ;;  %v9705_v6 = vld [vmem:[#allocation8 + $0x224] sm:$0xf0]  ;;  %v3869_v46 = vadd.f32 %v3868_v38, %v3856_v34  ;;  %v9811_v34 = vld [vmem:[#allocation8 + $0x574] sm:$0xf0]  ;;  %v4047_v38 = vmax.f32 %v10186_v61, 0.0 }
 0x270   :  { %v8375_v51 = vor.u32 %v9705_v6, %v8374_v41  ;;  %v8862_v6 = vld [vmem:[#allocation8 + $0x5f0] sm:$0xf]  ;;  %v9809_v54 = vld [vmem:[#allocation8 + $0x564] sm:$0xf0] }
 0x271   :  { %5694 = vmatpush.bf16.msrb.mxu2 %v8535_v47  ;;  %5669 = vmatpush.bf16.msrb.mxu0 %v8399_v25  ;;  %v3881_v47 = vpop.f32.mrf.mxu3  ;;  %v8430_v25 = vld [vmem:[#allocation8 + $0x290] sm:$0xf]  ;;  %v3857_v62 = vpop.f32.mrf.mxu1  ;;  %v10254_v60 = vpack.c.bf16 %v4047_v38, %v4047_v38  ;;  %v9803_v38 = vld [vmem:[#allocation8 + $0x534] sm:$0xf0] }
 0x273   :  { %5707 = vmatpush.bf16.msrb.mxu3 %v8599_v53  ;;  %5682 = vmatpush.bf16.msrb.mxu1 %v8463_v8  ;;  %v10244_v53 = vadd.f32 %v3881_v47, %v3869_v46  ;;  %v8567_v8 = vor.u32 %v9753_v49, %v8566_v48  ;;  %v8799_v46 = vor.u32 %v9811_v34, %v8798_v33  ;;  %v8662_v47 = vld [vmem:[#allocation8 + $0x460] sm:$0xf]  ;;  %v9777_v48 = vld [vmem:[#allocation8 + $0x464] sm:$0xf0]  ;;  %v8638_v34 = vld [vmem:[#allocation8 + $0x430] sm:$0xf] }
 0x274   :  { %v9793_v49 = vld [vmem:[#allocation8 + $0x4e4] sm:$0xf0]  ;;  %v8663_v58 = vor.u32 %v9777_v48, %v8662_v47  ;;  %v8630_v47 = vld [vmem:[#allocation8 + $0x420] sm:$0xf] }
 0x275   :  { %5695 = vmatpush.bf16.msrb.mxu2 %v8527_v63  ;;  %5670 = vmatpush.bf16.msrb.mxu0 %v8391_v21  ;;  %v9719_v63 = vld [vmem:[#allocation8 + $0x294] sm:$0xf0]  ;;  %v8422_v21 = vld [vmem:[#allocation8 + $0x280] sm:$0xf]  ;;  %v9769_v48 = vld [vmem:[#allocation8 + $0x424] sm:$0xf0] }
 0x276   :  { %v8431_v14 = vor.u32 %v9719_v63, %v8430_v25  ;;  %v9775_v63 = vld [vmem:[#allocation8 + $0x454] sm:$0xf0] }
 0x277   :  { %5708 = vmatpush.bf16.msrb.mxu3 %v8591_v5  ;;  %5683 = vmatpush.bf16.msrb.mxu1 %v8455_v17  ;;  %v9751_v5 = vld [vmem:[#allocation8 + $0x394] sm:$0xf0]  ;;  %v8486_v17 = vld [vmem:[#allocation8 + $0x300] sm:$0xf] }
 0x278   :  { %v8559_v20 = vor.u32 %v9751_v5, %v8558_v4  ;;  %v8487_v41 = vor.u32 %v9733_v22, %v8486_v17  ;;  %v9791_v5 = vld [vmem:[#allocation8 + $0x4d4] sm:$0xf0]  ;;  %v8646_v17 = vld [vmem:[#allocation8 + $0x440] sm:$0xf] }
 0x279   :  { %5696 = vmatpush.bf16.msrb.mxu2 %v8519_v19  ;;  %5671 = vmatpush.bf16.msrb.mxu0 %v8383_v35  ;;  %v3870_v19 = vpop.f32.mrf.mxu2  ;;  %v3883_v27 = vpop.f32.mrf.mxu3  ;;  %v4045_v35 = vmax.f32 %v10172_v56, 0.0  ;;  %v8726_v56 = vld [vmem:[#allocation8 + $0x4e0] sm:$0xf] }
 0x27a   :  { %v8727_v25 = vor.u32 %v9793_v49, %v8726_v56  ;;  %v9773_v19 = vld [vmem:[#allocation8 + $0x444] sm:$0xf0]  ;;  %v8694_v56 = vld [vmem:[#allocation8 + $0x4a0] sm:$0xf] }
 0x27b   :  { %5709 = vmatpush.bf16.msrb.mxu3 %v8583_v28  ;;  %5684 = vmatpush.bf16.msrb.mxu1 %v8447_v36  ;;  %v8670_v28 = vld [vmem:[#allocation8 + $0x470] sm:$0xf]  ;;  %v4046_v36 = vmax.f32 %v10179_v57, 0.0  ;;  %v8863_v57 = vor.u32 %v9827_v37, %v8862_v6  ;;  %v10250_v61 = vpack.c.bf16 %v4045_v35, %v4045_v35  ;;  %v9805_v27 = vld [vmem:[#allocation8 + $0x544] sm:$0xf0]  ;;  %v8647_v30 = vor.u32 %v9773_v19, %v8646_v17 }
 0x27c   :  { %v8671_v43 = vor.u32 %v9779_v29, %v8670_v28  ;;  %v8838_v28 = vld [vmem:[#allocation8 + $0x5c0] sm:$0xf]  ;;  %v9821_v29 = vld [vmem:[#allocation8 + $0x5c4] sm:$0xf0]  ;;  %v8775_v33 = vor.u32 %v9805_v27, %v8774_v26  ;;  %v9771_v35 = vld [vmem:[#allocation8 + $0x434] sm:$0xf0] }
 0x27d   :  { %5697 = vmatpush.bf16.msrb.mxu2 %v8511_v13  ;;  %5672 = vmatpush.bf16.msrb.mxu0 %v8375_v51  ;;  %v8423_v13 = vor.u32 %v9717_v16, %v8422_v21  ;;  %v8790_v51 = vld [vmem:[#allocation8 + $0x560] sm:$0xf]  ;;  %v8719_v21 = vor.u32 %v9791_v5, %v8718_v1  ;;  %v9787_v6 = vld [vmem:[#allocation8 + $0x4b4] sm:$0xf0]  ;;  %v8766_v37 = vld [vmem:[#allocation8 + $0x530] sm:$0xf] }
 0x27e   :  { %v8791_v62 = vor.u32 %v9809_v54, %v8790_v51  ;;  %v9785_v51 = vld [vmem:[#allocation8 + $0x4a4] sm:$0xf0]  ;;  %v8758_v54 = vld [vmem:[#allocation8 + $0x520] sm:$0xf]  ;;  %v9767_v5 = vld [vmem:[#allocation8 + $0x414] sm:$0xf0] }
 0x27f   :  { %5710 = vmatpush.bf16.msrb.mxu3 %v8575_v39  ;;  %5685 = vmatpush.bf16.msrb.mxu1 %v8439_v18  ;;  %v4048_v39 = vmax.f32 %v10193_v2, 0.0  ;;  %v8854_v18 = vld [vmem:[#allocation8 + $0x5e0] sm:$0xf]  ;;  %v10252_v2 = vpack.c.bf16 %v4046_v36, %v4046_v36  ;;  %v8702_v36 = vld [vmem:[#allocation8 + $0x4b0] sm:$0xf] }
 0x280   :  { %v9815_v17 = vld [vmem:[#allocation8 + $0x594] sm:$0xf0]  ;;  %v8678_v27 = vld [vmem:[#allocation8 + $0x480] sm:$0xf] }
 0x281   :  { %5698 = vmatpush.bf16.msrb.mxu2 %v8503_v55  ;;  %5673 = vmatpush.bf16.msrb.mxu0 %v8367_v7  ;;  %v9825_v55 = vld [vmem:[#allocation8 + $0x5e4] sm:$0xf0]  ;;  %v10256_v9 = vpack.c.bf16 %v4048_v39, %v4048_v39  ;;  %v8782_v7 = vld [vmem:[#allocation8 + $0x550] sm:$0xf] }
 0x282   :  { %v8855_v4 = vor.u32 %v9825_v55, %v8854_v18  ;;  %v8783_v16 = vor.u32 %v9807_v10, %v8782_v7  ;;  %v8830_v39 = vld [vmem:[#allocation8 + $0x5b0] sm:$0xf]  ;;  %v9801_v18 = vld [vmem:[#allocation8 + $0x524] sm:$0xf0] }
 0x283   :  { %5711 = vmatpush.bf16.msrb.mxu3 %v8567_v8  ;;  %5686 = vmatpush.bf16.msrb.mxu1 %v8431_v14  ;;  %v8654_v8 = vld [vmem:[#allocation8 + $0x450] sm:$0xf]  ;;  %v9823_v14 = vld [vmem:[#allocation8 + $0x5d4] sm:$0xf0]  ;;  %v8759_v1 = vor.u32 %v9801_v18, %v8758_v54  ;;  %v4052_v54 = vmax.f32 %v10223_v42, 0.0 }
 0x284   :  { %v8847_v22 = vor.u32 %v9823_v14, %v8846_v12  ;;  %v8686_v7 = vld [vmem:[#allocation8 + $0x490] sm:$0xf]  ;;  %v9783_v14 = vld [vmem:[#allocation8 + $0x494] sm:$0xf0] }
 0x285   :  { %5699 = vmatpush.bf16.msrb.mxu2 %v8495_v15  ;;  %5674 = vmatpush.bf16.msrb.mxu0 %v8359_v31  ;;  %v8655_v15 = vor.u32 %v9775_v63, %v8654_v8  ;;  %v10262_v31 = vpop.f32.mrf.mxu0  ;;  %v8695_v63 = vor.u32 %v9785_v51, %v8694_v56  ;;  %v9118_v56 = vld [vmem:[#allocation8 + $0x7f0] sm:$0xf]  ;;  %v4051_v51 = vmax.f32 %v10216_v50, 0.0 }
 0x287   :  { %5712 = vmatpush.bf16.msrb.mxu3 %v8559_v20  ;;  %5687 = vmatpush.bf16.msrb.mxu1 %v8423_v13  ;;  %v8710_v20 = vld [vmem:[#allocation8 + $0x4c0] sm:$0xf]  ;;  %v10264_v13 = vpop.f32.mrf.mxu1 }
 0x288   :  { %5675 = vmatmul.bf16.vlgmr.msrb.gmra.mxu0 %v10250_v61  ;;  %v8711_v32 = vor.u32 %v9789_v24, %v8710_v20  ;;  %v8614_v20 = vld [vmem:[#allocation8 + $0x400] sm:$0xf]  ;;  %v8687_v24 = vor.u32 %v9783_v14, %v8686_v7  ;;  %v10278_v14 = vpack.c.bf16 %v4051_v51, %v4051_v51  ;;  %v9835_v51 = vld [vmem:[#allocation8 + $0x634] sm:$0xf0] }
 0x289   :  { %5700 = vmatpush.bf16.msrb.mxu2 %v8487_v41  ;;  %5719 = vmatpush.bf16.msra.mxu0 %v8671_v43  ;;  %v8839_v41 = vor.u32 %v9821_v29, %v8838_v28  ;;  %v8639_v43 = vor.u32 %v9771_v35, %v8638_v34  ;;  %v9781_v28 = vld [vmem:[#allocation8 + $0x484] sm:$0xf0]  ;;  %v8742_v29 = vld [vmem:[#allocation8 + $0x500] sm:$0xf] }
 0x28a   :  { %5688 = vmatmul.bf16.vlgmr.msrb.gmra.mxu1 %v10252_v2  ;;  %v8806_v34 = vld [vmem:[#allocation8 + $0x580] sm:$0xf]  ;;  %v9813_v35 = vld [vmem:[#allocation8 + $0x584] sm:$0xf0] }
 0x28b   :  { %5713 = vmatpush.bf16.msrb.mxu3 %v8551_v40  ;;  %5732 = vmatpush.bf16.msra.mxu1 %v8735_v44  ;;  %v9819_v40 = vld [vmem:[#allocation8 + $0x5b4] sm:$0xf0]  ;;  %v8703_v44 = vor.u32 %v9787_v6, %v8702_v36  ;;  %v10268_v55 = vpop.f32.mrf.mxu3  ;;  %v8807_v18 = vor.u32 %v9813_v35, %v8806_v34  ;;  %v9110_v7 = vld [vmem:[#allocation8 + $0x7e0] sm:$0xf] }
 0x28c   :  { %5701 = vmatmul.bf16.vlgmr.msrb.gmra.mxu2 %v10254_v60  ;;  %v8831_v49 = vor.u32 %v9819_v40, %v8830_v39  ;;  %v9843_v6 = vld [vmem:[#allocation8 + $0x674] sm:$0xf0]  ;;  %v9054_v40 = vld [vmem:[#allocation8 + $0x770] sm:$0xf] }
 0x28d   :  { %5745 = vmatpush.bf16.msra.mxu2 %v8799_v46  ;;  %5720 = vmatpush.bf16.msra.mxu0 %v8663_v58  ;;  %v8767_v46 = vor.u32 %v9803_v38, %v8766_v37  ;;  %v8822_v58 = vld [vmem:[#allocation8 + $0x5a0] sm:$0xf]  ;;  %v3896_v8 = vpop.f32.mrf.mxu0  ;;  %v8990_v37 = vld [vmem:[#allocation8 + $0x6f0] sm:$0xf]  ;;  %v9859_v39 = vld [vmem:[#allocation8 + $0x6f4] sm:$0xf0] }
 0x28e   :  { %5714 = vmatmul.bf16.vlgmr.msrb.gmra.mxu3 %v10256_v9  ;;  %v8918_v8 = vld [vmem:[#allocation8 + $0x660] sm:$0xf] }
 0x28f   :  { %5758 = vmatpush.bf16.msra.mxu3 %v8863_v57  ;;  %5733 = vmatpush.bf16.msra.mxu1 %v8727_v25  ;;  %v10266_v57 = vpop.f32.mrf.mxu2  ;;  %v9817_v25 = vld [vmem:[#allocation8 + $0x5a4] sm:$0xf0]  ;;  %v3909_v10 = vpop.f32.mrf.mxu1 }
 0x290   :  { %v8823_v12 = vor.u32 %v9817_v25, %v8822_v58  ;;  %v8991_v25 = vor.u32 %v9859_v39, %v8990_v37  ;;  %v9889_v10 = vld [vmem:[#allocation8 + $0x7e4] sm:$0xf0]  ;;  %v9030_v39 = vld [vmem:[#allocation8 + $0x740] sm:$0xf] }
 0x291   :  { %5746 = vmatpush.bf16.msra.mxu2 %v8791_v62  ;;  %5721 = vmatpush.bf16.msra.mxu0 %v8655_v15  ;;  %v8631_v62 = vor.u32 %v9769_v48, %v8630_v47  ;;  %v8750_v15 = vld [vmem:[#allocation8 + $0x510] sm:$0xf]  ;;  %v8679_v47 = vor.u32 %v9781_v28, %v8678_v27  ;;  %v9871_v27 = vld [vmem:[#allocation8 + $0x754] sm:$0xf0] }
 0x292   :  { %v9102_v28 = vld [vmem:[#allocation8 + $0x7d0] sm:$0xf] }
 0x293   :  { %5759 = vmatpush.bf16.msra.mxu3 %v8855_v4  ;;  %5734 = vmatpush.bf16.msra.mxu1 %v8719_v21  ;;  %v8622_v4 = vld [vmem:[#allocation8 + $0x410] sm:$0xf]  ;;  %v9799_v21 = vld [vmem:[#allocation8 + $0x514] sm:$0xf0]  ;;  %v3935_v36 = vpop.f32.mrf.mxu3 }
 0x294   :  { %v8623_v19 = vor.u32 %v9767_v5, %v8622_v4  ;;  %v8751_v26 = vor.u32 %v9799_v21, %v8750_v15  ;;  %v9046_v4 = vld [vmem:[#allocation8 + $0x760] sm:$0xf]  ;;  %v9873_v5 = vld [vmem:[#allocation8 + $0x764] sm:$0xf0] }
 0x295   :  { %5747 = vmatpush.bf16.msra.mxu2 %v8783_v16  ;;  %5722 = vmatpush.bf16.msra.mxu0 %v8647_v30  ;;  %v8814_v16 = vld [vmem:[#allocation8 + $0x590] sm:$0xf]  ;;  %v9047_v21 = vor.u32 %v9873_v5, %v9046_v4  ;;  %v9837_v36 = vld [vmem:[#allocation8 + $0x644] sm:$0xf0] }
 0x297   :  { %5760 = vmatpush.bf16.msra.mxu3 %v8847_v22  ;;  %5735 = vmatpush.bf16.msra.mxu1 %v8711_v32  ;;  %v9765_v22 = vld [vmem:[#allocation8 + $0x404] sm:$0xf0]  ;;  %v3922_v30 = vpop.f32.mrf.mxu2  ;;  %v8815_v32 = vor.u32 %v9815_v17, %v8814_v16  ;;  %v8910_v16 = vld [vmem:[#allocation8 + $0x650] sm:$0xf]  ;;  %v9839_v17 = vld [vmem:[#allocation8 + $0x654] sm:$0xf0] }
 0x298   :  { %v8615_v38 = vor.u32 %v9765_v22, %v8614_v20  ;;  %v10280_v20 = vpack.c.bf16 %v4052_v54, %v4052_v54  ;;  %v9111_v22 = vor.u32 %v9889_v10, %v9110_v7  ;;  %v8911_v30 = vor.u32 %v9839_v17, %v8910_v16  ;;  %v8958_v54 = vld [vmem:[#allocation8 + $0x6b0] sm:$0xf] }
 0x299   :  { %5748 = vmatpush.bf16.msra.mxu2 %v8775_v33  ;;  %5723 = vmatpush.bf16.msra.mxu0 %v8639_v43  ;;  %v9797_v33 = vld [vmem:[#allocation8 + $0x504] sm:$0xf0]  ;;  %v9875_v43 = vld [vmem:[#allocation8 + $0x774] sm:$0xf0] }
 0x29a   :  { %v8743_v48 = vor.u32 %v9797_v33, %v8742_v29  ;;  %v9887_v29 = vld [vmem:[#allocation8 + $0x7d4] sm:$0xf0]  ;;  %v630_v33 = vperm.slane %v10241_v3, 5 }
 0x29b   :  { %5761 = vmatpush.bf16.msra.mxu3 %v8839_v41  ;;  %5736 = vmatpush.bf16.msra.mxu1 %v8703_v44  ;;  %v8926_v41 = vld [vmem:[#allocation8 + $0x670] sm:$0xf]  ;;  %v4049_v44 = vmax.f32 %v10202_v11, 0.0  ;;  %v8982_v11 = vld [vmem:[#allocation8 + $0x6e0] sm:$0xf]  ;;  %v9103_v37 = vor.u32 %v9887_v29, %v9102_v28 }
 0x29c   :  { %v8927_v58 = vor.u32 %v9843_v6, %v8926_v41  ;;  %v8966_v41 = vld [vmem:[#allocation8 + $0x6c0] sm:$0xf]  ;;  %v631_v6 = vperm.slane %v10241_v3, 6  ;;  %v9881_v28 = vld [vmem:[#allocation8 + $0x7a4] sm:$0xf0] }
 0x29d   :  { %5749 = vmatpush.bf16.msra.mxu2 %v8767_v46  ;;  %5724 = vmatpush.bf16.msra.mxu0 %v8631_v62  ;;  %v4050_v46 = vmax.f32 %v10209_v23, 0.0  ;;  %v9055_v62 = vor.u32 %v9875_v43, %v9054_v40  ;;  %v10274_v50 = vpack.c.bf16 %v4049_v44, %v4049_v44  ;;  %v9869_v40 = vld [vmem:[#allocation8 + $0x744] sm:$0xf0]  ;;  %v9094_v43 = vld [vmem:[#allocation8 + $0x7c0] sm:$0xf] }
 0x29e   :  { %v9885_v44 = vld [vmem:[#allocation8 + $0x7c4] sm:$0xf0] }
 0x29f   :  { %5762 = vmatpush.bf16.msra.mxu3 %v8831_v49  ;;  %5737 = vmatpush.bf16.msra.mxu1 %v8695_v63  ;;  %v9891_v49 = vld [vmem:[#allocation8 + $0x7f4] sm:$0xf0]  ;;  %v9841_v63 = vld [vmem:[#allocation8 + $0x664] sm:$0xf0]  ;;  %v10276_v42 = vpack.c.bf16 %v4050_v46, %v4050_v46 }
 0x2a0   :  { %v9119_v23 = vor.u32 %v9891_v49, %v9118_v56  ;;  %v9031_v56 = vor.u32 %v9869_v40, %v9030_v39  ;;  %v8894_v49 = vld [vmem:[#allocation8 + $0x630] sm:$0xf]  ;;  %v9863_v40 = vld [vmem:[#allocation8 + $0x714] sm:$0xf0] }
 0x2a1   :  { %5750 = vmatpush.bf16.msra.mxu2 %v8759_v1  ;;  %5725 = vmatpush.bf16.msra.mxu0 %v8623_v19  ;;  %v9857_v1 = vld [vmem:[#allocation8 + $0x6e4] sm:$0xf0]  ;;  %v8974_v19 = vld [vmem:[#allocation8 + $0x6d0] sm:$0xf]  ;;  %v8895_v4 = vor.u32 %v9835_v51, %v8894_v49 }
 0x2a2   :  { %v8983_v15 = vor.u32 %v9857_v1, %v8982_v11  ;;  %v9867_v11 = vld [vmem:[#allocation8 + $0x734] sm:$0xf0]  ;;  %v9006_v39 = vld [vmem:[#allocation8 + $0x710] sm:$0xf] }
 0x2a3   :  { %5763 = vmatpush.bf16.msra.mxu3 %v8823_v12  ;;  %5738 = vmatpush.bf16.msra.mxu1 %v8687_v24  ;;  %v8919_v12 = vor.u32 %v9841_v63, %v8918_v8  ;;  %v9855_v24 = vld [vmem:[#allocation8 + $0x6d4] sm:$0xf0]  ;;  %v9022_v63 = vld [vmem:[#allocation8 + $0x730] sm:$0xf]  ;;  %v9007_v51 = vor.u32 %v9863_v40, %v9006_v39 }
 0x2a4   :  { %v8975_v34 = vor.u32 %v9855_v24, %v8974_v19  ;;  %v9851_v8 = vld [vmem:[#allocation8 + $0x6b4] sm:$0xf0]  ;;  %v9023_v7 = vor.u32 %v9867_v11, %v9022_v63  ;;  %v9849_v19 = vld [vmem:[#allocation8 + $0x6a4] sm:$0xf0]  ;;  %v9062_v63 = vld [vmem:[#allocation8 + $0x780] sm:$0xf] }
 0x2a5   :  { %5751 = vmatpush.bf16.msra.mxu2 %v8751_v26  ;;  %5726 = vmatpush.bf16.msra.mxu0 %v8615_v38  ;;  %v9038_v26 = vld [vmem:[#allocation8 + $0x750] sm:$0xf]  ;;  %v9853_v38 = vld [vmem:[#allocation8 + $0x6c4] sm:$0xf0]  ;;  %v9883_v1 = vld [vmem:[#allocation8 + $0x7b4] sm:$0xf0]  ;;  %v8959_v5 = vor.u32 %v9851_v8, %v8958_v54 }
 0x2a6   :  { %v9039_v35 = vor.u32 %v9871_v27, %v9038_v26  ;;  %v9865_v24 = vld [vmem:[#allocation8 + $0x724] sm:$0xf0]  ;;  %v9078_v27 = vld [vmem:[#allocation8 + $0x7a0] sm:$0xf] }
 0x2a7   :  { %5764 = vmatpush.bf16.msra.mxu3 %v8815_v32  ;;  %5739 = vmatpush.bf16.msra.mxu1 %v8679_v47  ;;  %v8902_v32 = vld [vmem:[#allocation8 + $0x640] sm:$0xf]  ;;  %v3946_v47 = vpop.f32.mrf.mxu0  ;;  %v9861_v8 = vld [vmem:[#allocation8 + $0x704] sm:$0xf0] }
 0x2a8   :  { %5727 = vmatmul.bf16.vlgmr.msra.gmra.mxu0 %v10274_v50  ;;  %v8903_v46 = vor.u32 %v9837_v36, %v8902_v32  ;;  %v9831_v36 = vld [vmem:[#allocation8 + $0x614] sm:$0xf0]  ;;  %v8934_v54 = vld [vmem:[#allocation8 + $0x680] sm:$0xf]  ;;  %v9877_v11 = vld [vmem:[#allocation8 + $0x784] sm:$0xf0] }
 0x2a9   :  { %5752 = vmatpush.bf16.msra.mxu2 %v8743_v48  ;;  %5771 = vmatpush.bf16.msrb.mxu0 %v8927_v58  ;;  %v8967_v48 = vor.u32 %v9853_v38, %v8966_v41  ;;  %v3959_v58 = vpop.f32.mrf.mxu1  ;;  %v8942_v41 = vld [vmem:[#allocation8 + $0x690] sm:$0xf]  ;;  %v9847_v38 = vld [vmem:[#allocation8 + $0x694] sm:$0xf0] }
 0x2aa   :  { %5740 = vmatmul.bf16.vlgmr.msra.gmra.mxu1 %v10276_v42  ;;  %v8943_v49 = vor.u32 %v9847_v38, %v8942_v41 }
 0x2ab   :  { %5765 = vmatpush.bf16.msra.mxu3 %v8807_v18  ;;  %5784 = vmatpush.bf16.msrb.mxu1 %v8991_v25  ;;  %v3947_v18 = vadd.f32 %v3946_v47, %v631_v6  ;;  %v3895_v25 = vadd.f32 %v10262_v31, %v630_v33  ;;  %v8870_v47 = vld [vmem:[#allocation8 + $0x600] sm:$0xf] }
 0x2ac   :  { %5753 = vmatmul.bf16.vlgmr.msra.gmra.mxu2 %v10278_v14  ;;  %v3972_v16 = vpop.f32.mrf.mxu2 }
 0x2ad   :  { %5797 = vmatpush.bf16.msrb.mxu2 %v9055_v62  ;;  %5772 = vmatpush.bf16.msrb.mxu0 %v8919_v12  ;;  %v9095_v62 = vor.u32 %v9885_v44, %v9094_v43  ;;  %v3960_v10 = vadd.f32 %v3959_v58, %v3947_v18  ;;  %v8886_v12 = vld [vmem:[#allocation8 + $0x620] sm:$0xf]  ;;  %v3908_v31 = vadd.f32 %v10264_v13, %v3895_v25  ;;  %v9070_v43 = vld [vmem:[#allocation8 + $0x790] sm:$0xf]  ;;  %v9879_v44 = vld [vmem:[#allocation8 + $0x794] sm:$0xf0] }
 0x2ae   :  { %5766 = vmatmul.bf16.vlgmr.msra.gmra.mxu3 %v10280_v20  ;;  %v3985_v26 = vpop.f32.mrf.mxu3  ;;  %v9845_v18 = vld [vmem:[#allocation8 + $0x684] sm:$0xf0]  ;;  %v8998_v58 = vld [vmem:[#allocation8 + $0x700] sm:$0xf] }
 0x2af   :  { %5810 = vmatpush.bf16.msrb.mxu3 %v9119_v23  ;;  %5785 = vmatpush.bf16.msrb.mxu1 %v8983_v15  ;;  %v9086_v23 = vld [vmem:[#allocation8 + $0x7b0] sm:$0xf]  ;;  %v9833_v15 = vld [vmem:[#allocation8 + $0x624] sm:$0xf0]  ;;  %v3921_v6 = vadd.f32 %v10266_v57, %v3908_v31  ;;  %v8999_v31 = vor.u32 %v9861_v8, %v8998_v58  ;;  %v632_v58 = vperm.slane %v10241_v3, 7 }
 0x2b0   :  { %v9087_v17 = vor.u32 %v9883_v1, %v9086_v23  ;;  %v8887_v29 = vor.u32 %v9833_v15, %v8886_v12  ;;  %v9650_v1 = vld [vmem:[#allocation8 + $0x74] sm:$0xf]  ;;  %v8288_v15 = vld [vmem:[#allocation8 + $0x178] sm:$0xf0]  ;;  %v8136_v8 = vld [vmem:[#allocation8 + $0x48] sm:$0xf0] }
 0x2b1   :  { %5798 = vmatpush.bf16.msrb.mxu2 %v9047_v21  ;;  %5773 = vmatpush.bf16.msrb.mxu0 %v8911_v30  ;;  %v8950_v21 = vld [vmem:[#allocation8 + $0x6a0] sm:$0xf]  ;;  %v3948_v30 = vpop.f32.mrf.mxu0  ;;  %v3961_v13 = vpop.f32.mrf.mxu1  ;;  %v3934_v25 = vadd.f32 %v10268_v55, %v3921_v6  ;;  %v9682_v12 = vld [vmem:[#allocation8 + $0x174] sm:$0xf] }
 0x2b2   :  { %v8951_v32 = vor.u32 %v9849_v19, %v8950_v21  ;;  %v9698_v55 = vld [vmem:[#allocation8 + $0x1f4] sm:$0xf]  ;;  %v4053_v19 = vmax.f32 %v10244_v53, 0.0  ;;  %v8152_v30 = vld [vmem:[#allocation8 + $0x68] sm:$0xf0] }
 0x2b3   :  { %5811 = vmatpush.bf16.msrb.mxu3 %v9111_v22  ;;  %5786 = vmatpush.bf16.msrb.mxu1 %v8975_v34  ;;  %v9014_v22 = vld [vmem:[#allocation8 + $0x720] sm:$0xf]  ;;  %v3973_v34 = vadd.f32 %v3972_v16, %v3960_v10  ;;  %v8224_v10 = vld [vmem:[#allocation8 + $0xf8] sm:$0xf0]  ;;  %v8935_v16 = vor.u32 %v9845_v18, %v8934_v54  ;;  %v9696_v13 = vld [vmem:[#allocation8 + $0x1e4] sm:$0xf] }
 0x2b4   :  { %v9015_v33 = vor.u32 %v9865_v24, %v9014_v22  ;;  %v3974_v57 = vpop.f32.mrf.mxu2  ;;  %v4054_v22 = vmax.f32 %v3934_v25, 0.0  ;;  %v9063_v24 = vor.u32 %v9877_v11, %v9062_v63  ;;  %v8344_v53 = vld [vmem:[#allocation8 + $0x1e8] sm:$0xf0]  ;;  %v10295_v6 = vpack.c.bf16 %v4053_v19, %v4053_v19  ;;  %v8336_v54 = vld [vmem:[#allocation8 + $0x1d8] sm:$0xf0] }
 0x2b5   :  { %5799 = vmatpush.bf16.msrb.mxu2 %v9039_v35  ;;  %5774 = vmatpush.bf16.msrb.mxu0 %v8903_v46  ;;  %v8878_v35 = vld [vmem:[#allocation8 + $0x610] sm:$0xf]  ;;  %v9660_v63 = vld [vmem:[#allocation8 + $0xc4] sm:$0xf] }
 0x2b6   :  { %v8879_v46 = vor.u32 %v9831_v36, %v8878_v35  ;;  %v3987_v23 = vpop.f32.mrf.mxu3  ;;  %v9680_v35 = vld [vmem:[#allocation8 + $0x164] sm:$0xf]  ;;  %v8280_v36 = vld [vmem:[#allocation8 + $0x168] sm:$0xf0]  ;;  %v10297_v38 = vpack.c.bf16 %v4054_v22, %v4054_v22  ;;  %v8192_v22 = vld [vmem:[#allocation8 + $0xb8] sm:$0xf0] }
 0x2b7   :  { %5812 = vmatpush.bf16.msrb.mxu3 %v9103_v37  ;;  %5787 = vmatpush.bf16.msrb.mxu1 %v8967_v48  ;;  %v9079_v37 = vor.u32 %v9881_v28, %v9078_v27  ;;  %v9829_v48 = vld [vmem:[#allocation8 + $0x604] sm:$0xf0]  ;;  %v8291_v28 = vor.u32 %v9682_v12, %v8288_v15  ;;  %v8283_v40 = vor.u32 %v9680_v35, %v8280_v36  ;;  %v8200_v23 = vld [vmem:[#allocation8 + $0xc8] sm:$0xf0]  ;;  %v9656_v36 = vld [vmem:[#allocation8 + $0xa4] sm:$0xf] }
 0x2b8   :  { %v8203_v3 = vor.u32 %v9660_v63, %v8200_v23  ;;  %v8120_v35 = vld [vmem:[#allocation8 + $0x28] sm:$0xf0]  ;;  %v9670_v63 = vld [vmem:[#allocation8 + $0x114] sm:$0xf] }
 0x2b9   :  { %5800 = vmatpush.bf16.msrb.mxu2 %v9031_v56  ;;  %5775 = vmatpush.bf16.msrb.mxu0 %v8895_v4  ;;  %v3986_v56 = vadd.f32 %v3985_v26, %v3973_v34  ;;  %v8160_v4 = vld [vmem:[#allocation8 + $0x78] sm:$0xf0]  ;;  %v8216_v34 = vld [vmem:[#allocation8 + $0xe8] sm:$0xf0] }
 0x2ba   :  { %v8163_v26 = vor.u32 %v9650_v1, %v8160_v4  ;;  %v9676_v1 = vld [vmem:[#allocation8 + $0x144] sm:$0xf]  ;;  %v8264_v4 = vld [vmem:[#allocation8 + $0x148] sm:$0xf0] }
 0x2bb   :  { %5813 = vmatpush.bf16.msrb.mxu3 %v9095_v62  ;;  %5788 = vmatpush.bf16.msrb.mxu1 %v8959_v5  ;;  %v9071_v62 = vor.u32 %v9879_v44, %v9070_v43  ;;  %v9666_v5 = vld [vmem:[#allocation8 + $0xf4] sm:$0xf]  ;;  %v4055_v21 = vmax.f32 %v3986_v56, 0.0  ;;  %v8144_v44 = vld [vmem:[#allocation8 + $0x58] sm:$0xf0] }
 0x2bc   :  { %v8227_v27 = vor.u32 %v9666_v5, %v8224_v10  ;;  %v9646_v43 = vld [vmem:[#allocation8 + $0x54] sm:$0xf]  ;;  %v8328_v10 = vld [vmem:[#allocation8 + $0x1c8] sm:$0xf0] }
 0x2bd   :  { %5801 = vmatpush.bf16.msrb.mxu2 %v9023_v7  ;;  %5776 = vmatpush.bf16.msrb.mxu0 %v8887_v29  ;;  %v8871_v7 = vor.u32 %v9829_v48, %v8870_v47  ;;  %v9648_v29 = vld [vmem:[#allocation8 + $0x64] sm:$0xf]  ;;  %v10293_v41 = vpack.c.bf16 %v4055_v21, %v4055_v21  ;;  %v8347_v47 = vor.u32 %v9696_v13, %v8344_v53  ;;  %v8208_v48 = vld [vmem:[#allocation8 + $0xd8] sm:$0xf0]  ;;  %v9678_v56 = vld [vmem:[#allocation8 + $0x154] sm:$0xf] }
 0x2be   :  { %v8147_v18 = vor.u32 %v9646_v43, %v8144_v44 }
 0x2bf   :  { %5814 = vmatpush.bf16.msrb.mxu3 %v9087_v17  ;;  %5789 = vmatpush.bf16.msrb.mxu1 %v8951_v32  ;;  %v8352_v17 = vld [vmem:[#allocation8 + $0x1f8] sm:$0xf0]  ;;  %v9664_v32 = vld [vmem:[#allocation8 + $0xe4] sm:$0xf] }
 0x2c0   :  { %v8219_v39 = vor.u32 %v9664_v32, %v8216_v34  ;;  %v9640_v34 = vld [vmem:[#allocation8 + $0x24] sm:$0xf] }
 0x2c1   :  { %5802 = vmatpush.bf16.msrb.mxu2 %v9015_v33  ;;  %5777 = vmatpush.bf16.msrb.mxu0 %v8879_v46  ;;  %v8355_v33 = vor.u32 %v9698_v55, %v8352_v17  ;;  %v9662_v46 = vld [vmem:[#allocation8 + $0xd4] sm:$0xf]  ;;  %v8128_v55 = vld [vmem:[#allocation8 + $0x38] sm:$0xf0] }
 0x2c2   :  { %v8211_v57 = vor.u32 %v9662_v46, %v8208_v48  ;;  %v9658_v17 = vld [vmem:[#allocation8 + $0xb4] sm:$0xf]  ;;  %v8312_v48 = vld [vmem:[#allocation8 + $0x1a8] sm:$0xf0] }
 0x2c3   :  { %5815 = vmatpush.bf16.msrb.mxu3 %v9079_v37  ;;  %5790 = vmatpush.bf16.msrb.mxu1 %v8943_v49  ;;  %v8155_v37 = vor.u32 %v9648_v29, %v8152_v30  ;;  %v8272_v49 = vld [vmem:[#allocation8 + $0x158] sm:$0xf0]  ;;  %v8195_v32 = vor.u32 %v9658_v17, %v8192_v22  ;;  %v9684_v22 = vld [vmem:[#allocation8 + $0x184] sm:$0xf] }
 0x2c4   :  { %v8275_v25 = vor.u32 %v9678_v56, %v8272_v49  ;;  %v8320_v29 = vld [vmem:[#allocation8 + $0x1b8] sm:$0xf0]  ;;  %v8123_v49 = vor.u32 %v9640_v34, %v8120_v35 }
 0x2c5   :  { %5803 = vmatpush.bf16.msrb.mxu2 %v9007_v51  ;;  %5778 = vmatpush.bf16.msrb.mxu0 %v8871_v7  ;;  %v9694_v51 = vld [vmem:[#allocation8 + $0x1d4] sm:$0xf]  ;;  %v3998_v5 = vpop.f32.mrf.mxu0  ;;  %v9692_v7 = vld [vmem:[#allocation8 + $0x1c4] sm:$0xf]  ;;  %v8544_v34 = vld [vmem:[#allocation8 + $0x378] sm:$0xf0] }
 0x2c6   :  { %v8339_v11 = vor.u32 %v9694_v51, %v8336_v54  ;;  %v3999_v12 = vadd.f32 %v3998_v5, %v632_v58  ;;  %v8331_v19 = vor.u32 %v9692_v7, %v8328_v10  ;;  %v9638_v58 = vld [vmem:[#allocation8 + $0x14] sm:$0xf]  ;;  %v9636_v7 = vld [vmem:[#allocation8 + $0x4] sm:$0xf]  ;;  %v8104_v10 = vld [vmem:[#allocation8 + $0x8] sm:$0xf0] }
 0x2c7   :  { %5816 = vmatpush.bf16.msrb.mxu3 %v9071_v62  ;;  %5791 = vmatpush.bf16.msrb.mxu1 %v8935_v16  ;;  %v9644_v62 = vld [vmem:[#allocation8 + $0x44] sm:$0xf]  ;;  %v4011_v15 = vpop.f32.mrf.mxu1  ;;  %v8267_v16 = vor.u32 %v9676_v1, %v8264_v4  ;;  %v9686_v1 = vld [vmem:[#allocation8 + $0x194] sm:$0xf]  ;;  %v8304_v4 = vld [vmem:[#allocation8 + $0x198] sm:$0xf0] }
 0x2c8   :  { %5779 = vmatmul.bf16.vlgmr.msrb.gmra.mxu0 %v10295_v6  ;;  %v8139_v21 = vor.u32 %v9644_v62, %v8136_v8  ;;  %v8176_v8 = vld [vmem:[#allocation8 + $0x98] sm:$0xf0] }
 0x2c9   :  { %5804 = vmatpush.bf16.msrb.mxu2 %v8999_v31  ;;  %5823 = vmatpush.bf16.msra.mxu0 %v8163_v26  ;;  %v9642_v31 = vld [vmem:[#allocation8 + $0x34] sm:$0xf]  ;;  %v8256_v26 = vld [vmem:[#allocation8 + $0x138] sm:$0xf0] }
 0x2ca   :  { %5792 = vmatmul.bf16.vlgmr.msrb.gmra.mxu1 %v10297_v38  ;;  %v8131_v30 = vor.u32 %v9642_v31, %v8128_v55  ;;  %v9668_v31 = vld [vmem:[#allocation8 + $0x104] sm:$0xf]  ;;  %v8307_v55 = vor.u32 %v9686_v1, %v8304_v4  ;;  %v8464_v1 = vld [vmem:[#allocation8 + $0x2d8] sm:$0xf0]  ;;  %v9742_v4 = vld [vmem:[#allocation8 + $0x354] sm:$0xf] }
 0x2cb   :  { %5817 = vmatpush.bf16.msrb.mxu3 %v9063_v24  ;;  %5836 = vmatpush.bf16.msra.mxu1 %v8227_v27  ;;  %v9674_v24 = vld [vmem:[#allocation8 + $0x134] sm:$0xf]  ;;  %v4012_v27 = vadd.f32 %v4011_v15, %v3999_v12 }
 0x2cc   :  { %5805 = vmatmul.bf16.vlgmr.msrb.gmra.mxu2 %v10293_v41 }
 0x2cd   :  { %5849 = vmatpush.bf16.msra.mxu2 %v8291_v28  ;;  %5824 = vmatpush.bf16.msra.mxu0 %v8155_v37  ;;  %v9690_v28 = vld [vmem:[#allocation8 + $0x1b4] sm:$0xf]  ;;  %v8184_v37 = vld [vmem:[#allocation8 + $0xa8] sm:$0xf0]  ;;  %v4000_v46 = vpop.f32.mrf.mxu0 }
 0x2ce   :  { %v8323_v13 = vor.u32 %v9690_v28, %v8320_v29  ;;  %v8187_v54 = vor.u32 %v9656_v36, %v8184_v37  ;;  %v8416_v28 = vld [vmem:[#allocation8 + $0x278] sm:$0xf0]  ;;  %v9730_v29 = vld [vmem:[#allocation8 + $0x2f4] sm:$0xf]  ;;  %v8408_v46 = vld [vmem:[#allocation8 + $0x268] sm:$0xf0] }
 0x2cf   :  { %5862 = vmatpush.bf16.msra.mxu3 %v8355_v33  ;;  %5837 = vmatpush.bf16.msra.mxu1 %v8219_v39  ;;  %v8259_v33 = vor.u32 %v9674_v24, %v8256_v26  ;;  %v4024_v53 = vpop.f32.mrf.mxu2  ;;  %v9672_v39 = vld [vmem:[#allocation8 + $0x124] sm:$0xf]  ;;  %v4013_v56 = vpop.f32.mrf.mxu1  ;;  %v8296_v24 = vld [vmem:[#allocation8 + $0x188] sm:$0xf0] }
 0x2d0   :  { %v4025_v43 = vadd.f32 %v4024_v53, %v4012_v27  ;;  %v9714_v27 = vld [vmem:[#allocation8 + $0x274] sm:$0xf]  ;;  %v8608_v53 = vld [vmem:[#allocation8 + $0x3f8] sm:$0xf0]  ;;  %v8299_v37 = vor.u32 %v9684_v22, %v8296_v24  ;;  %v8472_v56 = vld [vmem:[#allocation8 + $0x2e8] sm:$0xf0] }
 0x2d1   :  { %5850 = vmatpush.bf16.msra.mxu2 %v8283_v40  ;;  %5825 = vmatpush.bf16.msra.mxu0 %v8147_v18  ;;  %v8248_v40 = vld [vmem:[#allocation8 + $0x128] sm:$0xf0]  ;;  %v4037_v44 = vpop.f32.mrf.mxu3  ;;  %v9740_v22 = vld [vmem:[#allocation8 + $0x344] sm:$0xf] }
 0x2d2   :  { %v4038_v51 = vadd.f32 %v4037_v44, %v4025_v43  ;;  %v8251_v18 = vor.u32 %v9672_v39, %v8248_v40  ;;  %v8419_v39 = vor.u32 %v9714_v27, %v8416_v28  ;;  %v9712_v44 = vld [vmem:[#allocation8 + $0x264] sm:$0xf] }
 0x2d3   :  { %5863 = vmatpush.bf16.msra.mxu3 %v8347_v47  ;;  %5838 = vmatpush.bf16.msra.mxu1 %v8211_v57  ;;  %v9688_v47 = vld [vmem:[#allocation8 + $0x1a4] sm:$0xf]  ;;  %v8112_v57 = vld [vmem:[#allocation8 + $0x18] sm:$0xf0] }
 0x2d4   :  { %v8315_v62 = vor.u32 %v9688_v47, %v8312_v48  ;;  %v4056_v23 = vmax.f32 %v4038_v51, 0.0  ;;  %v8115_v5 = vor.u32 %v9638_v58, %v8112_v57  ;;  %v9728_v47 = vld [vmem:[#allocation8 + $0x2e4] sm:$0xf]  ;;  %v8536_v51 = vld [vmem:[#allocation8 + $0x368] sm:$0xf0]  ;;  %v8411_v58 = vor.u32 %v9712_v44, %v8408_v46 }
 0x2d5   :  { %5851 = vmatpush.bf16.msra.mxu2 %v8275_v25  ;;  %5826 = vmatpush.bf16.msra.mxu0 %v8139_v21  ;;  %v9654_v25 = vld [vmem:[#allocation8 + $0x94] sm:$0xf] }
 0x2d6   :  { %v10303_v12 = vpack.c.bf16 %v4056_v23, %v4056_v23  ;;  %v8179_v15 = vor.u32 %v9654_v25, %v8176_v8  ;;  %v9710_v57 = vld [vmem:[#allocation8 + $0x254] sm:$0xf]  ;;  %v8475_v25 = vor.u32 %v9728_v47, %v8472_v56  ;;  %v8400_v8 = vld [vmem:[#allocation8 + $0x258] sm:$0xf0]  ;;  %v8376_v56 = vld [vmem:[#allocation8 + $0x228] sm:$0xf0] }
 0x2d7   :  { %5864 = vmatpush.bf16.msra.mxu3 %v8339_v11  ;;  %5839 = vmatpush.bf16.msra.mxu1 %v8203_v3  ;;  %v8240_v11 = vld [vmem:[#allocation8 + $0x118] sm:$0xf0]  ;;  %v9652_v3 = vld [vmem:[#allocation8 + $0x84] sm:$0xf]  ;;  %v4026_v17 = vpop.f32.mrf.mxu2 }
 0x2d8   :  { %v8243_v21 = vor.u32 %v9670_v63, %v8240_v11  ;;  %5818 = vmatmul.bf16.vlgmr.msrb.gmra.mxu3 %v10303_v12  ;;  %v9726_v63 = vld [vmem:[#allocation8 + $0x2d4] sm:$0xf]  ;;  %v10306_v11 = vld [vmem:[#allocation10] sm:$0x3] }
 0x2d9   :  { %5852 = vmatpush.bf16.msra.mxu2 %v8267_v16  ;;  %5827 = vmatpush.bf16.msra.mxu0 %v8131_v30  ;;  %v8168_v16 = vld [vmem:[#allocation8 + $0x88] sm:$0xf0]  ;;  %v4039_v26 = vpop.f32.mrf.mxu3  ;;  %v8107_v30 = vor.u32 %v9636_v7, %v8104_v10  ;;  %v9758_v7 = vld [vmem:[#allocation8 + $0x3d4] sm:$0xf]  ;;  %v8592_v10 = vld [vmem:[#allocation8 + $0x3d8] sm:$0xf0] }
 0x2da   :  { %v8171_v35 = vor.u32 %v9652_v3, %v8168_v16  ;;  %v8467_v3 = vor.u32 %v9726_v63, %v8464_v1  ;;  %v8595_v17 = vor.u32 %v9758_v7, %v8592_v10  ;;  %v8584_v26 = vld [vmem:[#allocation8 + $0x3c8] sm:$0xf0]  ;;  %v9702_v10 = vld [vmem:[#allocation8 + $0x214] sm:$0xf] }
 0x2db   :  { %5865 = vmatpush.bf16.msra.mxu3 %v8331_v19  ;;  %5840 = vmatpush.bf16.msra.mxu1 %v8195_v32  ;;  %v8232_v19 = vld [vmem:[#allocation8 + $0x108] sm:$0xf0]  ;;  %v8480_v32 = vld [vmem:[#allocation8 + $0x2f8] sm:$0xf0] }
 0x2dc   :  { %v8235_v36 = vor.u32 %v9668_v31, %v8232_v19  ;;  %v8483_v40 = vor.u32 %v9730_v29, %v8480_v32  ;;  %v9708_v31 = vld [vmem:[#allocation8 + $0x244] sm:$0xf]  ;;  %v8456_v19 = vld [vmem:[#allocation8 + $0x2c8] sm:$0xf0] }
 0x2dd   :  { %5853 = vmatpush.bf16.msra.mxu2 %v8259_v33  ;;  %5828 = vmatpush.bf16.msra.mxu0 %v8123_v49  ;;  %v9746_v33 = vld [vmem:[#allocation8 + $0x374] sm:$0xf]  ;;  %v9744_v49 = vld [vmem:[#allocation8 + $0x364] sm:$0xf]  ;;  %v8568_v63 = vld [vmem:[#allocation8 + $0x3a8] sm:$0xf0] }
 0x2de   :  { %v8547_v43 = vor.u32 %v9746_v33, %v8544_v34  ;;  %v9706_v33 = vld [vmem:[#allocation8 + $0x234] sm:$0xf]  ;;  %v8384_v34 = vld [vmem:[#allocation8 + $0x238] sm:$0xf0] }
 0x2df   :  { %5866 = vmatpush.bf16.msra.mxu3 %v8323_v13  ;;  %5841 = vmatpush.bf16.msra.mxu1 %v8187_v54  ;;  %v9762_v13 = vld [vmem:[#allocation8 + $0x3f4] sm:$0xf]  ;;  %v9760_v54 = vld [vmem:[#allocation8 + $0x3e4] sm:$0xf]  ;;  %v8387_v44 = vor.u32 %v9706_v33, %v8384_v34  ;;  %v8552_v34 = vld [vmem:[#allocation8 + $0x388] sm:$0xf0] }
 0x2e0   :  { %v8611_v48 = vor.u32 %v9762_v13, %v8608_v53  ;;  %v8448_v53 = vld [vmem:[#allocation8 + $0x2b8] sm:$0xf0]  ;;  %v9748_v33 = vld [vmem:[#allocation8 + $0x384] sm:$0xf] }
 0x2e1   :  { %5854 = vmatpush.bf16.msra.mxu2 %v8251_v18  ;;  %5829 = vmatpush.bf16.msra.mxu0 %v8115_v5  ;;  %v8600_v18 = vld [vmem:[#allocation8 + $0x3e8] sm:$0xf0]  ;;  %v8528_v5 = vld [vmem:[#allocation8 + $0x358] sm:$0xf0] }
 0x2e2   :  { %v8603_v23 = vor.u32 %v9760_v54, %v8600_v18  ;;  %v8531_v16 = vor.u32 %v9742_v4, %v8528_v5  ;;  %v8440_v18 = vld [vmem:[#allocation8 + $0x2a8] sm:$0xf0] }
 0x2e3   :  { %5867 = vmatpush.bf16.msra.mxu3 %v8315_v62  ;;  %5842 = vmatpush.bf16.msra.mxu1 %v8179_v15  ;;  %v8539_v62 = vor.u32 %v9744_v49, %v8536_v51  ;;  %v8403_v15 = vor.u32 %v9710_v57, %v8400_v8  ;;  %v9720_v49 = vld [vmem:[#allocation8 + $0x2a4] sm:$0xf]  ;;  %v8504_v57 = vld [vmem:[#allocation8 + $0x328] sm:$0xf0] }
 0x2e4   :  { %v9752_v8 = vld [vmem:[#allocation8 + $0x3a4] sm:$0xf]  ;;  %v8443_v5 = vor.u32 %v9720_v49, %v8440_v18 }
 0x2e5   :  { %5855 = vmatpush.bf16.msra.mxu2 %v8243_v21  ;;  %5830 = vmatpush.bf16.msra.mxu0 %v8107_v30  ;;  %v4331_v21 = vperm.slane %v10306_v11, 0  ;;  %v5624_v24 = vpop.f32.mrf.mxu0  ;;  %v9776_v18 = vld [vmem:[#allocation8 + $0x464] sm:$0xf] }
 0x2e7   :  { %5868 = vmatpush.bf16.msra.mxu3 %v8307_v55  ;;  %5843 = vmatpush.bf16.msra.mxu1 %v8171_v35  ;;  %v9724_v55 = vld [vmem:[#allocation8 + $0x2c4] sm:$0xf]  ;;  %v5625_v27 = vadd.f32 %v5624_v24, %v4331_v21  ;;  %v5637_v28 = vpop.f32.mrf.mxu1  ;;  %v9722_v35 = vld [vmem:[#allocation8 + $0x2b4] sm:$0xf] }
 0x2e8   :  { %5831 = vmatmul.bf16.vlgmr.msra.gmra.mxu0 %v10229_v0  ;;  %v8392_v0 = vld [vmem:[#allocation8 + $0x248] sm:$0xf0]  ;;  %v8459_v30 = vor.u32 %v9724_v55, %v8456_v19  ;;  %v8451_v46 = vor.u32 %v9722_v35, %v8448_v53  ;;  %v9718_v21 = vld [vmem:[#allocation8 + $0x294] sm:$0xf] }
 0x2e9   :  { %5856 = vmatpush.bf16.msra.mxu2 %v8235_v36  ;;  %5875 = vmatpush.bf16.msrb.mxu0 %v8419_v39  ;;  %v8395_v29 = vor.u32 %v9708_v31, %v8392_v0  ;;  %v5638_v36 = vadd.f32 %v5637_v28, %v5625_v27  ;;  %v8512_v39 = vld [vmem:[#allocation8 + $0x338] sm:$0xf0]  ;;  %v9734_v31 = vld [vmem:[#allocation8 + $0x314] sm:$0xf]  ;;  %v8424_v27 = vld [vmem:[#allocation8 + $0x288] sm:$0xf0] }
 0x2ea   :  { %5844 = vmatmul.bf16.vlgmr.msra.gmra.mxu1 %v10231_v59  ;;  %v8520_v59 = vld [vmem:[#allocation8 + $0x348] sm:$0xf0]  ;;  %v8496_v0 = vld [vmem:[#allocation8 + $0x318] sm:$0xf0]  ;;  %v9750_v55 = vld [vmem:[#allocation8 + $0x394] sm:$0xf] }
 0x2eb   :  { %5869 = vmatpush.bf16.msra.mxu3 %v8299_v37  ;;  %5888 = vmatpush.bf16.msrb.mxu1 %v8483_v40  ;;  %v8523_v32 = vor.u32 %v9740_v22, %v8520_v59  ;;  %v9738_v37 = vld [vmem:[#allocation8 + $0x334] sm:$0xf]  ;;  %v9700_v22 = vld [vmem:[#allocation8 + $0x204] sm:$0xf]  ;;  %v8360_v59 = vld [vmem:[#allocation8 + $0x208] sm:$0xf0] }
 0x2ec   :  { %5857 = vmatmul.bf16.vlgmr.msra.gmra.mxu2 %v10233_v45  ;;  %v9756_v45 = vld [vmem:[#allocation8 + $0x3c4] sm:$0xf]  ;;  %v9754_v40 = vld [vmem:[#allocation8 + $0x3b4] sm:$0xf]  ;;  %v8515_v47 = vor.u32 %v9738_v37, %v8512_v39  ;;  %v8363_v37 = vor.u32 %v9700_v22, %v8360_v59  ;;  %v8736_v39 = vld [vmem:[#allocation8 + $0x4f8] sm:$0xf0] }
 0x2ed   :  { %5901 = vmatpush.bf16.msrb.mxu2 %v8547_v43  ;;  %5876 = vmatpush.bf16.msrb.mxu0 %v8411_v58  ;;  %v8587_v13 = vor.u32 %v9756_v45, %v8584_v26  ;;  %v8576_v43 = vld [vmem:[#allocation8 + $0x3b8] sm:$0xf0]  ;;  %v9736_v58 = vld [vmem:[#allocation8 + $0x324] sm:$0xf]  ;;  %v8499_v45 = vor.u32 %v9734_v31, %v8496_v0  ;;  %v9794_v53 = vld [vmem:[#allocation8 + $0x4f4] sm:$0xf] }
 0x2ee   :  { %5870 = vmatmul.bf16.vlgmr.msra.gmra.mxu3 %v10235_v52  ;;  %v8579_v51 = vor.u32 %v9754_v40, %v8576_v43  ;;  %v5626_v52 = vpop.f32.mrf.mxu0  ;;  %v8507_v7 = vor.u32 %v9736_v58, %v8504_v57  ;;  %v9716_v26 = vld [vmem:[#allocation8 + $0x284] sm:$0xf]  ;;  %v9810_v40 = vld [vmem:[#allocation8 + $0x574] sm:$0xf]  ;;  %v8800_v43 = vld [vmem:[#allocation8 + $0x578] sm:$0xf0] }
 0x2ef   :  { %5914 = vmatpush.bf16.msrb.mxu3 %v8611_v48  ;;  %5889 = vmatpush.bf16.msrb.mxu1 %v8475_v25  ;;  %v9704_v48 = vld [vmem:[#allocation8 + $0x224] sm:$0xf]  ;;  %v5650_v54 = vpop.f32.mrf.mxu2  ;;  %v8664_v58 = vld [vmem:[#allocation8 + $0x468] sm:$0xf0]  ;;  %v9806_v31 = vld [vmem:[#allocation8 + $0x554] sm:$0xf] }
 0x2f0   :  { %v5651_v25 = vadd.f32 %v5650_v54, %v5638_v36  ;;  %v8379_v1 = vor.u32 %v9704_v48, %v8376_v56  ;;  %v9732_v28 = vld [vmem:[#allocation8 + $0x304] sm:$0xf]  ;;  %v9778_v36 = vld [vmem:[#allocation8 + $0x474] sm:$0xf]  ;;  %v8864_v48 = vld [vmem:[#allocation8 + $0x5f8] sm:$0xf0]  ;;  %v8555_v56 = vor.u32 %v9748_v33, %v8552_v34  ;;  %v8803_v54 = vor.u32 %v9810_v40, %v8800_v43 }
 0x2f1   :  { %5902 = vmatpush.bf16.msrb.mxu2 %v8539_v62  ;;  %5877 = vmatpush.bf16.msrb.mxu0 %v8403_v15  ;;  %v5663_v62 = vpop.f32.mrf.mxu3  ;;  %v8368_v15 = vld [vmem:[#allocation8 + $0x218] sm:$0xf0]  ;;  %v9792_v57 = vld [vmem:[#allocation8 + $0x4e4] sm:$0xf]  ;;  %v9802_v43 = vld [vmem:[#allocation8 + $0x534] sm:$0xf] }
 0x2f2   :  { %v10313_v4 = vadd.f32 %v5663_v62, %v5651_v25  ;;  %v8371_v19 = vor.u32 %v9702_v10, %v8368_v15  ;;  %v8728_v62 = vld [vmem:[#allocation8 + $0x4e8] sm:$0xf0]  ;;  %v9808_v52 = vld [vmem:[#allocation8 + $0x564] sm:$0xf]  ;;  %v9774_v10 = vld [vmem:[#allocation8 + $0x454] sm:$0xf] }
 0x2f3   :  { %5915 = vmatpush.bf16.msrb.mxu3 %v8603_v23  ;;  %5890 = vmatpush.bf16.msrb.mxu1 %v8467_v3  ;;  %v5639_v23 = vpop.f32.mrf.mxu1  ;;  %v8571_v3 = vor.u32 %v9752_v8, %v8568_v63  ;;  %v8792_v8 = vld [vmem:[#allocation8 + $0x568] sm:$0xf0]  ;;  %v9824_v63 = vld [vmem:[#allocation8 + $0x5e4] sm:$0xf]  ;;  %v8656_v15 = vld [vmem:[#allocation8 + $0x458] sm:$0xf0] }
 0x2f4   :  { %v8856_v23 = vld [vmem:[#allocation8 + $0x5e8] sm:$0xf0]  ;;  %v8784_v0 = vld [vmem:[#allocation8 + $0x558] sm:$0xf0] }
 0x2f5   :  { %5903 = vmatpush.bf16.msrb.mxu2 %v8531_v16  ;;  %5878 = vmatpush.bf16.msrb.mxu0 %v8395_v29  ;;  %v8432_v16 = vld [vmem:[#allocation8 + $0x298] sm:$0xf0]  ;;  %v8787_v59 = vor.u32 %v9806_v31, %v8784_v0  ;;  %v9798_v0 = vld [vmem:[#allocation8 + $0x514] sm:$0xf] }
 0x2f6   :  { %v8435_v24 = vor.u32 %v9718_v21, %v8432_v16  ;;  %v9790_v21 = vld [vmem:[#allocation8 + $0x4d4] sm:$0xf]  ;;  %v8720_v16 = vld [vmem:[#allocation8 + $0x4d8] sm:$0xf0] }
 0x2f7   :  { %5916 = vmatpush.bf16.msrb.mxu3 %v8595_v17  ;;  %5891 = vmatpush.bf16.msrb.mxu1 %v8459_v30  ;;  %v8560_v17 = vld [vmem:[#allocation8 + $0x398] sm:$0xf0]  ;;  %v5652_v30 = vpop.f32.mrf.mxu2  ;;  %v8723_v22 = vor.u32 %v9790_v21, %v8720_v16 }
 0x2f8   :  { %v8563_v29 = vor.u32 %v9750_v55, %v8560_v17  ;;  %v9822_v55 = vld [vmem:[#allocation8 + $0x5d4] sm:$0xf]  ;;  %v8848_v17 = vld [vmem:[#allocation8 + $0x5d8] sm:$0xf0]  ;;  %v8840_v30 = vld [vmem:[#allocation8 + $0x5c8] sm:$0xf0] }
 0x2f9   :  { %5904 = vmatpush.bf16.msrb.mxu2 %v8523_v32  ;;  %5879 = vmatpush.bf16.msrb.mxu0 %v8387_v44  ;;  %v8488_v32 = vld [vmem:[#allocation8 + $0x308] sm:$0xf0]  ;;  %v5665_v35 = vpop.f32.mrf.mxu3  ;;  %v8427_v44 = vor.u32 %v9716_v26, %v8424_v27  ;;  %v8851_v26 = vor.u32 %v9822_v55, %v8848_v17  ;;  %v8704_v40 = vld [vmem:[#allocation8 + $0x4b8] sm:$0xf0]  ;;  %v9814_v17 = vld [vmem:[#allocation8 + $0x594] sm:$0xf] }
 0x2fa   :  { %v8712_v27 = vld [vmem:[#allocation8 + $0x4c8] sm:$0xf0]  ;;  %v8624_v21 = vld [vmem:[#allocation8 + $0x418] sm:$0xf0] }
 0x2fb   :  { %5917 = vmatpush.bf16.msrb.mxu3 %v8587_v13  ;;  %5892 = vmatpush.bf16.msrb.mxu1 %v8451_v46  ;;  %v8672_v13 = vld [vmem:[#allocation8 + $0x478] sm:$0xf0]  ;;  %v8491_v46 = vor.u32 %v9732_v28, %v8488_v32  ;;  %v9804_v28 = vld [vmem:[#allocation8 + $0x544] sm:$0xf] }
 0x2fc   :  { %v8675_v49 = vor.u32 %v9778_v36, %v8672_v13  ;;  %v9770_v36 = vld [vmem:[#allocation8 + $0x434] sm:$0xf]  ;;  %v8640_v13 = vld [vmem:[#allocation8 + $0x438] sm:$0xf0] }
 0x2fd   :  { %5905 = vmatpush.bf16.msrb.mxu2 %v8515_v47  ;;  %5880 = vmatpush.bf16.msrb.mxu0 %v8379_v1  ;;  %v9826_v47 = vld [vmem:[#allocation8 + $0x5f4] sm:$0xf]  ;;  %v8667_v1 = vor.u32 %v9776_v18, %v8664_v58  ;;  %v8688_v31 = vld [vmem:[#allocation8 + $0x498] sm:$0xf0] }
 0x2fe   :  { %v8867_v25 = vor.u32 %v9826_v47, %v8864_v48  ;;  %v8832_v47 = vld [vmem:[#allocation8 + $0x5b8] sm:$0xf0] }
 0x2ff   :  { %5918 = vmatpush.bf16.msrb.mxu3 %v8579_v51  ;;  %5893 = vmatpush.bf16.msrb.mxu1 %v8443_v5  ;;  %v8739_v51 = vor.u32 %v9794_v53, %v8736_v39  ;;  %v8731_v5 = vor.u32 %v9792_v57, %v8728_v62  ;;  %v9786_v53 = vld [vmem:[#allocation8 + $0x4b4] sm:$0xf]  ;;  %v8696_v57 = vld [vmem:[#allocation8 + $0x4a8] sm:$0xf0]  ;;  %v8752_v55 = vld [vmem:[#allocation8 + $0x518] sm:$0xf0] }
 0x300   :  { %v8707_v48 = vor.u32 %v9786_v53, %v8704_v40  ;;  %v8760_v62 = vld [vmem:[#allocation8 + $0x528] sm:$0xf0]  ;;  %v9874_v53 = vld [vmem:[#allocation8 + $0x774] sm:$0xf] }
 0x301   :  { %5906 = vmatpush.bf16.msrb.mxu2 %v8507_v7  ;;  %5881 = vmatpush.bf16.msrb.mxu0 %v8371_v19  ;;  %v8795_v7 = vor.u32 %v9808_v52, %v8792_v8  ;;  %v8659_v19 = vor.u32 %v9774_v10, %v8656_v15  ;;  %v9766_v15 = vld [vmem:[#allocation8 + $0x414] sm:$0xf] }
 0x303   :  { %5919 = vmatpush.bf16.msrb.mxu3 %v8571_v3  ;;  %5894 = vmatpush.bf16.msrb.mxu1 %v8435_v24  ;;  %v8859_v3 = vor.u32 %v9824_v63, %v8856_v23  ;;  %v9772_v24 = vld [vmem:[#allocation8 + $0x444] sm:$0xf]  ;;  %v8824_v23 = vld [vmem:[#allocation8 + $0x5a8] sm:$0xf0] }
 0x304   :  { %v9816_v63 = vld [vmem:[#allocation8 + $0x5a4] sm:$0xf] }
 0x305   :  { %5907 = vmatpush.bf16.msrb.mxu2 %v8499_v45  ;;  %5882 = vmatpush.bf16.msrb.mxu0 %v8363_v37  ;;  %v9788_v45 = vld [vmem:[#allocation8 + $0x4c4] sm:$0xf]  ;;  %v8827_v16 = vor.u32 %v9816_v63, %v8824_v23  ;;  %v9112_v63 = vld [vmem:[#allocation8 + $0x7e8] sm:$0xf0] }
 0x306   :  { %v8715_v34 = vor.u32 %v9788_v45, %v8712_v27  ;;  %v8755_v45 = vor.u32 %v9798_v0, %v8752_v55  ;;  %v8680_v27 = vld [vmem:[#allocation8 + $0x488] sm:$0xf0]  ;;  %v9886_v0 = vld [vmem:[#allocation8 + $0x7d4] sm:$0xf]  ;;  %v9104_v55 = vld [vmem:[#allocation8 + $0x7d8] sm:$0xf0] }
 0x307   :  { %5920 = vmatpush.bf16.msrb.mxu3 %v8563_v29  ;;  %5895 = vmatpush.bf16.msrb.mxu1 %v8427_v44  ;;  %v5676_v29 = vpop.f32.mrf.mxu0  ;;  %v5689_v32 = vpop.f32.mrf.mxu1  ;;  %v8768_v44 = vld [vmem:[#allocation8 + $0x538] sm:$0xf0] }
 0x308   :  { %5883 = vmatmul.bf16.vlgmr.msrb.gmra.mxu0 %v10250_v61  ;;  %v8648_v61 = vld [vmem:[#allocation8 + $0x448] sm:$0xf0] }
 0x309   :  { %5908 = vmatpush.bf16.msrb.mxu2 %v8491_v46  ;;  %5927 = vmatpush.bf16.msra.mxu0 %v8675_v49  ;;  %v8651_v33 = vor.u32 %v9772_v24, %v8648_v61  ;;  %v9818_v46 = vld [vmem:[#allocation8 + $0x5b4] sm:$0xf]  ;;  %v9768_v49 = vld [vmem:[#allocation8 + $0x424] sm:$0xf]  ;;  %v8616_v24 = vld [vmem:[#allocation8 + $0x408] sm:$0xf0] }
 0x30a   :  { %5896 = vmatmul.bf16.vlgmr.msrb.gmra.mxu1 %v10252_v2  ;;  %v8776_v2 = vld [vmem:[#allocation8 + $0x548] sm:$0xf0]  ;;  %v8835_v18 = vor.u32 %v9818_v46, %v8832_v47  ;;  %v9120_v46 = vld [vmem:[#allocation8 + $0x7f8] sm:$0xf0] }
 0x30b   :  { %5921 = vmatpush.bf16.msrb.mxu3 %v8555_v56  ;;  %5940 = vmatpush.bf16.msra.mxu1 %v8739_v51  ;;  %v8779_v35 = vor.u32 %v9804_v28, %v8776_v2  ;;  %v8771_v56 = vor.u32 %v9802_v43, %v8768_v44  ;;  %v8632_v51 = vld [vmem:[#allocation8 + $0x428] sm:$0xf0]  ;;  %v9796_v28 = vld [vmem:[#allocation8 + $0x504] sm:$0xf]  ;;  %v9890_v44 = vld [vmem:[#allocation8 + $0x7f4] sm:$0xf] }
 0x30c   :  { %5909 = vmatmul.bf16.vlgmr.msrb.gmra.mxu2 %v10254_v60  ;;  %v9820_v60 = vld [vmem:[#allocation8 + $0x5c4] sm:$0xf] }
 0x30d   :  { %5953 = vmatpush.bf16.msra.mxu2 %v8803_v54  ;;  %5928 = vmatpush.bf16.msra.mxu0 %v8667_v1  ;;  %v8843_v39 = vor.u32 %v9820_v60, %v8840_v30  ;;  %v9784_v54 = vld [vmem:[#allocation8 + $0x4a4] sm:$0xf]  ;;  %v8744_v60 = vld [vmem:[#allocation8 + $0x508] sm:$0xf0] }
 0x30e   :  { %5922 = vmatmul.bf16.vlgmr.msrb.gmra.mxu3 %v10256_v9  ;;  %v5677_v9 = vadd.f32 %v5676_v29, %v10313_v4  ;;  %v8643_v4 = vor.u32 %v9770_v36, %v8640_v13  ;;  %v9812_v30 = vld [vmem:[#allocation8 + $0x584] sm:$0xf]  ;;  %v8992_v13 = vld [vmem:[#allocation8 + $0x6f8] sm:$0xf0]  ;;  %v8747_v43 = vor.u32 %v9796_v28, %v8744_v60  ;;  %v9096_v28 = vld [vmem:[#allocation8 + $0x7c8] sm:$0xf0] }
 0x30f   :  { %5966 = vmatpush.bf16.msra.mxu3 %v8867_v25  ;;  %5941 = vmatpush.bf16.msra.mxu1 %v8731_v5  ;;  %v10322_v58 = vpop.f32.mrf.mxu2  ;;  %v9800_v25 = vld [vmem:[#allocation8 + $0x524] sm:$0xf]  ;;  %v5678_v8 = vpop.f32.mrf.mxu0  ;;  %v8635_v5 = vor.u32 %v9768_v49, %v8632_v51  ;;  %v8920_v51 = vld [vmem:[#allocation8 + $0x668] sm:$0xf0] }
 0x310   :  { %v10320_v37 = vadd.f32 %v5689_v32, %v5677_v9  ;;  %v5691_v1 = vpop.f32.mrf.mxu1  ;;  %v8763_v10 = vor.u32 %v9800_v25, %v8760_v62  ;;  %v8808_v9 = vld [vmem:[#allocation8 + $0x588] sm:$0xf0]  ;;  %v9840_v49 = vld [vmem:[#allocation8 + $0x664] sm:$0xf] }
 0x311   :  { %5954 = vmatpush.bf16.msra.mxu2 %v8795_v7  ;;  %5929 = vmatpush.bf16.msra.mxu0 %v8659_v19  ;;  %v10324_v52 = vpop.f32.mrf.mxu3  ;;  %v8699_v7 = vor.u32 %v9784_v54, %v8696_v57  ;;  %v8816_v19 = vld [vmem:[#allocation8 + $0x598] sm:$0xf0]  ;;  %v8811_v47 = vor.u32 %v9812_v30, %v8808_v9  ;;  %v9856_v54 = vld [vmem:[#allocation8 + $0x6e4] sm:$0xf]  ;;  %v8984_v57 = vld [vmem:[#allocation8 + $0x6e8] sm:$0xf0]  ;;  %v8923_v23 = vor.u32 %v9840_v49, %v8920_v51 }
 0x312   :  { %v8819_v2 = vor.u32 %v9814_v17, %v8816_v19  ;;  %v9872_v25 = vld [vmem:[#allocation8 + $0x764] sm:$0xf]  ;;  %v9048_v62 = vld [vmem:[#allocation8 + $0x768] sm:$0xf0]  ;;  %v8987_v1 = vor.u32 %v9856_v54, %v8984_v57  ;;  %v9834_v30 = vld [vmem:[#allocation8 + $0x634] sm:$0xf] }
 0x313   :  { %5967 = vmatpush.bf16.msra.mxu3 %v8859_v3  ;;  %5942 = vmatpush.bf16.msra.mxu1 %v8723_v22  ;;  %v9782_v3 = vld [vmem:[#allocation8 + $0x494] sm:$0xf]  ;;  %v8627_v22 = vor.u32 %v9766_v15, %v8624_v21  ;;  %v9888_v8 = vld [vmem:[#allocation8 + $0x7e4] sm:$0xf]  ;;  %v8896_v9 = vld [vmem:[#allocation8 + $0x638] sm:$0xf0] }
 0x314   :  { %v8691_v61 = vor.u32 %v9782_v3, %v8688_v31  ;;  %v9854_v15 = vld [vmem:[#allocation8 + $0x6d4] sm:$0xf]  ;;  %v9115_v21 = vor.u32 %v9888_v8, %v9112_v63  ;;  %v8976_v3 = vld [vmem:[#allocation8 + $0x6d8] sm:$0xf0]  ;;  %v9864_v49 = vld [vmem:[#allocation8 + $0x724] sm:$0xf] }
 0x315   :  { %5955 = vmatpush.bf16.msra.mxu2 %v8787_v59  ;;  %5930 = vmatpush.bf16.msra.mxu0 %v8651_v33  ;;  %v9764_v59 = vld [vmem:[#allocation8 + $0x404] sm:$0xf]  ;;  %v9842_v33 = vld [vmem:[#allocation8 + $0x674] sm:$0xf]  ;;  %v9040_v31 = vld [vmem:[#allocation8 + $0x758] sm:$0xf0]  ;;  %v8979_v19 = vor.u32 %v9854_v15, %v8976_v3 }
 0x316   :  { %v8619_v36 = vor.u32 %v9764_v59, %v8616_v24  ;;  %v9836_v59 = vld [vmem:[#allocation8 + $0x644] sm:$0xf]  ;;  %v9016_v51 = vld [vmem:[#allocation8 + $0x728] sm:$0xf0]  ;;  %v8944_v15 = vld [vmem:[#allocation8 + $0x698] sm:$0xf0] }
 0x317   :  { %5968 = vmatpush.bf16.msra.mxu3 %v8851_v26  ;;  %5943 = vmatpush.bf16.msra.mxu1 %v8715_v34  ;;  %v9780_v26 = vld [vmem:[#allocation8 + $0x484] sm:$0xf]  ;;  %v5704_v29 = vpop.f32.mrf.mxu2  ;;  %v8928_v34 = vld [vmem:[#allocation8 + $0x678] sm:$0xf0] }
 0x318   :  { %v8683_v40 = vor.u32 %v9780_v26, %v8680_v27  ;;  %v9852_v24 = vld [vmem:[#allocation8 + $0x6c4] sm:$0xf]  ;;  %v9008_v3 = vld [vmem:[#allocation8 + $0x718] sm:$0xf0] }
 0x319   :  { %5956 = vmatpush.bf16.msra.mxu2 %v8779_v35  ;;  %5931 = vmatpush.bf16.msra.mxu0 %v8643_v4  ;;  %v5717_v32 = vpop.f32.mrf.mxu3  ;;  %v9858_v35 = vld [vmem:[#allocation8 + $0x6f4] sm:$0xf]  ;;  %v8931_v4 = vor.u32 %v9842_v33, %v8928_v34  ;;  %v9868_v26 = vld [vmem:[#allocation8 + $0x744] sm:$0xf]  ;;  %v8960_v34 = vld [vmem:[#allocation8 + $0x6b8] sm:$0xf0] }
 0x31a   :  { %v9850_v32 = vld [vmem:[#allocation8 + $0x6b4] sm:$0xf]  ;;  %v9880_v57 = vld [vmem:[#allocation8 + $0x7a4] sm:$0xf] }
 0x31b   :  { %5969 = vmatpush.bf16.msra.mxu3 %v8843_v39  ;;  %5944 = vmatpush.bf16.msra.mxu1 %v8707_v48  ;;  %v9056_v39 = vld [vmem:[#allocation8 + $0x778] sm:$0xf0]  ;;  %v8995_v48 = vor.u32 %v9858_v35, %v8992_v13  ;;  %v9866_v35 = vld [vmem:[#allocation8 + $0x734] sm:$0xf] }
 0x31c   :  { %v9882_v13 = vld [vmem:[#allocation8 + $0x7b4] sm:$0xf] }
 0x31d   :  { %5957 = vmatpush.bf16.msra.mxu2 %v8771_v56  ;;  %5932 = vmatpush.bf16.msra.mxu0 %v8635_v5  ;;  %v9059_v56 = vor.u32 %v9874_v53, %v9056_v39  ;;  %v9051_v5 = vor.u32 %v9872_v25, %v9048_v62  ;;  %v9088_v53 = vld [vmem:[#allocation8 + $0x7b8] sm:$0xf0]  ;;  %v8899_v39 = vor.u32 %v9834_v30, %v8896_v9  ;;  %v9080_v25 = vld [vmem:[#allocation8 + $0x7a8] sm:$0xf0] }
 0x31f   :  { %5970 = vmatpush.bf16.msra.mxu3 %v8835_v18  ;;  %5945 = vmatpush.bf16.msra.mxu1 %v8699_v7  ;;  %v9123_v18 = vor.u32 %v9890_v44, %v9120_v46  ;;  %v9838_v7 = vld [vmem:[#allocation8 + $0x654] sm:$0xf]  ;;  %v9832_v44 = vld [vmem:[#allocation8 + $0x624] sm:$0xf]  ;;  %v8888_v46 = vld [vmem:[#allocation8 + $0x628] sm:$0xf0] }
 0x320   :  { %v8891_v8 = vor.u32 %v9832_v44, %v8888_v46  ;;  %v4332_v44 = vperm.slane %v10306_v11, 1 }
 0x321   :  { %5958 = vmatpush.bf16.msra.mxu2 %v8763_v10  ;;  %5933 = vmatpush.bf16.msra.mxu0 %v8627_v22  ;;  %v8912_v10 = vld [vmem:[#allocation8 + $0x658] sm:$0xf0] }
 0x322   :  { %v8915_v17 = vor.u32 %v9838_v7, %v8912_v10  ;;  %v9846_v7 = vld [vmem:[#allocation8 + $0x694] sm:$0xf]  ;;  %v9083_v10 = vor.u32 %v9880_v57, %v9080_v25 }
 0x323   :  { %5971 = vmatpush.bf16.msra.mxu3 %v8827_v16  ;;  %5946 = vmatpush.bf16.msra.mxu1 %v8691_v61  ;;  %v9870_v16 = vld [vmem:[#allocation8 + $0x754] sm:$0xf]  ;;  %v9107_v61 = vor.u32 %v9886_v0, %v9104_v55  ;;  %v8947_v55 = vor.u32 %v9846_v7, %v8944_v15 }
 0x324   :  { %v9043_v22 = vor.u32 %v9870_v16, %v9040_v31  ;;  %v9878_v16 = vld [vmem:[#allocation8 + $0x794] sm:$0xf]  ;;  %v9072_v31 = vld [vmem:[#allocation8 + $0x798] sm:$0xf0] }
 0x325   :  { %5959 = vmatpush.bf16.msra.mxu2 %v8755_v45  ;;  %5934 = vmatpush.bf16.msra.mxu0 %v8619_v36  ;;  %v8968_v45 = vld [vmem:[#allocation8 + $0x6c8] sm:$0xf0]  ;;  %v10330_v27 = vpop.f32.mrf.mxu0  ;;  %v9024_v36 = vld [vmem:[#allocation8 + $0x738] sm:$0xf0] }
 0x326   :  { %v8971_v29 = vor.u32 %v9852_v24, %v8968_v45  ;;  %v9860_v45 = vld [vmem:[#allocation8 + $0x704] sm:$0xf] }
 0x327   :  { %5972 = vmatpush.bf16.msra.mxu3 %v8819_v2  ;;  %5947 = vmatpush.bf16.msra.mxu1 %v8683_v40  ;;  %v8963_v40 = vor.u32 %v9850_v32, %v8960_v34 }
 0x328   :  { %5935 = vmatmul.bf16.vlgmr.msra.gmra.mxu0 %v10274_v50  ;;  %v8904_v50 = vld [vmem:[#allocation8 + $0x648] sm:$0xf0] }
 0x329   :  { %5960 = vmatpush.bf16.msra.mxu2 %v8747_v43  ;;  %5979 = vmatpush.bf16.msrb.mxu0 %v8931_v4  ;;  %v8907_v2 = vor.u32 %v9836_v59, %v8904_v50  ;;  %v9027_v43 = vor.u32 %v9866_v35, %v9024_v36  ;;  %v9091_v4 = vor.u32 %v9882_v13, %v9088_v53  ;;  %v9844_v59 = vld [vmem:[#allocation8 + $0x684] sm:$0xf] }
 0x32a   :  { %5948 = vmatmul.bf16.vlgmr.msra.gmra.mxu1 %v10276_v42  ;;  %v9032_v42 = vld [vmem:[#allocation8 + $0x748] sm:$0xf0]  ;;  %v9075_v50 = vor.u32 %v9878_v16, %v9072_v31 }
 0x32b   :  { %5973 = vmatpush.bf16.msra.mxu3 %v8811_v47  ;;  %5992 = vmatpush.bf16.msrb.mxu1 %v8995_v48  ;;  %v9035_v60 = vor.u32 %v9868_v26, %v9032_v42  ;;  %v9848_v47 = vld [vmem:[#allocation8 + $0x6a4] sm:$0xf]  ;;  %v9000_v26 = vld [vmem:[#allocation8 + $0x708] sm:$0xf0] }
 0x32c   :  { %5961 = vmatmul.bf16.vlgmr.msra.gmra.mxu2 %v10278_v14  ;;  %v9884_v14 = vld [vmem:[#allocation8 + $0x7c4] sm:$0xf] }
 0x32d   :  { %6005 = vmatpush.bf16.msrb.mxu2 %v9059_v56  ;;  %5980 = vmatpush.bf16.msrb.mxu0 %v8923_v23  ;;  %v9099_v33 = vor.u32 %v9884_v14, %v9096_v28  ;;  %v8952_v56 = vld [vmem:[#allocation8 + $0x6a8] sm:$0xf0]  ;;  %v9019_v23 = vor.u32 %v9864_v49, %v9016_v51  ;;  %v9876_v14 = vld [vmem:[#allocation8 + $0x784] sm:$0xf] }
 0x32e   :  { %5974 = vmatmul.bf16.vlgmr.msra.gmra.mxu3 %v10280_v20  ;;  %v10332_v20 = vpop.f32.mrf.mxu1  ;;  %v8955_v63 = vor.u32 %v9848_v47, %v8952_v56  ;;  %v9064_v28 = vld [vmem:[#allocation8 + $0x788] sm:$0xf0] }
 0x32f   :  { %6018 = vmatpush.bf16.msrb.mxu3 %v9123_v18  ;;  %5993 = vmatpush.bf16.msrb.mxu1 %v8987_v1  ;;  %v10334_v48 = vpop.f32.mrf.mxu2  ;;  %v5730_v18 = vpop.f32.mrf.mxu0  ;;  %v9830_v1 = vld [vmem:[#allocation8 + $0x614] sm:$0xf]  ;;  %v9067_v30 = vor.u32 %v9876_v14, %v9064_v28 }
 0x331   :  { %6006 = vmatpush.bf16.msrb.mxu2 %v9051_v5  ;;  %5981 = vmatpush.bf16.msrb.mxu0 %v8915_v17  ;;  %v10336_v54 = vpop.f32.mrf.mxu3  ;;  %v8880_v5 = vld [vmem:[#allocation8 + $0x618] sm:$0xf0] }
 0x332   :  { %v8883_v0 = vor.u32 %v9830_v1, %v8880_v5 }
 0x333   :  { %6019 = vmatpush.bf16.msrb.mxu3 %v9115_v21  ;;  %5994 = vmatpush.bf16.msrb.mxu1 %v8979_v19  ;;  %v9862_v21 = vld [vmem:[#allocation8 + $0x714] sm:$0xf]  ;;  %v9828_v19 = vld [vmem:[#allocation8 + $0x604] sm:$0xf] }
 0x334   :  { %v9011_v17 = vor.u32 %v9862_v21, %v9008_v3 }
 0x335   :  { %6007 = vmatpush.bf16.msrb.mxu2 %v9043_v22  ;;  %5982 = vmatpush.bf16.msrb.mxu0 %v8907_v2  ;;  %v8872_v22 = vld [vmem:[#allocation8 + $0x608] sm:$0xf0] }
 0x336   :  { %v5743_v62 = vpop.f32.mrf.mxu1  ;;  %v8875_v2 = vor.u32 %v9828_v19, %v8872_v22 }
 0x337   :  { %6020 = vmatpush.bf16.msrb.mxu3 %v9107_v61  ;;  %5995 = vmatpush.bf16.msrb.mxu1 %v8971_v29  ;;  %v5756_v24 = vpop.f32.mrf.mxu2  ;;  %v8936_v61 = vld [vmem:[#allocation8 + $0x688] sm:$0xf0] }
 0x338   :  { %v8939_v29 = vor.u32 %v9844_v59, %v8936_v61 }
 0x339   :  { %6008 = vmatpush.bf16.msrb.mxu2 %v9035_v60  ;;  %5983 = vmatpush.bf16.msrb.mxu0 %v8899_v39  ;;  %v5769_v42 = vpop.f32.mrf.mxu3  ;;  %v9003_v60 = vor.u32 %v9860_v45, %v9000_v26 }
 0x33b   :  { %6021 = vmatpush.bf16.msrb.mxu3 %v9099_v33  ;;  %5996 = vmatpush.bf16.msrb.mxu1 %v8963_v40  ;;  %v5703_v33 = vadd.f32 %v10322_v58, %v10320_v37 }
 0x33d   :  { %6009 = vmatpush.bf16.msrb.mxu2 %v9027_v43  ;;  %5984 = vmatpush.bf16.msrb.mxu0 %v8891_v8  ;;  %v5716_v34 = vadd.f32 %v10324_v52, %v5703_v33 }
 0x33f   :  { %6022 = vmatpush.bf16.msrb.mxu3 %v9091_v4  ;;  %5997 = vmatpush.bf16.msrb.mxu1 %v8955_v63  ;;  %v5729_v36 = vadd.f32 %v10330_v27, %v5716_v34 }
 0x341   :  { %6010 = vmatpush.bf16.msrb.mxu2 %v9019_v23  ;;  %5985 = vmatpush.bf16.msrb.mxu0 %v8883_v0 }
 0x343   :  { %6023 = vmatpush.bf16.msrb.mxu3 %v9083_v10  ;;  %5998 = vmatpush.bf16.msrb.mxu1 %v8947_v55 }
 0x345   :  { %6011 = vmatpush.bf16.msrb.mxu2 %v9011_v17  ;;  %5986 = vmatpush.bf16.msrb.mxu0 %v8875_v2  ;;  %v5780_v9 = vpop.f32.mrf.mxu0 }
 0x347   :  { %6024 = vmatpush.bf16.msrb.mxu3 %v9075_v50  ;;  %5999 = vmatpush.bf16.msrb.mxu1 %v8939_v29  ;;  %v5793_v32 = vpop.f32.mrf.mxu1 }
 0x348   :  { %5987 = vmatmul.bf16.vlgmr.msrb.gmra.mxu0 %v10295_v6  ;;  %v5742_v6 = vadd.f32 %v10332_v20, %v5729_v36 }
 0x349   :  { %6012 = vmatpush.bf16.msrb.mxu2 %v9003_v60 }
 0x34a   :  { %6000 = vmatmul.bf16.vlgmr.msrb.gmra.mxu1 %v10297_v38  ;;  %v5755_v38 = vadd.f32 %v10334_v48, %v5742_v6 }
 0x34b   :  { %6025 = vmatpush.bf16.msrb.mxu3 %v9067_v30 }
 0x34c   :  { %6013 = vmatmul.bf16.vlgmr.msrb.gmra.mxu2 %v10293_v41  ;;  %v5768_v41 = vadd.f32 %v10336_v54, %v5755_v38 }
 0x34d   :  { %v5782_v13 = vpop.f32.mrf.mxu0 }
 0x34e   :  { %6026 = vmatmul.bf16.vlgmr.msrb.gmra.mxu3 %v10303_v12  ;;  %v5781_v12 = vadd.f32 %v5780_v9, %v5768_v41 }
 0x34f   :  { %v5806_v35 = vpop.f32.mrf.mxu2  ;;  %v5795_v53 = vpop.f32.mrf.mxu1 }
 0x350   :  { %v5794_v40 = vadd.f32 %v5793_v32, %v5781_v12 }
 0x352   :  { %v5807_v43 = vadd.f32 %v5806_v35, %v5794_v40 }
 0x357   :  { %v5808_v39 = vpop.f32.mrf.mxu2 }
 0x35b   :  { %v5819_v37 = vpop.f32.mrf.mxu3 }
 0x35c   :  { %v5820_v58 = vadd.f32 %v5819_v37, %v5807_v43 }
 0x35e   :  { %6031 = vst [vmem:[#allocation11] sm:$0xff] %v5820_v58 }
 0x363   :  { %v5821_v4 = vpop.f32.mrf.mxu3 }
 0x365   :  { %v5832_v52 = vpop.f32.mrf.mxu0 }
 0x366   :  { %v5833_v46 = vadd.f32 %v5832_v52, %v4332_v44 }
 0x367   :  { %v5845_v27 = vpop.f32.mrf.mxu1 }
 0x368   :  { %v5846_v47 = vadd.f32 %v5845_v27, %v5833_v46 }
 0x36d   :  { %v5834_v49 = vpop.f32.mrf.mxu0 }
 0x36f   :  { %v5858_v56 = vpop.f32.mrf.mxu2  ;;  %v5847_v48 = vpop.f32.mrf.mxu1 }
 0x370   :  { %v5859_v20 = vadd.f32 %v5858_v56, %v5846_v47 }
 0x371   :  { %v5871_v18 = vpop.f32.mrf.mxu3 }
 0x372   :  { %v5872_v10 = vadd.f32 %v5871_v18, %v5859_v20 }
 0x377   :  { %v5860_v51 = vpop.f32.mrf.mxu2 }
 0x379   :  { %v5873_v54 = vpop.f32.mrf.mxu3 }
 0x385   :  { %v5884_v57 = vpop.f32.mrf.mxu0 }
 0x386   :  { %v5885_v15 = vadd.f32 %v5884_v57, %v5872_v10 }
 0x387   :  { %v5897_v25 = vpop.f32.mrf.mxu1 }
 0x388   :  { %v5898_v0 = vadd.f32 %v5897_v25, %v5885_v15 }
 0x38d   :  { %v5886_v11 = vpop.f32.mrf.mxu0 }
 0x38f   :  { %v5910_v62 = vpop.f32.mrf.mxu2  ;;  %v5899_v63 = vpop.f32.mrf.mxu1 }
 0x390   :  { %v5911_v55 = vadd.f32 %v5910_v62, %v5898_v0 }
 0x391   :  { %v5923_v8 = vpop.f32.mrf.mxu3 }
 0x392   :  { %v5924_v22 = vadd.f32 %v5923_v8, %v5911_v55 }
 0x397   :  { %v5912_v23 = vpop.f32.mrf.mxu2 }
 0x399   :  { %v5925_v1 = vpop.f32.mrf.mxu3 }
 0x3a5   :  { %v5936_v5 = vpop.f32.mrf.mxu0 }
 0x3a6   :  { %v5937_v59 = vadd.f32 %v5936_v5, %v5924_v22 }
 0x3a7   :  { %v5949_v7 = vpop.f32.mrf.mxu1 }
 0x3a8   :  { %v5950_v50 = vadd.f32 %v5949_v7, %v5937_v59 }
 0x3ad   :  { %v5938_v16 = vpop.f32.mrf.mxu0 }
 0x3af   :  { %v5962_v21 = vpop.f32.mrf.mxu2  ;;  %v5951_v31 = vpop.f32.mrf.mxu1 }
 0x3b0   :  { %v5963_v24 = vadd.f32 %v5962_v21, %v5950_v50 }
 0x3b1   :  { %v5975_v3 = vpop.f32.mrf.mxu3 }
 0x3b2   :  { %v5976_v61 = vadd.f32 %v5975_v3, %v5963_v24 }
 0x3b7   :  { %v5964_v17 = vpop.f32.mrf.mxu2 }
 0x3b9   :  { %v5977_v19 = vpop.f32.mrf.mxu3 }
 0x3c5   :  { %v5988_v45 = vpop.f32.mrf.mxu0 }
 0x3c6   :  { %v5989_v42 = vadd.f32 %v5988_v45, %v5976_v61 }
 0x3c7   :  { %v6001_v26 = vpop.f32.mrf.mxu1 }
 0x3c8   :  { %v6002_v14 = vadd.f32 %v6001_v26, %v5989_v42 }
 0x3cd   :  { %v5990_v60 = vpop.f32.mrf.mxu0 }
 0x3cf   :  { %v6014_v28 = vpop.f32.mrf.mxu2  ;;  %v6003_v30 = vpop.f32.mrf.mxu1 }
 0x3d0   :  { %v6015_v2 = vadd.f32 %v6014_v28, %v6002_v14 }
 0x3d1   :  { %v6027_v29 = vpop.f32.mrf.mxu3 }
 0x3d2   :  { %v6028_v9 = vadd.f32 %v6027_v29, %v6015_v2 }
 0x3d4   :  { %6032 = vst [vmem:[#allocation11 + $0x8] sm:$0xff] %v6028_v9 }
 0x3d5   :  { %6043 = dma.vmem_to_hbm [thread:$0]  %s6039_s4, 256, %s6041_s21, [#allocation4]  }
 0x3d7   :  { %v6016_v32 = vpop.f32.mrf.mxu2 }
 0x3d9   :  { %v6029_v33 = vpop.f32.mrf.mxu3 }
 0x3da   :  { %10054 = dma.done.wait [#allocation4], 256  }
 0x3db   :  { %10055 = vsyncadd [#allocation4], 4294967040 }
 0x3dc   :  { %6048 = vsyncpa [#allocation3], 1 }
 0x3dd   :  { %6049 = vsyncpa [#allocation6], 1 }
 0x3de   :  { %6050 = vsyncpa [#allocation9], 1 }
 0x3df   :  { %6051 = vsyncpa [#allocation4], 1 }

</bundles_post_ra>
